<compile_context>
chip_gen: v6e
topology: v6e:2x2x1
jax: 0.10.0
libtpu: 0.0.40
codegen_flags: <defaults>
</compile_context>

<pallas_src>
import jax
import jax.numpy as jnp
import numpy as np
from jax.experimental import pallas as pl
from jax.experimental.pallas import tpu as pltpu

BN_EPS = 1e-5
K = 3            # conv kernel size
S = 2            # conv stride
NUM_TAPS = K * K

# spatial sizes through the net for 32x32 input
H0, H1, H2, H3 = 32, 15, 7, 3


# ----------------------------------------------------------------------------
# The single fused Pallas kernel.
# ----------------------------------------------------------------------------
def _make_kernel(n_batch):
    def kernel(p1_ref, wc_ref, wfc_ref, b_ref, o_ref, p2_ref, p3_ref, hfc_ref):
        f32 = jnp.float32

        # Packed per-layer shifts (conv bias + BN folded) and FC bias.
        b = b_ref[...]                                   # [1, 128]
        b1, b2, b3 = b[:, 0:16], b[:, 16:48], b[:, 48:112]
        bfc = b[:, 112:122]
        # Packed, BN-folded conv weights (column groups of one buffer).
        w1 = wc_ref[0:27, 0:16]                          # [27, 16]
        w2 = wc_ref[0:144, 16:48]                        # [144, 32]
        w3 = wc_ref[0:288, 48:112]                       # [288, 64]

        def gather_taps(h4, ho, wo, c, p_ref):
            """h4: [Hin, Win, N, C] activations (rows ordered (i, j, n)).
            Writes the 9 stride-2 taps into p_ref[:, :, :, c*t : c*(t+1)],
            building a [ho, wo, N, 9*c] patch block with only unit-stride
            slices and even pair-reshapes (parity pick)."""
            hin, win = h4.shape[0], h4.shape[1]
            for dh in range(K):
                sh = min(dh, hin - S * ho)               # slice start (static)
                ph = dh - sh                             # parity within the pair
                rows = h4[sh:sh + S * ho]                # [2*ho, win, N, C]
                rows = rows.reshape(ho, S, win, n_batch, c)[:, ph]   # [ho, win, N, C]
                for dw in range(K):
                    sw = min(dw, win - S * wo)
                    pw = dw - sw
                    t = dh * K + dw
                    cols = rows[:, sw:sw + S * wo]                   # [ho, 2*wo, N, C]
                    cols = cols.reshape(ho, wo, S, n_batch, c)[:, :, pw]  # [ho, wo, N, C]
                    p_ref[:, :, :, c * t:c * (t + 1)] = cols

        # ---- Layer 1: im2col patches (from wrapper) -> one K=27 matmul ----
        h1 = jnp.dot(p1_ref[...], w1, preferred_element_type=f32)   # [N*15*15, 16]
        h1 = jnp.maximum(h1 + b1, 0.0)

        # ---- Layer 2: in-VMEM gather -> one K=144 matmul ----
        gather_taps(h1.reshape(H1, W := H1, n_batch, 16), H2, H2, 16, p2_ref)
        p2 = p2_ref[...].reshape(H2 * H2 * n_batch, NUM_TAPS * 16)
        h2 = jnp.maximum(jnp.dot(p2, w2, preferred_element_type=f32) + b2, 0.0)

        # ---- Layer 3: in-VMEM gather -> one K=288 matmul ----
        gather_taps(h2.reshape(H2, H2, n_batch, 32), H3, H3, 32, p3_ref)
        p3 = p3_ref[...].reshape(H3 * H3 * n_batch, NUM_TAPS * 32)
        h3 = jnp.maximum(jnp.dot(p3, w3, preferred_element_type=f32) + b3, 0.0)

        # ---- Classifier: regroup (s, n) row blocks into [N, 576], one matmul ----
        for s in range(H3 * H3):
            hfc_ref[:, 64 * s:64 * (s + 1)] = h3[s * n_batch:(s + 1) * n_batch, :]
        o_ref[...] = (jnp.dot(hfc_ref[...], wfc_ref[...],
                              preferred_element_type=f32) + bfc)

    return kernel


def fused_forward(packed, patches, n_batch):
    vmem = pl.BlockSpec(memory_space=pltpu.MemorySpace.VMEM)
    return pl.pallas_call(
        _make_kernel(n_batch),
        out_shape=jax.ShapeDtypeStruct((n_batch, 10), jnp.float32),
        in_specs=[vmem] * 4,
        out_specs=vmem,
        scratch_shapes=[
            pltpu.VMEM((H2, H2, n_batch, NUM_TAPS * 16), jnp.float32),  # p2
            pltpu.VMEM((H3, H3, n_batch, NUM_TAPS * 32), jnp.float32),  # p3
            pltpu.VMEM((n_batch, 576), jnp.float32),                    # FC input
        ],
        compiler_params=pltpu.CompilerParams(vmem_limit_bytes=32 * 1024 * 1024),
    )(patches, packed["wconv"], packed["wfc"], packed["bcat"])


# ----------------------------------------------------------------------------
# Layer-1 im2col (cheap XLA on the 12 KB input, fused under jit).
# Rows ordered (i, j, n); columns ordered (tap, cin) to match the packed w1.
# ----------------------------------------------------------------------------
def _first_layer_patches(x_nchw):
    x = jnp.transpose(x_nchw, (2, 3, 0, 1))                  # [H, W, N, C]
    h, w, n, c = x.shape
    ho = (h - K) // S + 1
    wo = (w - K) // S + 1
    taps = []
    for di in range(K):
        for dj in range(K):
            taps.append(x[di:di + S * (ho - 1) + 1:S,
                          dj:dj + S * (wo - 1) + 1:S, :, :])  # [ho, wo, N, C]
    p = jnp.stack(taps, axis=3)                               # [ho, wo, N, 9, C]
    return p.reshape(ho * wo * n, NUM_TAPS * c)


@jax.jit
def simple_model_forward(packed, x_nchw):
    patches = _first_layer_patches(x_nchw)
    return fused_forward(packed, patches, x_nchw.shape[0])


# ----------------------------------------------------------------------------
# Parameter construction (deterministic, synthetic) + packing for the kernel.
# ----------------------------------------------------------------------------
def make_params(key):
    specs = [(3, 16), (16, 32), (32, 64)]
    params = {"convs": []}
    for cin, cout in specs:
        key, k1, k2, k3, k4, k5, k6 = jax.random.split(key, 7)
        params["convs"].append(dict(
            w=jax.random.normal(k1, (cout, cin, K, K), jnp.float32) * 0.05,
            b=jax.random.normal(k2, (cout,), jnp.float32) * 0.05,
            gamma=1.0 + 0.1 * jax.random.normal(k3, (cout,), jnp.float32),
            beta=0.1 * jax.random.normal(k4, (cout,), jnp.float32),
            mean=0.1 * jax.random.normal(k5, (cout,), jnp.float32),
            var=jnp.abs(1.0 + 0.1 * jax.random.normal(k6, (cout,), jnp.float32)),
        ))
    key, k1, k2 = jax.random.split(key, 3)
    params["fc_w"] = jax.random.normal(k1, (10, 576), jnp.float32) * 0.05
    params["fc_b"] = jax.random.normal(k2, (10,), jnp.float32) * 0.05
    return params


def pack_params(params):
    """Fold BN into weights/shifts and pack everything into 3 small buffers."""
    folded = []
    for layer in params["convs"]:
        w = np.asarray(layer["w"])                                    # [co, ci, 3, 3]
        scale = np.asarray(layer["gamma"]) / np.sqrt(np.asarray(layer["var"]) + BN_EPS)
        shift = (np.asarray(layer["b"]) * scale
                 + np.asarray(layer["beta"]) - np.asarray(layer["mean"]) * scale)
        wf = (w * scale[:, None, None, None]).transpose(2, 3, 1, 0)   # [3,3,ci,co]
        cin, cout = wf.shape[2], wf.shape[3]
        folded.append((wf.reshape(NUM_TAPS * cin, cout), shift))      # row = t*ci + c_in

    wconv = np.zeros((288, 112), np.float32)          # one buffer, BN folded in
    wconv[:27, 0:16] = folded[0][0]
    wconv[:144, 16:48] = folded[1][0]
    wconv[:288, 48:112] = folded[2][0]

    bcat = np.zeros((1, 128), np.float32)             # all shifts + FC bias in one row
    bcat[0, 0:16] = folded[0][1]
    bcat[0, 16:48] = folded[1][1]
    bcat[0, 48:112] = folded[2][1]
    bcat[0, 112:122] = np.asarray(params["fc_b"])

    # FC weight: kernel's FC-input column s*64 + c  <->  torch flat column c*9 + s.
    fcw = np.asarray(params["fc_w"])                                  # [10, 576]
    wfc = fcw.reshape(10, 64, NUM_TAPS).transpose(2, 1, 0).reshape(576, 10)

    return {"wconv": jnp.asarray(wconv),
            "wfc": jnp.asarray(np.ascontiguousarray(wfc, dtype=np.float32)),
            "bcat": jnp.asarray(bcat)}


# ----------------------------------------------------------------------------
# Pure-JAX reference (no Pallas) for correctness checking.
# ----------------------------------------------------------------------------
def reference_forward(params, x_nchw):
    h = x_nchw
    for layer in params["convs"]:
        h = jax.lax.conv_general_dilated(
            h, layer["w"], window_strides=(S, S), padding="VALID",
            dimension_numbers=("NCHW", "OIHW", "NCHW"))
        h = h + layer["b"][None, :, None, None]
        scale = layer["gamma"] / jnp.sqrt(layer["var"] + BN_EPS)
        shift = layer["beta"] - layer["mean"] * scale
        h = h * scale[None, :, None, None] + shift[None, :, None, None]
        h = jnp.maximum(h, 0.0)
    h = h.reshape(h.shape[0], -1)                                     # channel-major flatten
    return h @ params["fc_w"].T + params["fc_b"]


if __name__ == "__main__":
    root = jax.random.PRNGKey(0)
    pkey, xkey = jax.random.split(root)
    params = make_params(pkey)
    # Input shape implied by classifier(576 = 64*3*3): [N, 3, 32, 32]
    x = jax.random.normal(xkey, (2, 3, 32, 32), jnp.float32)

    packed = pack_params(params)

    out = jax.block_until_ready(simple_model_forward(packed, x))
    assert out.shape == (2, 10), out.shape

    ref = jax.block_until_ready(reference_forward(params, x))
    np.testing.assert_allclose(np.asarray(out), np.asarray(ref),
                               atol=5e-4, rtol=5e-4)

    print("KERNEL_OK")
</pallas_src>

<mosaic_0001>
module attributes {stable_mosaic.version = 11 : i64} {
  func.func @kernel(%arg0: memref<450x27xf32, #tpu.memory_space<vmem>>, %arg1: memref<288x112xf32, #tpu.memory_space<vmem>>, %arg2: memref<576x10xf32, #tpu.memory_space<vmem>>, %arg3: memref<1x128xf32, #tpu.memory_space<vmem>>, %arg4: memref<2x10xf32, #tpu.memory_space<vmem>>, %arg5: memref<7x7x2x144xf32, #tpu.memory_space<vmem>>, %arg6: memref<3x3x2x288xf32, #tpu.memory_space<vmem>>, %arg7: memref<2x576xf32, #tpu.memory_space<vmem>>) attributes {dimension_semantics = [], scalar_prefetch = 0 : i64, scratch_operands = 3 : i64, tpu.core_type = #tpu.core_type<tc>} {
    %c0 = arith.constant 0 : index
    %c0_0 = arith.constant 0 : index
    %0 = vector.load %arg3[%c0, %c0_0] : memref<1x128xf32, #tpu.memory_space<vmem>>, vector<1x128xf32>
    %1 = vector.extract_strided_slice %0 {offsets = [0, 0], sizes = [1, 16], strides = [1, 1]} : vector<1x128xf32> to vector<1x16xf32>
    %2 = vector.extract_strided_slice %0 {offsets = [0, 16], sizes = [1, 32], strides = [1, 1]} : vector<1x128xf32> to vector<1x32xf32>
    %3 = vector.extract_strided_slice %0 {offsets = [0, 48], sizes = [1, 64], strides = [1, 1]} : vector<1x128xf32> to vector<1x64xf32>
    %4 = vector.extract_strided_slice %0 {offsets = [0, 112], sizes = [1, 10], strides = [1, 1]} : vector<1x128xf32> to vector<1x10xf32>
    %c0_1 = arith.constant 0 : index
    %c0_2 = arith.constant 0 : index
    %5 = vector.load %arg1[%c0_1, %c0_2] : memref<288x112xf32, #tpu.memory_space<vmem>>, vector<27x16xf32>
    %c0_3 = arith.constant 0 : index
    %c16 = arith.constant 16 : index
    %6 = vector.load %arg1[%c0_3, %c16] : memref<288x112xf32, #tpu.memory_space<vmem>>, vector<144x32xf32>
    %c0_4 = arith.constant 0 : index
    %c48 = arith.constant 48 : index
    %7 = vector.load %arg1[%c0_4, %c48] : memref<288x112xf32, #tpu.memory_space<vmem>>, vector<288x64xf32>
    %c0_5 = arith.constant 0 : index
    %c0_6 = arith.constant 0 : index
    %8 = vector.load %arg0[%c0_5, %c0_6] : memref<450x27xf32, #tpu.memory_space<vmem>>, vector<450x27xf32>
    %cst = arith.constant dense<0.000000e+00> : vector<450x16xf32>
    %9 = tpu.matmul %8, %5, %cst {dimension_numbers = #tpu.dot_dimension_numbers<[1], [0], [0], [1], [0, 0, 1, 1], [], []>} : vector<450x27xf32>, vector<27x16xf32>, vector<450x16xf32> -> vector<450x16xf32>
    %10 = vector.broadcast %1 : vector<1x16xf32> to vector<450x16xf32>
    %11 = arith.addf %9, %10 : vector<450x16xf32>
    %cst_7 = arith.constant 0.000000e+00 : f32
    %12 = vector.broadcast %cst_7 : f32 to vector<450x16xf32>
    %13 = arith.maximumf %11, %12 : vector<450x16xf32>
    %14 = vector.shape_cast %13 : vector<450x16xf32> to vector<15x15x2x16xf32>
    %15 = vector.extract_strided_slice %14 {offsets = [0, 0, 0, 0], sizes = [14, 15, 2, 16], strides = [1, 1, 1, 1]} : vector<15x15x2x16xf32> to vector<14x15x2x16xf32>
    %16 = vector.shape_cast %15 : vector<14x15x2x16xf32> to vector<7x2x15x2x16xf32>
    %17 = vector.extract_strided_slice %16 {offsets = [0, 0, 0, 0, 0], sizes = [7, 1, 15, 2, 16], strides = [1, 1, 1, 1, 1]} : vector<7x2x15x2x16xf32> to vector<7x1x15x2x16xf32>
    %18 = vector.shape_cast %17 : vector<7x1x15x2x16xf32> to vector<7x15x2x16xf32>
    %19 = vector.extract_strided_slice %18 {offsets = [0, 0, 0, 0], sizes = [7, 14, 2, 16], strides = [1, 1, 1, 1]} : vector<7x15x2x16xf32> to vector<7x14x2x16xf32>
    %20 = vector.shape_cast %19 : vector<7x14x2x16xf32> to vector<7x7x2x2x16xf32>
    %21 = vector.extract_strided_slice %20 {offsets = [0, 0, 0, 0, 0], sizes = [7, 7, 1, 2, 16], strides = [1, 1, 1, 1, 1]} : vector<7x7x2x2x16xf32> to vector<7x7x1x2x16xf32>
    %22 = vector.shape_cast %21 : vector<7x7x1x2x16xf32> to vector<7x7x2x16xf32>
    %c0_8 = arith.constant 0 : index
    %c0_9 = arith.constant 0 : index
    %c0_10 = arith.constant 0 : index
    %c0_11 = arith.constant 0 : index
    %23 = vector.load %arg5[%c0_8, %c0_9, %c0_10, %c0_11] : memref<7x7x2x144xf32, #tpu.memory_space<vmem>>, vector<7x7x2x16xf32>
    tpu.vector_store %arg5[%c0_8, %c0_9, %c0_10, %c0_11], %22 {strides = array<i32>} : memref<7x7x2x144xf32, #tpu.memory_space<vmem>>, vector<7x7x2x16xf32>,
    %24 = vector.extract_strided_slice %18 {offsets = [0, 1, 0, 0], sizes = [7, 14, 2, 16], strides = [1, 1, 1, 1]} : vector<7x15x2x16xf32> to vector<7x14x2x16xf32>
    %25 = vector.shape_cast %24 : vector<7x14x2x16xf32> to vector<7x7x2x2x16xf32>
    %26 = vector.extract_strided_slice %25 {offsets = [0, 0, 0, 0, 0], sizes = [7, 7, 1, 2, 16], strides = [1, 1, 1, 1, 1]} : vector<7x7x2x2x16xf32> to vector<7x7x1x2x16xf32>
    %27 = vector.shape_cast %26 : vector<7x7x1x2x16xf32> to vector<7x7x2x16xf32>
    %c0_12 = arith.constant 0 : index
    %c0_13 = arith.constant 0 : index
    %c0_14 = arith.constant 0 : index
    %c16_15 = arith.constant 16 : index
    %28 = vector.load %arg5[%c0_12, %c0_13, %c0_14, %c16_15] : memref<7x7x2x144xf32, #tpu.memory_space<vmem>>, vector<7x7x2x16xf32>
    tpu.vector_store %arg5[%c0_12, %c0_13, %c0_14, %c16_15], %27 {strides = array<i32>} : memref<7x7x2x144xf32, #tpu.memory_space<vmem>>, vector<7x7x2x16xf32>,
    %29 = vector.extract_strided_slice %18 {offsets = [0, 1, 0, 0], sizes = [7, 14, 2, 16], strides = [1, 1, 1, 1]} : vector<7x15x2x16xf32> to vector<7x14x2x16xf32>
    %30 = vector.shape_cast %29 : vector<7x14x2x16xf32> to vector<7x7x2x2x16xf32>
    %31 = vector.extract_strided_slice %30 {offsets = [0, 0, 1, 0, 0], sizes = [7, 7, 1, 2, 16], strides = [1, 1, 1, 1, 1]} : vector<7x7x2x2x16xf32> to vector<7x7x1x2x16xf32>
    %32 = vector.shape_cast %31 : vector<7x7x1x2x16xf32> to vector<7x7x2x16xf32>
    %c0_16 = arith.constant 0 : index
    %c0_17 = arith.constant 0 : index
    %c0_18 = arith.constant 0 : index
    %c32 = arith.constant 32 : index
    %33 = vector.load %arg5[%c0_16, %c0_17, %c0_18, %c32] : memref<7x7x2x144xf32, #tpu.memory_space<vmem>>, vector<7x7x2x16xf32>
    tpu.vector_store %arg5[%c0_16, %c0_17, %c0_18, %c32], %32 {strides = array<i32>} : memref<7x7x2x144xf32, #tpu.memory_space<vmem>>, vector<7x7x2x16xf32>,
    %34 = vector.extract_strided_slice %14 {offsets = [1, 0, 0, 0], sizes = [14, 15, 2, 16], strides = [1, 1, 1, 1]} : vector<15x15x2x16xf32> to vector<14x15x2x16xf32>
    %35 = vector.shape_cast %34 : vector<14x15x2x16xf32> to vector<7x2x15x2x16xf32>
    %36 = vector.extract_strided_slice %35 {offsets = [0, 0, 0, 0, 0], sizes = [7, 1, 15, 2, 16], strides = [1, 1, 1, 1, 1]} : vector<7x2x15x2x16xf32> to vector<7x1x15x2x16xf32>
    %37 = vector.shape_cast %36 : vector<7x1x15x2x16xf32> to vector<7x15x2x16xf32>
    %38 = vector.extract_strided_slice %37 {offsets = [0, 0, 0, 0], sizes = [7, 14, 2, 16], strides = [1, 1, 1, 1]} : vector<7x15x2x16xf32> to vector<7x14x2x16xf32>
    %39 = vector.shape_cast %38 : vector<7x14x2x16xf32> to vector<7x7x2x2x16xf32>
    %40 = vector.extract_strided_slice %39 {offsets = [0, 0, 0, 0, 0], sizes = [7, 7, 1, 2, 16], strides = [1, 1, 1, 1, 1]} : vector<7x7x2x2x16xf32> to vector<7x7x1x2x16xf32>
    %41 = vector.shape_cast %40 : vector<7x7x1x2x16xf32> to vector<7x7x2x16xf32>
    %c0_19 = arith.constant 0 : index
    %c0_20 = arith.constant 0 : index
    %c0_21 = arith.constant 0 : index
    %c48_22 = arith.constant 48 : index
    %42 = vector.load %arg5[%c0_19, %c0_20, %c0_21, %c48_22] : memref<7x7x2x144xf32, #tpu.memory_space<vmem>>, vector<7x7x2x16xf32>
    tpu.vector_store %arg5[%c0_19, %c0_20, %c0_21, %c48_22], %41 {strides = array<i32>} : memref<7x7x2x144xf32, #tpu.memory_space<vmem>>, vector<7x7x2x16xf32>,
    %43 = vector.extract_strided_slice %37 {offsets = [0, 1, 0, 0], sizes = [7, 14, 2, 16], strides = [1, 1, 1, 1]} : vector<7x15x2x16xf32> to vector<7x14x2x16xf32>
    %44 = vector.shape_cast %43 : vector<7x14x2x16xf32> to vector<7x7x2x2x16xf32>
    %45 = vector.extract_strided_slice %44 {offsets = [0, 0, 0, 0, 0], sizes = [7, 7, 1, 2, 16], strides = [1, 1, 1, 1, 1]} : vector<7x7x2x2x16xf32> to vector<7x7x1x2x16xf32>
    %46 = vector.shape_cast %45 : vector<7x7x1x2x16xf32> to vector<7x7x2x16xf32>
    %c0_23 = arith.constant 0 : index
    %c0_24 = arith.constant 0 : index
    %c0_25 = arith.constant 0 : index
    %c64 = arith.constant 64 : index
    %47 = vector.load %arg5[%c0_23, %c0_24, %c0_25, %c64] : memref<7x7x2x144xf32, #tpu.memory_space<vmem>>, vector<7x7x2x16xf32>
    tpu.vector_store %arg5[%c0_23, %c0_24, %c0_25, %c64], %46 {strides = array<i32>} : memref<7x7x2x144xf32, #tpu.memory_space<vmem>>, vector<7x7x2x16xf32>,
    %48 = vector.extract_strided_slice %37 {offsets = [0, 1, 0, 0], sizes = [7, 14, 2, 16], strides = [1, 1, 1, 1]} : vector<7x15x2x16xf32> to vector<7x14x2x16xf32>
    %49 = vector.shape_cast %48 : vector<7x14x2x16xf32> to vector<7x7x2x2x16xf32>
    %50 = vector.extract_strided_slice %49 {offsets = [0, 0, 1, 0, 0], sizes = [7, 7, 1, 2, 16], strides = [1, 1, 1, 1, 1]} : vector<7x7x2x2x16xf32> to vector<7x7x1x2x16xf32>
    %51 = vector.shape_cast %50 : vector<7x7x1x2x16xf32> to vector<7x7x2x16xf32>
    %c0_26 = arith.constant 0 : index
    %c0_27 = arith.constant 0 : index
    %c0_28 = arith.constant 0 : index
    %c80 = arith.constant 80 : index
    %52 = vector.load %arg5[%c0_26, %c0_27, %c0_28, %c80] : memref<7x7x2x144xf32, #tpu.memory_space<vmem>>, vector<7x7x2x16xf32>
    tpu.vector_store %arg5[%c0_26, %c0_27, %c0_28, %c80], %51 {strides = array<i32>} : memref<7x7x2x144xf32, #tpu.memory_space<vmem>>, vector<7x7x2x16xf32>,
    %53 = vector.extract_strided_slice %14 {offsets = [1, 0, 0, 0], sizes = [14, 15, 2, 16], strides = [1, 1, 1, 1]} : vector<15x15x2x16xf32> to vector<14x15x2x16xf32>
    %54 = vector.shape_cast %53 : vector<14x15x2x16xf32> to vector<7x2x15x2x16xf32>
    %55 = vector.extract_strided_slice %54 {offsets = [0, 1, 0, 0, 0], sizes = [7, 1, 15, 2, 16], strides = [1, 1, 1, 1, 1]} : vector<7x2x15x2x16xf32> to vector<7x1x15x2x16xf32>
    %56 = vector.shape_cast %55 : vector<7x1x15x2x16xf32> to vector<7x15x2x16xf32>
    %57 = vector.extract_strided_slice %56 {offsets = [0, 0, 0, 0], sizes = [7, 14, 2, 16], strides = [1, 1, 1, 1]} : vector<7x15x2x16xf32> to vector<7x14x2x16xf32>
    %58 = vector.shape_cast %57 : vector<7x14x2x16xf32> to vector<7x7x2x2x16xf32>
    %59 = vector.extract_strided_slice %58 {offsets = [0, 0, 0, 0, 0], sizes = [7, 7, 1, 2, 16], strides = [1, 1, 1, 1, 1]} : vector<7x7x2x2x16xf32> to vector<7x7x1x2x16xf32>
    %60 = vector.shape_cast %59 : vector<7x7x1x2x16xf32> to vector<7x7x2x16xf32>
    %c0_29 = arith.constant 0 : index
    %c0_30 = arith.constant 0 : index
    %c0_31 = arith.constant 0 : index
    %c96 = arith.constant 96 : index
    %61 = vector.load %arg5[%c0_29, %c0_30, %c0_31, %c96] : memref<7x7x2x144xf32, #tpu.memory_space<vmem>>, vector<7x7x2x16xf32>
    tpu.vector_store %arg5[%c0_29, %c0_30, %c0_31, %c96], %60 {strides = array<i32>} : memref<7x7x2x144xf32, #tpu.memory_space<vmem>>, vector<7x7x2x16xf32>,
    %62 = vector.extract_strided_slice %56 {offsets = [0, 1, 0, 0], sizes = [7, 14, 2, 16], strides = [1, 1, 1, 1]} : vector<7x15x2x16xf32> to vector<7x14x2x16xf32>
    %63 = vector.shape_cast %62 : vector<7x14x2x16xf32> to vector<7x7x2x2x16xf32>
    %64 = vector.extract_strided_slice %63 {offsets = [0, 0, 0, 0, 0], sizes = [7, 7, 1, 2, 16], strides = [1, 1, 1, 1, 1]} : vector<7x7x2x2x16xf32> to vector<7x7x1x2x16xf32>
    %65 = vector.shape_cast %64 : vector<7x7x1x2x16xf32> to vector<7x7x2x16xf32>
    %c0_32 = arith.constant 0 : index
    %c0_33 = arith.constant 0 : index
    %c0_34 = arith.constant 0 : index
    %c112 = arith.constant 112 : index
    %66 = vector.load %arg5[%c0_32, %c0_33, %c0_34, %c112] : memref<7x7x2x144xf32, #tpu.memory_space<vmem>>, vector<7x7x2x16xf32>
    tpu.vector_store %arg5[%c0_32, %c0_33, %c0_34, %c112], %65 {strides = array<i32>} : memref<7x7x2x144xf32, #tpu.memory_space<vmem>>, vector<7x7x2x16xf32>,
    %67 = vector.extract_strided_slice %56 {offsets = [0, 1, 0, 0], sizes = [7, 14, 2, 16], strides = [1, 1, 1, 1]} : vector<7x15x2x16xf32> to vector<7x14x2x16xf32>
    %68 = vector.shape_cast %67 : vector<7x14x2x16xf32> to vector<7x7x2x2x16xf32>
    %69 = vector.extract_strided_slice %68 {offsets = [0, 0, 1, 0, 0], sizes = [7, 7, 1, 2, 16], strides = [1, 1, 1, 1, 1]} : vector<7x7x2x2x16xf32> to vector<7x7x1x2x16xf32>
    %70 = vector.shape_cast %69 : vector<7x7x1x2x16xf32> to vector<7x7x2x16xf32>
    %c0_35 = arith.constant 0 : index
    %c0_36 = arith.constant 0 : index
    %c0_37 = arith.constant 0 : index
    %c128 = arith.constant 128 : index
    %71 = vector.load %arg5[%c0_35, %c0_36, %c0_37, %c128] : memref<7x7x2x144xf32, #tpu.memory_space<vmem>>, vector<7x7x2x16xf32>
    tpu.vector_store %arg5[%c0_35, %c0_36, %c0_37, %c128], %70 {strides = array<i32>} : memref<7x7x2x144xf32, #tpu.memory_space<vmem>>, vector<7x7x2x16xf32>,
    %c0_38 = arith.constant 0 : index
    %c0_39 = arith.constant 0 : index
    %c0_40 = arith.constant 0 : index
    %c0_41 = arith.constant 0 : index
    %72 = vector.load %arg5[%c0_38, %c0_39, %c0_40, %c0_41] : memref<7x7x2x144xf32, #tpu.memory_space<vmem>>, vector<7x7x2x144xf32>
    %73 = vector.shape_cast %72 : vector<7x7x2x144xf32> to vector<98x144xf32>
    %cst_42 = arith.constant dense<0.000000e+00> : vector<98x32xf32>
    %74 = tpu.matmul %73, %6, %cst_42 {dimension_numbers = #tpu.dot_dimension_numbers<[1], [0], [0], [1], [0, 0, 1, 1], [], []>} : vector<98x144xf32>, vector<144x32xf32>, vector<98x32xf32> -> vector<98x32xf32>
    %75 = vector.broadcast %2 : vector<1x32xf32> to vector<98x32xf32>
    %76 = arith.addf %74, %75 : vector<98x32xf32>
    %cst_43 = arith.constant 0.000000e+00 : f32
    %77 = vector.broadcast %cst_43 : f32 to vector<98x32xf32>
    %78 = arith.maximumf %76, %77 : vector<98x32xf32>
    %79 = vector.shape_cast %78 : vector<98x32xf32> to vector<7x7x2x32xf32>
    %80 = vector.extract_strided_slice %79 {offsets = [0, 0, 0, 0], sizes = [6, 7, 2, 32], strides = [1, 1, 1, 1]} : vector<7x7x2x32xf32> to vector<6x7x2x32xf32>
    %81 = vector.shape_cast %80 : vector<6x7x2x32xf32> to vector<3x2x7x2x32xf32>
    %82 = vector.extract_strided_slice %81 {offsets = [0, 0, 0, 0, 0], sizes = [3, 1, 7, 2, 32], strides = [1, 1, 1, 1, 1]} : vector<3x2x7x2x32xf32> to vector<3x1x7x2x32xf32>
    %83 = vector.shape_cast %82 : vector<3x1x7x2x32xf32> to vector<3x7x2x32xf32>
    %84 = vector.extract_strided_slice %83 {offsets = [0, 0, 0, 0], sizes = [3, 6, 2, 32], strides = [1, 1, 1, 1]} : vector<3x7x2x32xf32> to vector<3x6x2x32xf32>
    %85 = vector.shape_cast %84 : vector<3x6x2x32xf32> to vector<3x3x2x2x32xf32>
    %86 = vector.extract_strided_slice %85 {offsets = [0, 0, 0, 0, 0], sizes = [3, 3, 1, 2, 32], strides = [1, 1, 1, 1, 1]} : vector<3x3x2x2x32xf32> to vector<3x3x1x2x32xf32>
    %87 = vector.shape_cast %86 : vector<3x3x1x2x32xf32> to vector<3x3x2x32xf32>
    %c0_44 = arith.constant 0 : index
    %c0_45 = arith.constant 0 : index
    %c0_46 = arith.constant 0 : index
    %c0_47 = arith.constant 0 : index
    %88 = vector.load %arg6[%c0_44, %c0_45, %c0_46, %c0_47] : memref<3x3x2x288xf32, #tpu.memory_space<vmem>>, vector<3x3x2x32xf32>
    tpu.vector_store %arg6[%c0_44, %c0_45, %c0_46, %c0_47], %87 {strides = array<i32>} : memref<3x3x2x288xf32, #tpu.memory_space<vmem>>, vector<3x3x2x32xf32>,
    %89 = vector.extract_strided_slice %83 {offsets = [0, 1, 0, 0], sizes = [3, 6, 2, 32], strides = [1, 1, 1, 1]} : vector<3x7x2x32xf32> to vector<3x6x2x32xf32>
    %90 = vector.shape_cast %89 : vector<3x6x2x32xf32> to vector<3x3x2x2x32xf32>
    %91 = vector.extract_strided_slice %90 {offsets = [0, 0, 0, 0, 0], sizes = [3, 3, 1, 2, 32], strides = [1, 1, 1, 1, 1]} : vector<3x3x2x2x32xf32> to vector<3x3x1x2x32xf32>
    %92 = vector.shape_cast %91 : vector<3x3x1x2x32xf32> to vector<3x3x2x32xf32>
    %c0_48 = arith.constant 0 : index
    %c0_49 = arith.constant 0 : index
    %c0_50 = arith.constant 0 : index
    %c32_51 = arith.constant 32 : index
    %93 = vector.load %arg6[%c0_48, %c0_49, %c0_50, %c32_51] : memref<3x3x2x288xf32, #tpu.memory_space<vmem>>, vector<3x3x2x32xf32>
    tpu.vector_store %arg6[%c0_48, %c0_49, %c0_50, %c32_51], %92 {strides = array<i32>} : memref<3x3x2x288xf32, #tpu.memory_space<vmem>>, vector<3x3x2x32xf32>,
    %94 = vector.extract_strided_slice %83 {offsets = [0, 1, 0, 0], sizes = [3, 6, 2, 32], strides = [1, 1, 1, 1]} : vector<3x7x2x32xf32> to vector<3x6x2x32xf32>
    %95 = vector.shape_cast %94 : vector<3x6x2x32xf32> to vector<3x3x2x2x32xf32>
    %96 = vector.extract_strided_slice %95 {offsets = [0, 0, 1, 0, 0], sizes = [3, 3, 1, 2, 32], strides = [1, 1, 1, 1, 1]} : vector<3x3x2x2x32xf32> to vector<3x3x1x2x32xf32>
    %97 = vector.shape_cast %96 : vector<3x3x1x2x32xf32> to vector<3x3x2x32xf32>
    %c0_52 = arith.constant 0 : index
    %c0_53 = arith.constant 0 : index
    %c0_54 = arith.constant 0 : index
    %c64_55 = arith.constant 64 : index
    %98 = vector.load %arg6[%c0_52, %c0_53, %c0_54, %c64_55] : memref<3x3x2x288xf32, #tpu.memory_space<vmem>>, vector<3x3x2x32xf32>
    tpu.vector_store %arg6[%c0_52, %c0_53, %c0_54, %c64_55], %97 {strides = array<i32>} : memref<3x3x2x288xf32, #tpu.memory_space<vmem>>, vector<3x3x2x32xf32>,
    %99 = vector.extract_strided_slice %79 {offsets = [1, 0, 0, 0], sizes = [6, 7, 2, 32], strides = [1, 1, 1, 1]} : vector<7x7x2x32xf32> to vector<6x7x2x32xf32>
    %100 = vector.shape_cast %99 : vector<6x7x2x32xf32> to vector<3x2x7x2x32xf32>
    %101 = vector.extract_strided_slice %100 {offsets = [0, 0, 0, 0, 0], sizes = [3, 1, 7, 2, 32], strides = [1, 1, 1, 1, 1]} : vector<3x2x7x2x32xf32> to vector<3x1x7x2x32xf32>
    %102 = vector.shape_cast %101 : vector<3x1x7x2x32xf32> to vector<3x7x2x32xf32>
    %103 = vector.extract_strided_slice %102 {offsets = [0, 0, 0, 0], sizes = [3, 6, 2, 32], strides = [1, 1, 1, 1]} : vector<3x7x2x32xf32> to vector<3x6x2x32xf32>
    %104 = vector.shape_cast %103 : vector<3x6x2x32xf32> to vector<3x3x2x2x32xf32>
    %105 = vector.extract_strided_slice %104 {offsets = [0, 0, 0, 0, 0], sizes = [3, 3, 1, 2, 32], strides = [1, 1, 1, 1, 1]} : vector<3x3x2x2x32xf32> to vector<3x3x1x2x32xf32>
    %106 = vector.shape_cast %105 : vector<3x3x1x2x32xf32> to vector<3x3x2x32xf32>
    %c0_56 = arith.constant 0 : index
    %c0_57 = arith.constant 0 : index
    %c0_58 = arith.constant 0 : index
    %c96_59 = arith.constant 96 : index
    %107 = vector.load %arg6[%c0_56, %c0_57, %c0_58, %c96_59] : memref<3x3x2x288xf32, #tpu.memory_space<vmem>>, vector<3x3x2x32xf32>
    tpu.vector_store %arg6[%c0_56, %c0_57, %c0_58, %c96_59], %106 {strides = array<i32>} : memref<3x3x2x288xf32, #tpu.memory_space<vmem>>, vector<3x3x2x32xf32>,
    %108 = vector.extract_strided_slice %102 {offsets = [0, 1, 0, 0], sizes = [3, 6, 2, 32], strides = [1, 1, 1, 1]} : vector<3x7x2x32xf32> to vector<3x6x2x32xf32>
    %109 = vector.shape_cast %108 : vector<3x6x2x32xf32> to vector<3x3x2x2x32xf32>
    %110 = vector.extract_strided_slice %109 {offsets = [0, 0, 0, 0, 0], sizes = [3, 3, 1, 2, 32], strides = [1, 1, 1, 1, 1]} : vector<3x3x2x2x32xf32> to vector<3x3x1x2x32xf32>
    %111 = vector.shape_cast %110 : vector<3x3x1x2x32xf32> to vector<3x3x2x32xf32>
    %c0_60 = arith.constant 0 : index
    %c0_61 = arith.constant 0 : index
    %c0_62 = arith.constant 0 : index
    %c128_63 = arith.constant 128 : index
    %112 = vector.load %arg6[%c0_60, %c0_61, %c0_62, %c128_63] : memref<3x3x2x288xf32, #tpu.memory_space<vmem>>, vector<3x3x2x32xf32>
    tpu.vector_store %arg6[%c0_60, %c0_61, %c0_62, %c128_63], %111 {strides = array<i32>} : memref<3x3x2x288xf32, #tpu.memory_space<vmem>>, vector<3x3x2x32xf32>,
    %113 = vector.extract_strided_slice %102 {offsets = [0, 1, 0, 0], sizes = [3, 6, 2, 32], strides = [1, 1, 1, 1]} : vector<3x7x2x32xf32> to vector<3x6x2x32xf32>
    %114 = vector.shape_cast %113 : vector<3x6x2x32xf32> to vector<3x3x2x2x32xf32>
    %115 = vector.extract_strided_slice %114 {offsets = [0, 0, 1, 0, 0], sizes = [3, 3, 1, 2, 32], strides = [1, 1, 1, 1, 1]} : vector<3x3x2x2x32xf32> to vector<3x3x1x2x32xf32>
    %116 = vector.shape_cast %115 : vector<3x3x1x2x32xf32> to vector<3x3x2x32xf32>
    %c0_64 = arith.constant 0 : index
    %c0_65 = arith.constant 0 : index
    %c0_66 = arith.constant 0 : index
    %c160 = arith.constant 160 : index
    %117 = vector.load %arg6[%c0_64, %c0_65, %c0_66, %c160] : memref<3x3x2x288xf32, #tpu.memory_space<vmem>>, vector<3x3x2x32xf32>
    tpu.vector_store %arg6[%c0_64, %c0_65, %c0_66, %c160], %116 {strides = array<i32>} : memref<3x3x2x288xf32, #tpu.memory_space<vmem>>, vector<3x3x2x32xf32>,
    %118 = vector.extract_strided_slice %79 {offsets = [1, 0, 0, 0], sizes = [6, 7, 2, 32], strides = [1, 1, 1, 1]} : vector<7x7x2x32xf32> to vector<6x7x2x32xf32>
    %119 = vector.shape_cast %118 : vector<6x7x2x32xf32> to vector<3x2x7x2x32xf32>
    %120 = vector.extract_strided_slice %119 {offsets = [0, 1, 0, 0, 0], sizes = [3, 1, 7, 2, 32], strides = [1, 1, 1, 1, 1]} : vector<3x2x7x2x32xf32> to vector<3x1x7x2x32xf32>
    %121 = vector.shape_cast %120 : vector<3x1x7x2x32xf32> to vector<3x7x2x32xf32>
    %122 = vector.extract_strided_slice %121 {offsets = [0, 0, 0, 0], sizes = [3, 6, 2, 32], strides = [1, 1, 1, 1]} : vector<3x7x2x32xf32> to vector<3x6x2x32xf32>
    %123 = vector.shape_cast %122 : vector<3x6x2x32xf32> to vector<3x3x2x2x32xf32>
    %124 = vector.extract_strided_slice %123 {offsets = [0, 0, 0, 0, 0], sizes = [3, 3, 1, 2, 32], strides = [1, 1, 1, 1, 1]} : vector<3x3x2x2x32xf32> to vector<3x3x1x2x32xf32>
    %125 = vector.shape_cast %124 : vector<3x3x1x2x32xf32> to vector<3x3x2x32xf32>
    %c0_67 = arith.constant 0 : index
    %c0_68 = arith.constant 0 : index
    %c0_69 = arith.constant 0 : index
    %c192 = arith.constant 192 : index
    %126 = vector.load %arg6[%c0_67, %c0_68, %c0_69, %c192] : memref<3x3x2x288xf32, #tpu.memory_space<vmem>>, vector<3x3x2x32xf32>
    tpu.vector_store %arg6[%c0_67, %c0_68, %c0_69, %c192], %125 {strides = array<i32>} : memref<3x3x2x288xf32, #tpu.memory_space<vmem>>, vector<3x3x2x32xf32>,
    %127 = vector.extract_strided_slice %121 {offsets = [0, 1, 0, 0], sizes = [3, 6, 2, 32], strides = [1, 1, 1, 1]} : vector<3x7x2x32xf32> to vector<3x6x2x32xf32>
    %128 = vector.shape_cast %127 : vector<3x6x2x32xf32> to vector<3x3x2x2x32xf32>
    %129 = vector.extract_strided_slice %128 {offsets = [0, 0, 0, 0, 0], sizes = [3, 3, 1, 2, 32], strides = [1, 1, 1, 1, 1]} : vector<3x3x2x2x32xf32> to vector<3x3x1x2x32xf32>
    %130 = vector.shape_cast %129 : vector<3x3x1x2x32xf32> to vector<3x3x2x32xf32>
    %c0_70 = arith.constant 0 : index
    %c0_71 = arith.constant 0 : index
    %c0_72 = arith.constant 0 : index
    %c224 = arith.constant 224 : index
    %131 = vector.load %arg6[%c0_70, %c0_71, %c0_72, %c224] : memref<3x3x2x288xf32, #tpu.memory_space<vmem>>, vector<3x3x2x32xf32>
    tpu.vector_store %arg6[%c0_70, %c0_71, %c0_72, %c224], %130 {strides = array<i32>} : memref<3x3x2x288xf32, #tpu.memory_space<vmem>>, vector<3x3x2x32xf32>,
    %132 = vector.extract_strided_slice %121 {offsets = [0, 1, 0, 0], sizes = [3, 6, 2, 32], strides = [1, 1, 1, 1]} : vector<3x7x2x32xf32> to vector<3x6x2x32xf32>
    %133 = vector.shape_cast %132 : vector<3x6x2x32xf32> to vector<3x3x2x2x32xf32>
    %134 = vector.extract_strided_slice %133 {offsets = [0, 0, 1, 0, 0], sizes = [3, 3, 1, 2, 32], strides = [1, 1, 1, 1, 1]} : vector<3x3x2x2x32xf32> to vector<3x3x1x2x32xf32>
    %135 = vector.shape_cast %134 : vector<3x3x1x2x32xf32> to vector<3x3x2x32xf32>
    %c0_73 = arith.constant 0 : index
    %c0_74 = arith.constant 0 : index
    %c0_75 = arith.constant 0 : index
    %c256 = arith.constant 256 : index
    %136 = vector.load %arg6[%c0_73, %c0_74, %c0_75, %c256] : memref<3x3x2x288xf32, #tpu.memory_space<vmem>>, vector<3x3x2x32xf32>
    tpu.vector_store %arg6[%c0_73, %c0_74, %c0_75, %c256], %135 {strides = array<i32>} : memref<3x3x2x288xf32, #tpu.memory_space<vmem>>, vector<3x3x2x32xf32>,
    %c0_76 = arith.constant 0 : index
    %c0_77 = arith.constant 0 : index
    %c0_78 = arith.constant 0 : index
    %c0_79 = arith.constant 0 : index
    %137 = vector.load %arg6[%c0_76, %c0_77, %c0_78, %c0_79] : memref<3x3x2x288xf32, #tpu.memory_space<vmem>>, vector<3x3x2x288xf32>
    %138 = vector.shape_cast %137 : vector<3x3x2x288xf32> to vector<18x288xf32>
    %cst_80 = arith.constant dense<0.000000e+00> : vector<18x64xf32>
    %139 = tpu.matmul %138, %7, %cst_80 {dimension_numbers = #tpu.dot_dimension_numbers<[1], [0], [0], [1], [0, 0, 1, 1], [], []>} : vector<18x288xf32>, vector<288x64xf32>, vector<18x64xf32> -> vector<18x64xf32>
    %140 = vector.broadcast %3 : vector<1x64xf32> to vector<18x64xf32>
    %141 = arith.addf %139, %140 : vector<18x64xf32>
    %cst_81 = arith.constant 0.000000e+00 : f32
    %142 = vector.broadcast %cst_81 : f32 to vector<18x64xf32>
    %143 = arith.maximumf %141, %142 : vector<18x64xf32>
    %144 = vector.extract_strided_slice %143 {offsets = [0, 0], sizes = [2, 64], strides = [1, 1]} : vector<18x64xf32> to vector<2x64xf32>
    %c0_82 = arith.constant 0 : index
    %c0_83 = arith.constant 0 : index
    %145 = vector.load %arg7[%c0_82, %c0_83] : memref<2x576xf32, #tpu.memory_space<vmem>>, vector<2x64xf32>
    tpu.vector_store %arg7[%c0_82, %c0_83], %144 {strides = array<i32>} : memref<2x576xf32, #tpu.memory_space<vmem>>, vector<2x64xf32>,
    %146 = vector.extract_strided_slice %143 {offsets = [2, 0], sizes = [2, 64], strides = [1, 1]} : vector<18x64xf32> to vector<2x64xf32>
    %c0_84 = arith.constant 0 : index
    %c64_85 = arith.constant 64 : index
    %147 = vector.load %arg7[%c0_84, %c64_85] : memref<2x576xf32, #tpu.memory_space<vmem>>, vector<2x64xf32>
    tpu.vector_store %arg7[%c0_84, %c64_85], %146 {strides = array<i32>} : memref<2x576xf32, #tpu.memory_space<vmem>>, vector<2x64xf32>,
    %148 = vector.extract_strided_slice %143 {offsets = [4, 0], sizes = [2, 64], strides = [1, 1]} : vector<18x64xf32> to vector<2x64xf32>
    %c0_86 = arith.constant 0 : index
    %c128_87 = arith.constant 128 : index
    %149 = vector.load %arg7[%c0_86, %c128_87] : memref<2x576xf32, #tpu.memory_space<vmem>>, vector<2x64xf32>
    tpu.vector_store %arg7[%c0_86, %c128_87], %148 {strides = array<i32>} : memref<2x576xf32, #tpu.memory_space<vmem>>, vector<2x64xf32>,
    %150 = vector.extract_strided_slice %143 {offsets = [6, 0], sizes = [2, 64], strides = [1, 1]} : vector<18x64xf32> to vector<2x64xf32>
    %c0_88 = arith.constant 0 : index
    %c192_89 = arith.constant 192 : index
    %151 = vector.load %arg7[%c0_88, %c192_89] : memref<2x576xf32, #tpu.memory_space<vmem>>, vector<2x64xf32>
    tpu.vector_store %arg7[%c0_88, %c192_89], %150 {strides = array<i32>} : memref<2x576xf32, #tpu.memory_space<vmem>>, vector<2x64xf32>,
    %152 = vector.extract_strided_slice %143 {offsets = [8, 0], sizes = [2, 64], strides = [1, 1]} : vector<18x64xf32> to vector<2x64xf32>
    %c0_90 = arith.constant 0 : index
    %c256_91 = arith.constant 256 : index
    %153 = vector.load %arg7[%c0_90, %c256_91] : memref<2x576xf32, #tpu.memory_space<vmem>>, vector<2x64xf32>
    tpu.vector_store %arg7[%c0_90, %c256_91], %152 {strides = array<i32>} : memref<2x576xf32, #tpu.memory_space<vmem>>, vector<2x64xf32>,
    %154 = vector.extract_strided_slice %143 {offsets = [10, 0], sizes = [2, 64], strides = [1, 1]} : vector<18x64xf32> to vector<2x64xf32>
    %c0_92 = arith.constant 0 : index
    %c320 = arith.constant 320 : index
    %155 = vector.load %arg7[%c0_92, %c320] : memref<2x576xf32, #tpu.memory_space<vmem>>, vector<2x64xf32>
    tpu.vector_store %arg7[%c0_92, %c320], %154 {strides = array<i32>} : memref<2x576xf32, #tpu.memory_space<vmem>>, vector<2x64xf32>,
    %156 = vector.extract_strided_slice %143 {offsets = [12, 0], sizes = [2, 64], strides = [1, 1]} : vector<18x64xf32> to vector<2x64xf32>
    %c0_93 = arith.constant 0 : index
    %c384 = arith.constant 384 : index
    %157 = vector.load %arg7[%c0_93, %c384] : memref<2x576xf32, #tpu.memory_space<vmem>>, vector<2x64xf32>
    tpu.vector_store %arg7[%c0_93, %c384], %156 {strides = array<i32>} : memref<2x576xf32, #tpu.memory_space<vmem>>, vector<2x64xf32>,
    %158 = vector.extract_strided_slice %143 {offsets = [14, 0], sizes = [2, 64], strides = [1, 1]} : vector<18x64xf32> to vector<2x64xf32>
    %c0_94 = arith.constant 0 : index
    %c448 = arith.constant 448 : index
    %159 = vector.load %arg7[%c0_94, %c448] : memref<2x576xf32, #tpu.memory_space<vmem>>, vector<2x64xf32>
    tpu.vector_store %arg7[%c0_94, %c448], %158 {strides = array<i32>} : memref<2x576xf32, #tpu.memory_space<vmem>>, vector<2x64xf32>,
    %160 = vector.extract_strided_slice %143 {offsets = [16, 0], sizes = [2, 64], strides = [1, 1]} : vector<18x64xf32> to vector<2x64xf32>
    %c0_95 = arith.constant 0 : index
    %c512 = arith.constant 512 : index
    %161 = vector.load %arg7[%c0_95, %c512] : memref<2x576xf32, #tpu.memory_space<vmem>>, vector<2x64xf32>
    tpu.vector_store %arg7[%c0_95, %c512], %160 {strides = array<i32>} : memref<2x576xf32, #tpu.memory_space<vmem>>, vector<2x64xf32>,
    %c0_96 = arith.constant 0 : index
    %c0_97 = arith.constant 0 : index
    %162 = vector.load %arg7[%c0_96, %c0_97] : memref<2x576xf32, #tpu.memory_space<vmem>>, vector<2x576xf32>
    %c0_98 = arith.constant 0 : index
    %c0_99 = arith.constant 0 : index
    %163 = vector.load %arg2[%c0_98, %c0_99] : memref<576x10xf32, #tpu.memory_space<vmem>>, vector<576x10xf32>
    %cst_100 = arith.constant dense<0.000000e+00> : vector<2x10xf32>
    %164 = tpu.matmul %162, %163, %cst_100 {dimension_numbers = #tpu.dot_dimension_numbers<[1], [0], [0], [1], [0, 0, 1, 1], [], []>} : vector<2x576xf32>, vector<576x10xf32>, vector<2x10xf32> -> vector<2x10xf32>
    %165 = vector.broadcast %4 : vector<1x10xf32> to vector<2x10xf32>
    %166 = arith.addf %164, %165 : vector<2x10xf32>
    %c0_101 = arith.constant 0 : index
    %c0_102 = arith.constant 0 : index
    %167 = vector.load %arg4[%c0_101, %c0_102] : memref<2x10xf32, #tpu.memory_space<vmem>>, vector<2x10xf32>
    tpu.vector_store %arg4[%c0_101, %c0_102], %166 {strides = array<i32>} : memref<2x10xf32, #tpu.memory_space<vmem>>, vector<2x10xf32>,
    return
  }
}

</mosaic_0001>

<bundles_post_ra>
// kernel: simple_model_forward.1
= control target key start
LH: loop header
LB: loop body
LE: loop exit
PB: predicated region body
PF: predicated region fallthrough
CT: control target
= control target key end

     0   :  { %vm291_vm0 = vcmask 1042432   ;;  %v5732_v1 = vmov 0.0   ;;  %vm5733_vm1 = vmmov 0   ;;  %vm119_vm2 = vcmask 220160   ;;  %s5734_s27 = smov 112   ;;  %s8554_s0 = inlined_call_operand.vmem [shape: f32[450,27], index: 0, kind: input, shape index: {}]   ;;  %s8555_s1 = inlined_call_operand.vmem [shape: f32[288,112], index: 1, kind: input, shape index: {}]   ;;  %s8556_s2 = inlined_call_operand.vmem [shape: f32[576,10], index: 2, kind: input, shape index: {}]   ;;  %s8557_s3 = inlined_call_operand.vmem [shape: f32[1,128], index: 3, kind: input, shape index: {}]   ;;  %s8558_s4 = inlined_call_operand.hbm [shape: f32[2,10], index: 4, kind: output, shape index: {}]  }
   0x1   :  { %v22_v0 = vld [vmem:[%s8555_s1 + $0x18] sm:$0x7]  ;;  %5392 = vmatprep.subr.mxu0 %v5732_v1  ;;  %v5775_v2 = vld [vmem:[%s8555_s1 + $0x10] sm:$0xff]  ;;  %5607 = vmatprep.subr.mxu1 %v5732_v1  ;;  %v5784_v3 = vld [vmem:[%s8555_s1 + $0x8] sm:$0xff] }
   0x2   :  { %5393 = vmatpush3.msk.msra.mxu0 %vm291_vm0, %v22_v0  ;;  %5400 = vmatprep.mubr.msk.f32.mxu0 %vm5733_vm1, %v5732_v1  ;;  %v5792_v4 = vld [vmem:[%s8555_s1] sm:$0xff]  ;;  %v35_v6 = vld [vmem:[%s8555_s1 + $0x78] sm:$0xff]  ;;  %v33_v7 = vld [vmem:[%s8555_s1 + $0x68] sm:$0xff] }
   0x3   :  { %5394 = vmatprep.subr.mxu0 %v5732_v1  ;;  %5611 = vmatpush3.msk.msra.mxu1 %vm291_vm0, %v22_v0  ;;  %v56_v5 = vld [vmem:[%s8554_s0] sm:$0xff]  ;;  %v34_v8 = vld [vmem:[%s8555_s1 + $0x70] sm:$0xff]  ;;  %v57_v10 = vld [vmem:[%s8554_s0 + $0x8] sm:$0xff] }
   0x4   :  { %5395 = vmatpush3.msra.mxu0 %v5775_v2  ;;  %5608 = vmatprep.subr.mxu1 %v5732_v1  ;;  %v32_v9 = vld [vmem:[%s8555_s1 + $0x60] sm:$0xff] }
   0x5   :  { %5396 = vmatprep.subr.mxu0 %v5732_v1  ;;  %5612 = vmatpush3.msra.mxu1 %v5775_v2 }
   0x6   :  { %5397 = vmatpush3.msra.mxu0 %v5784_v3  ;;  %5609 = vmatprep.subr.mxu1 %v5732_v1 }
   0x7   :  { %5398 = vmatprep.subr.mxu0 %v5732_v1  ;;  %3641 = vrot.lane.b32.xlu0 %v35_v6, %s5734_s27 }
   0x8   :  { %5399 = vmatpush3.msra.mxu0 %v5792_v4  ;;  %3637 = vrot.lane.b32.xlu1 %v33_v7, %s5734_s27 }
   0x9   :  { %5401 = vmatmul.mubr.msk.f32.vlgmr.msra.gmra.mxu0 %vm119_vm2, %v56_v5  ;;  %5613 = vmatpush3.msra.mxu1 %v5784_v3 }
   0xa   :  { %5403 = vmatprep.mubr.msk.f32.mxu0 %vm5733_vm1, %v5732_v1  ;;  %5610 = vmatprep.subr.mxu1 %v5732_v1 }
   0xb   :  { %3639 = vrot.lane.b32.xlu0 %v34_v8, %s5734_s27  ;;  %5614 = vmatpush3.msra.mxu1 %v5792_v4 }
   0xc   :  { %9 = vsyncpa [#allocation6], 0  ;;  %3635 = vrot.lane.b32.xlu1 %v32_v9, %s5734_s27  ;;  %v31_v11 = vld [vmem:[%s8555_s1 + $0x58] sm:$0xff]  ;;  %5541 = vmatprep.mubr.msk.f32.mxu1 %vm5733_vm1, %v5732_v1  ;;  %v30_v12 = vld [vmem:[%s8555_s1 + $0x50] sm:$0xff]  ;;  %vm1780_vm3 = vcmask 123904   ;;  %s5736_s11 = smov 16  }
   0xd   :  { %5404 = vmatmul.mubr.msk.f32.gmra.mxu0 %vm119_vm2, %v57_v10  ;;  %3695 = vmatprep.subr.mxu1 %v5732_v1  ;;  %v58_v13 = vld [vmem:[%s8554_s0 + $0x10] sm:$0xff]  ;;  %v29_v14 = vld [vmem:[%s8555_s1 + $0x48] sm:$0xff]  ;;  %v28_v15 = vld [vmem:[%s8555_s1 + $0x40] sm:$0xff]  ;;  %s5737_s12 = smov 32   ;;  %s5738_s21 = smov 64   ;;  %vm1977_vm4 = vcmask 255104  }
   0xe   :  { %5406 = vmatprep.mubr.msk.f32.mxu0 %vm5733_vm1, %v5732_v1  ;;  %v59_v16 = vld [vmem:[%s8554_s0 + $0x18] sm:$0xff]  ;;  %v26_v18 = vld [vmem:[%s8555_s1 + $0x30] sm:$0xff]  ;;  %v60_v19 = vld [vmem:[%s8554_s0 + $0x20] sm:$0xff]  ;;  %s5739_s22 = smov 48   ;;  %s5740_s23 = smov 80   ;;  %vm2174_vm5 = vcmask 386304  }
   0xf   :  { %3633 = vrot.lane.b32.xlu0 %v31_v11, %s5734_s27  ;;  %v27_v17 = vld [vmem:[%s8555_s1 + $0x38] sm:$0xff]  ;;  %v25_v20 = vld [vmem:[%s8555_s1 + $0x28] sm:$0xff]  ;;  %v24_v21 = vld [vmem:[%s8555_s1 + $0x20] sm:$0xff]  ;;  %s5741_s5 = smov 96   ;;  %vm2371_vm6 = vcmask 517504   ;;  %vm2568_vm7 = vcmask 648704  }
  0x10   :  { %3631 = vrot.lane.b32.xlu1 %v30_v12, %s5734_s27  ;;  %v61_v22 = vld [vmem:[%s8554_s0 + $0x28] sm:$0xff]  ;;  %v23_v23 = vld [vmem:[%s8555_s1 + $0x18] sm:$0xff]  ;;  %v62_v24 = vld [vmem:[%s8554_s0 + $0x30] sm:$0xff]  ;;  %vm2765_vm8 = vcmask 779904   ;;  %vm2962_vm9 = vcmask 911104   ;;  %vm3159_vm10 = vcmask 1042304  }
  0x11   :  { %5407 = vmatmul.mubr.msk.f32.gmra.mxu0 %vm119_vm2, %v58_v13  ;;  %v63_v25 = vld [vmem:[%s8554_s0 + $0x38] sm:$0xff]  ;;  %v64_v26 = vld [vmem:[%s8554_s0 + $0x40] sm:$0xff]  ;;  %v65_v27 = vld [vmem:[%s8554_s0 + $0x48] sm:$0xff]  ;;  %vm3668_vm11 = vcmask 130048   ;;  %vm4085_vm12 = vcmask 254976   ;;  %vm4122_vm13 = vcmask 517376  }
  0x12   :  { %5409 = vmatprep.mubr.msk.f32.mxu0 %vm5733_vm1, %v5732_v1  ;;  %v66_v28 = vld [vmem:[%s8554_s0 + $0x50] sm:$0xff]  ;;  %v67_v29 = vld [vmem:[%s8554_s0 + $0x58] sm:$0xff]  ;;  %v68_v30 = vld [vmem:[%s8554_s0 + $0x60] sm:$0xff]  ;;  %vm4159_vm14 = vcmask 779776   ;;  %vm4196_vm15 = vcmask 1042176   ;;  %vm4559_vm0 = vcmask 261120  }
  0x13   :  { %3629 = vrot.lane.b32.xlu0 %v29_v14, %s5734_s27  ;;  %v69_v31 = vld [vmem:[%s8554_s0 + $0x68] sm:$0xff]  ;;  %v70_v32 = vld [vmem:[%s8554_s0 + $0x70] sm:$0xff]  ;;  %v71_v33 = vld [vmem:[%s8554_s0 + $0x78] sm:$0xff]  ;;  %s5742_s30 = smov [#allocation5]  }
  0x14   :  { %3627 = vrot.lane.b32.xlu1 %v28_v15, %s5734_s27  ;;  %v72_v34 = vld [vmem:[%s8554_s0 + $0x80] sm:$0xff]  ;;  %v73_v35 = vld [vmem:[%s8554_s0 + $0x88] sm:$0xff]  ;;  %v74_v37 = vld [vmem:[%s8554_s0 + $0x90] sm:$0xff]  ;;  %s5118_s6 = sshll.u32 %s5742_s30, 4  ;;  %s5119_s6 = int_to_ptr.vmem [resolvable:$true] %s5118_s6 }
  0x15   :  { %5410 = vmatmul.mubr.msk.f32.gmra.mxu0 %vm119_vm2, %v59_v16  ;;  %v37_v36 = vld [vmem:[%s8555_s1 + $0x88] sm:$0xff]  ;;  %v75_v38 = vld [vmem:[%s8554_s0 + $0x98] sm:$0xff]  ;;  %v76_v39 = vld [vmem:[%s8554_s0 + $0xa0] sm:$0xff]  ;;  %p5715_p1 = scmp.lt.s32.totalorder %s5119_s6, %s5119_s6 }
  0x16   :  { %5412 = vmatprep.mubr.msk.f32.mxu0 %vm5733_vm1, %v5732_v1  ;;  %v77_v40 = vld [vmem:[%s8554_s0 + $0xa8] sm:$0xff]  ;;  %v78_v41 = vld [vmem:[%s8554_s0 + $0xb0] sm:$0xff]  ;;  %v79_v42 = vld [vmem:[%s8554_s0 + $0xb8] sm:$0xff] }
  0x17   :  { %3625 = vrot.lane.b32.xlu0 %v27_v17, %s5734_s27  ;;  %v80_v44 = vld [vmem:[%s8554_s0 + $0xc0] sm:$0xff]  ;;  %v103_v45 = vld [vmem:[%s8554_s0 + $0x178] sm:$0xff]  ;;  %v81_v48 = vld [vmem:[%s8554_s0 + $0xc8] sm:$0xff] }
  0x18   :  { %3623 = vrot.lane.b32.xlu1 %v26_v18, %s5734_s27  ;;  %5542 = vmatmul.mubr.msk.f32.vlgmr.msra.gmra.mxu1 %vm119_vm2, %v103_v45  ;;  %v82_v51 = vld [vmem:[%s8554_s0 + $0xd0] sm:$0xff]  ;;  %v83_v54 = vld [vmem:[%s8554_s0 + $0xd8] sm:$0xff]  ;;  %v6061_v7 = vld [vmem:[%s8557_s3] ss:$0 sm:$0xff] }
  0x19   :  { %5413 = vmatmul.mubr.msk.f32.gmra.mxu0 %vm119_vm2, %v60_v19  ;;  %5544 = vmatprep.mubr.msk.f32.mxu1 %vm5733_vm1, %v5732_v1 }
  0x1a   :  { %5415 = vmatprep.mubr.msk.f32.mxu0 %vm5733_vm1, %v5732_v1 }
  0x1b   :  { %3621 = vrot.lane.b32.xlu0 %v25_v20, %s5734_s27 }
  0x1c   :  { %3619 = vrot.lane.b32.xlu1 %v24_v21, %s5734_s27 }
  0x1d   :  { %5416 = vmatmul.mubr.msk.f32.gmra.mxu0 %vm119_vm2, %v61_v22 }
  0x1e   :  { %5418 = vmatprep.mubr.msk.f32.mxu0 %vm5733_vm1, %v5732_v1 }
  0x1f   :  { %3617 = vrot.lane.b32.xlu0 %v23_v23, %s5734_s27 }
  0x20   :  { %3615 = vrot.lane.b32.xlu1 %v5775_v2, %s5734_s27  ;;  %v5735_v2 = vmov 1983009808  }
  0x21   :  { %5419 = vmatmul.mubr.msk.f32.gmra.mxu0 %vm119_vm2, %v62_v24 }
  0x22   :  { %5421 = vmatprep.mubr.msk.f32.mxu0 %vm5733_vm1, %v5732_v1 }
  0x23   :  { %3613 = vrot.lane.b32.xlu0 %v5784_v3, %s5734_s27  ;;  %v761_v3 = vunpack.c.l.s4 %v5735_v2 }
  0x24   :  { %3611 = vrot.lane.b32.xlu1 %v5792_v4, %s5734_s27  ;;  %v763_v4 = vlaneseq }
  0x25   :  { %5422 = vmatmul.mubr.msk.f32.gmra.mxu0 %vm119_vm2, %v63_v25  ;;  %v762_v5 = vunpack.c.0.s8 %v761_v3 }
  0x26   :  { %5424 = vmatprep.mubr.msk.f32.mxu0 %vm5733_vm1, %v5732_v1  ;;  %v764_v6 = vshrl.u32 %v763_v4, 7 }
  0x27   :  { %3645 = vrot.lane.b32.xlu0 %v37_v36, %s5734_s27 }
  0x28   :  { %v6064_v10 = vsub.s32 %v762_v5, %v764_v6 }
  0x29   :  { %5425 = vmatmul.mubr.msk.f32.gmra.mxu0 %vm119_vm2, %v64_v26 }
  0x2a   :  { %5427 = vmatprep.mubr.msk.f32.mxu0 %vm5733_vm1, %v5732_v1 }
  0x2d   :  { %5428 = vmatmul.mubr.msk.f32.gmra.mxu0 %vm119_vm2, %v65_v27 }
  0x2e   :  { %5430 = vmatprep.mubr.msk.f32.mxu0 %vm5733_vm1, %v5732_v1 }
  0x31   :  { %5431 = vmatmul.mubr.msk.f32.gmra.mxu0 %vm119_vm2, %v66_v28 }
  0x32   :  { %5433 = vmatprep.mubr.msk.f32.mxu0 %vm5733_vm1, %v5732_v1 }
  0x35   :  { %5434 = vmatmul.mubr.msk.f32.gmra.mxu0 %vm119_vm2, %v67_v29 }
  0x36   :  { %5436 = vmatprep.mubr.msk.f32.mxu0 %vm5733_vm1, %v5732_v1 }
  0x39   :  { %5437 = vmatmul.mubr.msk.f32.gmra.mxu0 %vm119_vm2, %v68_v30  ;;  %v84_v30 = vld [vmem:[%s8554_s0 + $0xe0] sm:$0xff] }
  0x3a   :  { %5439 = vmatprep.mubr.msk.f32.mxu0 %vm5733_vm1, %v5732_v1 }
  0x3d   :  { %5440 = vmatmul.mubr.msk.f32.gmra.mxu0 %vm119_vm2, %v69_v31 }
  0x3e   :  { %5442 = vmatprep.mubr.msk.f32.mxu0 %vm5733_vm1, %v5732_v1 }
  0x41   :  { %5443 = vmatmul.mubr.msk.f32.gmra.mxu0 %vm119_vm2, %v70_v32 }
  0x42   :  { %5445 = vmatprep.mubr.msk.f32.mxu0 %vm5733_vm1, %v5732_v1 }
  0x45   :  { %5446 = vmatmul.mubr.msk.f32.gmra.mxu0 %vm119_vm2, %v71_v33 }
  0x46   :  { %5448 = vmatprep.mubr.msk.f32.mxu0 %vm5733_vm1, %v5732_v1 }
  0x49   :  { %5449 = vmatmul.mubr.msk.f32.gmra.mxu0 %vm119_vm2, %v72_v34 }
  0x4a   :  { %5451 = vmatprep.mubr.msk.f32.mxu0 %vm5733_vm1, %v5732_v1 }
  0x4d   :  { %5452 = vmatmul.mubr.msk.f32.gmra.mxu0 %vm119_vm2, %v73_v35 }
  0x4e   :  { %5454 = vmatprep.mubr.msk.f32.mxu0 %vm5733_vm1, %v5732_v1 }
  0x51   :  { %5455 = vmatmul.mubr.msk.f32.gmra.mxu0 %vm119_vm2, %v74_v37 }
  0x52   :  { %5457 = vmatprep.mubr.msk.f32.mxu0 %vm5733_vm1, %v5732_v1 }
  0x55   :  { %5458 = vmatmul.mubr.msk.f32.gmra.mxu0 %vm119_vm2, %v75_v38 }
  0x56   :  { %5460 = vmatprep.mubr.msk.f32.mxu0 %vm5733_vm1, %v5732_v1 }
  0x59   :  { %5461 = vmatmul.mubr.msk.f32.gmra.mxu0 %vm119_vm2, %v76_v39  ;;  %v85_v39 = vld [vmem:[%s8554_s0 + $0xe8] sm:$0xff] }
  0x5a   :  { %5463 = vmatprep.mubr.msk.f32.mxu0 %vm5733_vm1, %v5732_v1 }
  0x5d   :  { %5464 = vmatmul.mubr.msk.f32.gmra.mxu0 %vm119_vm2, %v77_v40 }
  0x5e   :  { %5466 = vmatprep.mubr.msk.f32.mxu0 %vm5733_vm1, %v5732_v1 }
  0x61   :  { %5467 = vmatmul.mubr.msk.f32.gmra.mxu0 %vm119_vm2, %v78_v41 }
  0x62   :  { %5469 = vmatprep.mubr.msk.f32.mxu0 %vm5733_vm1, %v5732_v1 }
  0x65   :  { %5470 = vmatmul.mubr.msk.f32.gmra.mxu0 %vm119_vm2, %v79_v42 }
  0x66   :  { %5472 = vmatprep.mubr.msk.f32.mxu0 %vm5733_vm1, %v5732_v1 }
  0x69   :  { %5473 = vmatmul.mubr.msk.f32.gmra.mxu0 %vm119_vm2, %v80_v44  ;;  %v86_v44 = vld [vmem:[%s8554_s0 + $0xf0] sm:$0xff] }
  0x6a   :  { %5475 = vmatprep.mubr.msk.f32.mxu0 %vm5733_vm1, %v5732_v1 }
  0x6d   :  { %5476 = vmatmul.mubr.msk.f32.gmra.mxu0 %vm119_vm2, %v81_v48  ;;  %v87_v48 = vld [vmem:[%s8554_s0 + $0xf8] sm:$0xff] }
  0x6e   :  { %5478 = vmatprep.mubr.msk.f32.mxu0 %vm5733_vm1, %v5732_v1 }
  0x71   :  { %5479 = vmatmul.mubr.msk.f32.gmra.mxu0 %vm119_vm2, %v82_v51 }
  0x72   :  { %5481 = vmatprep.mubr.msk.f32.mxu0 %vm5733_vm1, %v5732_v1 }
  0x75   :  { %5482 = vmatmul.mubr.msk.f32.gmra.mxu0 %vm119_vm2, %v83_v54 }
  0x76   :  { %5484 = vmatprep.mubr.msk.f32.mxu0 %vm5733_vm1, %v5732_v1 }
  0x79   :  { %v3642_v43 = vpop.permute.xlu0 %3641  ;;  %5485 = vmatmul.mubr.msk.f32.gmra.mxu0 %vm119_vm2, %v84_v30 }
  0x7a   :  { %3696 = vmatpush1.msra.mxu1 %v3642_v43  ;;  %v3638_v47 = vpop.permute.xlu1 %3637  ;;  %5487 = vmatprep.mubr.msk.f32.mxu0 %vm5733_vm1, %v5732_v1 }
  0x7b   :  { %3697 = vmatprep.subr.mxu1 %v5732_v1 }
  0x7d   :  { %v3640_v46 = vpop.permute.xlu0 %3639  ;;  %5488 = vmatmul.mubr.msk.f32.gmra.mxu0 %vm119_vm2, %v85_v39 }
  0x7e   :  { %3698 = vmatpush1.msra.mxu1 %v3640_v46  ;;  %v3636_v49 = vpop.permute.xlu1 %3635  ;;  %5490 = vmatprep.mubr.msk.f32.mxu0 %vm5733_vm1, %v5732_v1 }
  0x7f   :  { %3699 = vmatprep.subr.mxu1 %v5732_v1 }
  0x80   :  { %3700 = vmatpush1.msra.mxu1 %v3638_v47 }
  0x81   :  { %3701 = vmatprep.subr.mxu1 %v5732_v1  ;;  %v3634_v50 = vpop.permute.xlu0 %3633  ;;  %5491 = vmatmul.mubr.msk.f32.gmra.mxu0 %vm119_vm2, %v86_v44 }
  0x82   :  { %3702 = vmatpush1.msra.mxu1 %v3636_v49  ;;  %v3632_v52 = vpop.permute.xlu1 %3631  ;;  %5493 = vmatprep.mubr.msk.f32.mxu0 %vm5733_vm1, %v5732_v1 }
  0x83   :  { %3703 = vmatprep.subr.mxu1 %v5732_v1 }
  0x84   :  { %3704 = vmatpush1.msra.mxu1 %v3634_v50 }
  0x85   :  { %v3630_v53 = vpop.permute.xlu0 %3629  ;;  %3705 = vmatprep.subr.mxu1 %v5732_v1  ;;  %5494 = vmatmul.mubr.msk.f32.gmra.mxu0 %vm119_vm2, %v87_v48 }
  0x86   :  { %3706 = vmatpush1.msra.mxu1 %v3632_v52  ;;  %v3628_v55 = vpop.permute.xlu1 %3627  ;;  %5496 = vmatprep.mubr.msk.f32.mxu0 %vm5733_vm1, %v5732_v1 }
  0x87   :  { %3707 = vmatprep.subr.mxu1 %v5732_v1 }
  0x88   :  { %3708 = vmatpush1.msra.mxu1 %v3630_v53 }
  0x89   :  { %v3626_v56 = vpop.permute.xlu0 %3625  ;;  %3709 = vmatprep.subr.mxu1 %v5732_v1 }
  0x8a   :  { %3710 = vmatpush1.msra.mxu1 %v3628_v55  ;;  %v3624_v57 = vpop.permute.xlu1 %3623 }
  0x8b   :  { %3711 = vmatprep.subr.mxu1 %v5732_v1 }
  0x8c   :  { %3712 = vmatpush1.msra.mxu1 %v3626_v56 }
  0x8d   :  { %v3622_v58 = vpop.permute.xlu0 %3621  ;;  %3713 = vmatprep.subr.mxu1 %v5732_v1 }
  0x8e   :  { %3714 = vmatpush1.msra.mxu1 %v3624_v57  ;;  %v3620_v59 = vpop.permute.xlu1 %3619 }
  0x8f   :  { %3715 = vmatprep.subr.mxu1 %v5732_v1 }
  0x90   :  { %3716 = vmatpush1.msra.mxu1 %v3622_v58 }
  0x91   :  { %v3618_v60 = vpop.permute.xlu0 %3617  ;;  %3717 = vmatprep.subr.mxu1 %v5732_v1 }
  0x92   :  { %3718 = vmatpush1.msra.mxu1 %v3620_v59  ;;  %v3616_v61 = vpop.permute.xlu1 %3615 }
  0x93   :  { %3719 = vmatprep.subr.mxu1 %v5732_v1 }
  0x94   :  { %3720 = vmatpush1.msra.mxu1 %v3618_v60 }
  0x95   :  { %v3614_v62 = vpop.permute.xlu0 %3613  ;;  %3721 = vmatprep.subr.mxu1 %v5732_v1 }
  0x96   :  { %3722 = vmatpush1.msra.mxu1 %v3616_v61  ;;  %v3612_v63 = vpop.permute.xlu1 %3611 }
  0x97   :  { %3723 = vmatprep.subr.mxu1 %v5732_v1 }
  0x98   :  { %3724 = vmatpush1.msra.mxu1 %v3614_v62 }
  0x99   :  { %3725 = vmatprep.subr.mxu1 %v5732_v1  ;;  %v3646_v0 = vpop.permute.xlu0 %3645 }
  0x9a   :  { %3726 = vmatpush1.msra.mxu1 %v3612_v63 }
  0x9b   :  { %3755 = vmatprep.subr.mxu1 %v5732_v1 }
  0x9c   :  { %3756 = vmatpush2.msra.mxu1 %v3646_v0 }
  0x9d   :  { %3757 = vmatprep.subr.mxu1 %v5732_v1 }
  0xc9   :  { %v361_v8 = vpop.f32.mrf.mxu0 }
  0xca   :  { %v362_v9 = vadd.f32 %v6061_v7, %v361_v8 }
  0xcb   :  { %v5402_v11 = vpop.f32.mrf.mxu0 }
  0xcc   :  { %v645_v12 = vmax.f32 %v362_v9, 0.0 }
  0xcd   :  { %v366_v13 = vpop.f32.mrf.mxu0 }
  0xce   :  { %v759_v14 = vcombine.high %v645_v12, %v645_v12  ;;  %v766_v15 = vrot.slane %v645_v12, %v6064_v10  ;;  %v367_v16 = vadd.f32 %v6061_v7, %v366_v13 }
  0xcf   :  { %v5405_v17 = vpop.f32.mrf.mxu0 }
  0xd0   :  { %v646_v18 = vmax.f32 %v367_v16, 0.0  ;;  %v774_v19 = vcombine.high %v766_v15, %v766_v15  ;;  %v773_v20 = vrot.slane %v759_v14, %v6064_v10  ;;  %1781 = vst.msk [vmem:[#allocation2] sm:$0x3] %vm1780_vm3, %v766_v15 }
  0xd1   :  { %v371_v21 = vpop.f32.mrf.mxu0 }
  0xd2   :  { %v776_v22 = vcombine.high %v646_v18, %v646_v18  ;;  %v783_v23 = vrot.slane %v646_v18, %v6064_v10  ;;  %1830 = vrot.lane.b32.xlu1 %v774_v19, %s5736_s11  ;;  %2027 = vrot.lane.b32.xlu0 %v773_v20, %s5737_s12  ;;  %v372_v24 = vadd.f32 %v6061_v7, %v371_v21 }
  0xd3   :  { %1782 = vst.msk [vmem:[#allocation2 + $0x4] sm:$0x3] %vm1780_vm3, %v773_v20  ;;  %v5408_v25 = vpop.f32.mrf.mxu0  ;;  %v775_v27 = vcombine.high %v773_v20, %v773_v20 }
  0xd4   :  { %v647_v26 = vmax.f32 %v372_v24, 0.0  ;;  %v790_v28 = vrot.slane %v776_v22, %v6064_v10  ;;  %1783 = vst.msk [vmem:[#allocation2 + $0x8] sm:$0x3] %vm1780_vm3, %v783_v23  ;;  %v791_v35 = vcombine.high %v783_v23, %v783_v23 }
  0xd5   :  { %v376_v29 = vpop.f32.mrf.mxu0 }
  0xd6   :  { %v793_v31 = vcombine.high %v647_v26, %v647_v26  ;;  %v800_v32 = vrot.slane %v647_v26, %v6064_v10  ;;  %2029 = vrot.lane.b32.xlu1 %v783_v23, %s5737_s12  ;;  %1832 = vrot.lane.b32.xlu0 %v775_v27, %s5736_s11  ;;  %v377_v33 = vadd.f32 %v6061_v7, %v376_v29 }
  0xd7   :  { %1784 = vst.msk [vmem:[#allocation2 + $0xc] sm:$0x3] %vm1780_vm3, %v790_v28  ;;  %v5411_v34 = vpop.f32.mrf.mxu0  ;;  %v792_v42 = vcombine.high %v790_v28, %v790_v28 }
  0xd8   :  { %v648_v36 = vmax.f32 %v377_v33, 0.0  ;;  %v807_v37 = vrot.slane %v793_v31, %v6064_v10  ;;  %1785 = vst.msk [vmem:[#allocation2 + $0x10] sm:$0x3] %vm1780_vm3, %v800_v32  ;;  %v808_v46 = vcombine.high %v800_v32, %v800_v32 }
  0xd9   :  { %v381_v38 = vpop.f32.mrf.mxu0 }
  0xda   :  { %1834 = vrot.lane.b32.xlu1 %v791_v35, %s5736_s11  ;;  %2031 = vrot.lane.b32.xlu0 %v790_v28, %s5737_s12  ;;  %v817_v40 = vrot.slane %v648_v36, %v6064_v10  ;;  %1786 = vst.msk [vmem:[#allocation2 + $0x14] sm:$0x3] %vm1780_vm3, %v807_v37  ;;  %v382_v49 = vadd.f32 %v6061_v7, %v381_v38 }
  0xdb   :  { %v5414_v41 = vpop.f32.mrf.mxu0  ;;  %v810_v51 = vcombine.high %v648_v36, %v648_v36  ;;  %v809_v52 = vcombine.high %v807_v37, %v807_v37 }
  0xdc   :  { %1787 = vst.msk [vmem:[#allocation2 + $0x18] sm:$0x3] %vm1780_vm3, %v817_v40  ;;  %v649_v54 = vmax.f32 %v382_v49, 0.0  ;;  %v825_v57 = vcombine.high %v817_v40, %v817_v40 }
  0xdd   :  { %v386_v43 = vpop.f32.mrf.mxu0  ;;  %v824_v58 = vrot.slane %v810_v51, %v6064_v10 }
  0xde   :  { %2033 = vrot.lane.b32.xlu1 %v800_v32, %s5737_s12  ;;  %1836 = vrot.lane.b32.xlu0 %v792_v42, %s5736_s11  ;;  %v834_v61 = vrot.slane %v649_v54, %v6064_v10  ;;  %v827_v2 = vcombine.high %v649_v54, %v649_v54  ;;  %v387_v8 = vadd.f32 %v6061_v7, %v386_v43 }
  0xdf   :  { %v5417_v45 = vpop.f32.mrf.mxu0  ;;  %v826_v3 = vcombine.high %v824_v58, %v824_v58 }
  0xe0   :  { %v842_v14 = vcombine.high %v834_v61, %v834_v61  ;;  %v841_v15 = vrot.slane %v827_v2, %v6064_v10  ;;  %v650_v19 = vmax.f32 %v387_v8, 0.0 }
  0xe1   :  { %v6109_v47 = vpop.f32.mrf.mxu0 }
  0xe2   :  { %1838 = vrot.lane.b32.xlu1 %v808_v46, %s5736_s11  ;;  %2035 = vrot.lane.b32.xlu0 %v807_v37, %s5737_s12  ;;  %v843_v24 = vcombine.high %v841_v15, %v841_v15  ;;  %v851_v28 = vrot.slane %v650_v19, %v6064_v10  ;;  %v844_v33 = vcombine.high %v650_v19, %v650_v19 }
  0xe3   :  { %v5420_v50 = vpop.f32.mrf.mxu0  ;;  %v392_v37 = vadd.f32 %v6061_v7, %v6109_v47 }
  0xe4   :  { %v858_v41 = vrot.slane %v844_v33, %v6064_v10 }
  0xe5   :  { %v396_v53 = vpop.f32.mrf.mxu0  ;;  %v651_v43 = vmax.f32 %v392_v37, 0.0 }
  0xe6   :  { %2037 = vrot.lane.b32.xlu1 %v817_v40, %s5737_s12  ;;  %1840 = vrot.lane.b32.xlu0 %v809_v52, %s5736_s11  ;;  %v397_v55 = vadd.f32 %v6061_v7, %v396_v53  ;;  %v859_v40 = vcombine.high %v851_v28, %v851_v28  ;;  %v860_v45 = vcombine.high %v858_v41, %v858_v41 }
  0xe7   :  { %v5423_v56 = vpop.f32.mrf.mxu0  ;;  %v868_v47 = vrot.slane %v651_v43, %v6064_v10  ;;  %v861_v49 = vcombine.high %v651_v43, %v651_v43 }
  0xe8   :  { %v6124_v59 = vmax.f32 %v397_v55, 0.0 }
  0xe9   :  { %v401_v60 = vpop.f32.mrf.mxu0  ;;  %v876_v53 = vcombine.high %v868_v47, %v868_v47  ;;  %v875_v54 = vrot.slane %v861_v49, %v6064_v10  ;;  %v92_v49 = vld [vmem:[%s8554_s0 + $0x120] sm:$0xff] }
  0xea   :  { %1842 = vrot.lane.b32.xlu1 %v825_v57, %s5736_s11  ;;  %2039 = vrot.lane.b32.xlu0 %v824_v58, %s5737_s12  ;;  %v878_v62 = vcombine.high %v6124_v59, %v6124_v59  ;;  %v402_v63 = vadd.f32 %v6061_v7, %v401_v60 }
  0xeb   :  { %v5426_v0 = vpop.f32.mrf.mxu0 }
  0xec   :  { %v6133_v4 = vrot.slane %v878_v62, %v6064_v10  ;;  %v653_v5 = vmax.f32 %v402_v63, 0.0  ;;  %v877_v62 = vcombine.high %v875_v54, %v875_v54 }
  0xed   :  { %v406_v6 = vpop.f32.mrf.mxu0 }
  0xee   :  { %2421 = vrot.lane.b32.xlu1 %v834_v61, %s5738_s21  ;;  %2224 = vrot.lane.b32.xlu0 %v826_v3, %s5739_s22  ;;  %1788 = vst.msk [vmem:[#allocation2 + $0x1c] sm:$0x3] %vm1780_vm3, %v6133_v4  ;;  %v407_v9 = vadd.f32 %v6061_v7, %v406_v6  ;;  %v895_v11 = vcombine.high %v653_v5, %v653_v5 }
  0xef   :  { %v6142_v12 = vrot.slane %v653_v5, %v6064_v10  ;;  %v5429_v13 = vpop.f32.mrf.mxu0  ;;  %v885_v3 = vrot.slane %v6124_v59, %v6064_v10 }
  0xf0   :  { %v654_v16 = vmax.f32 %v407_v9, 0.0  ;;  %v6146_v17 = vrot.slane %v895_v11, %v6064_v10  ;;  %v88_v13 = vld [vmem:[%s8554_s0 + $0x100] sm:$0xff] }
  0xf1   :  { %3209 = vst.msk [vmem:[#allocation2 + $0x2] sm:$0x3] %vm1780_vm3, %v6142_v12  ;;  %1789 = vst.msk [vmem:[#allocation2 + $0x20] sm:$0x3] %vm1780_vm3, %v6142_v12  ;;  %v411_v18 = vpop.f32.mrf.mxu0  ;;  %5497 = vmatmul.mubr.msk.f32.gmra.mxu0 %vm119_vm2, %v88_v13 }
  0xf2   :  { %2226 = vrot.lane.b32.xlu1 %v842_v14, %s5739_s22  ;;  %2423 = vrot.lane.b32.xlu0 %v841_v15, %s5738_s21  ;;  %v912_v20 = vcombine.high %v654_v16, %v654_v16  ;;  %v6155_v21 = vrot.slane %v654_v16, %v6064_v10  ;;  %v412_v22 = vadd.f32 %v6061_v7, %v411_v18 }
  0xf3   :  { %3210 = vst.msk [vmem:[#allocation2 + $0x6] sm:$0x3] %vm1780_vm3, %v6146_v17  ;;  %1790 = vst.msk [vmem:[#allocation2 + $0x24] sm:$0x3] %vm1780_vm3, %v6146_v17  ;;  %v5432_v23 = vpop.f32.mrf.mxu0  ;;  %v893_v18 = vcombine.high %v885_v3, %v885_v3  ;;  %5499 = vmatprep.mubr.msk.f32.mxu0 %vm5733_vm1, %v5732_v1  ;;  %v911_v43 = vcombine.high %v6146_v17, %v6146_v17 }
  0xf4   :  { %v6163_v25 = vrot.slane %v912_v20, %v6064_v10  ;;  %3211 = vst.msk [vmem:[#allocation2 + $0xa] sm:$0x3] %vm1780_vm3, %v6155_v21  ;;  %1791 = vst.msk [vmem:[#allocation2 + $0x28] sm:$0x3] %vm1780_vm3, %v6155_v21  ;;  %v655_v26 = vmax.f32 %v412_v22, 0.0  ;;  %v105_v20 = vld [vmem:[%s8554_s0 + $0x188] sm:$0xff]  ;;  %v894_v23 = vcombine.high %v6133_v4, %v6133_v4 }
  0xf5   :  { %v416_v27 = vpop.f32.mrf.mxu0  ;;  %v89_v22 = vld [vmem:[%s8554_s0 + $0x108] sm:$0xff] }
  0xf6   :  { %2618 = vrot.lane.b32.xlu1 %v842_v14, %s5740_s23  ;;  %2228 = vrot.lane.b32.xlu0 %v843_v24, %s5739_s22  ;;  %3212 = vst.msk [vmem:[#allocation2 + $0xe] sm:$0x3] %vm1780_vm3, %v6163_v25  ;;  %1792 = vst.msk [vmem:[#allocation2 + $0x2c] sm:$0x3] %vm1780_vm3, %v6163_v25  ;;  %v929_v29 = vcombine.high %v655_v26, %v655_v26  ;;  %v6177_v30 = vrot.slane %v655_v26, %v6064_v10  ;;  %v104_v14 = vld [vmem:[%s8554_s0 + $0x180] sm:$0xff] }
  0xf7   :  { %v417_v31 = vadd.f32 %v6061_v7, %v416_v27  ;;  %v5435_v32 = vpop.f32.mrf.mxu0  ;;  %5545 = vmatmul.mubr.msk.f32.gmra.mxu1 %vm119_vm2, %v104_v14  ;;  %5500 = vmatmul.mubr.msk.f32.gmra.mxu0 %vm119_vm2, %v89_v22 }
  0xf8   :  { %v6181_v34 = vrot.slane %v929_v29, %v6064_v10  ;;  %3213 = vst.msk [vmem:[#allocation2 + $0x12] sm:$0x3] %vm1780_vm3, %v6177_v30  ;;  %1793 = vst.msk [vmem:[#allocation2 + $0x30] sm:$0x3] %vm1780_vm3, %v6177_v30  ;;  %5547 = vmatprep.mubr.msk.f32.mxu1 %vm5733_vm1, %v5732_v1  ;;  %5502 = vmatprep.mubr.msk.f32.mxu0 %vm5733_vm1, %v5732_v1  ;;  %v91_v32 = vld [vmem:[%s8554_s0 + $0x118] sm:$0xff] }
  0xf9   :  { %v6187_v35 = vmax.f32 %v417_v31, 0.0  ;;  %v6189_v36 = vpop.f32.mrf.mxu0  ;;  %v107_v31 = vld [vmem:[%s8554_s0 + $0x198] sm:$0xff] }
  0xfa   :  { %2425 = vrot.lane.b32.xlu1 %v851_v28, %s5738_s21  ;;  %2620 = vrot.lane.b32.xlu0 %v843_v24, %s5740_s23  ;;  %3214 = vst.msk [vmem:[#allocation2 + $0x16] sm:$0x3] %vm1780_vm3, %v6181_v34  ;;  %1794 = vst.msk [vmem:[#allocation2 + $0x34] sm:$0x3] %vm1780_vm3, %v6181_v34  ;;  %v106_v24 = vld [vmem:[%s8554_s0 + $0x190] sm:$0xff] }
  0xfb   :  { %v6201_v38 = vrot.slane %v6187_v35, %v6064_v10  ;;  %v5438_v39 = vpop.f32.mrf.mxu0  ;;  %5548 = vmatmul.mubr.msk.f32.gmra.mxu1 %vm119_vm2, %v105_v20 }
  0xfc   :  { %5550 = vmatprep.mubr.msk.f32.mxu1 %vm5733_vm1, %v5732_v1  ;;  %v910_v39 = vcombine.high %v6142_v12, %v6142_v12 }
  0xfd   :  { %3215 = vst.msk [vmem:[#allocation2 + $0x1a] sm:$0x3] %vm1780_vm3, %v6201_v38  ;;  %v6206_v42 = vpop.f32.mrf.mxu0 }
  0xfe   :  { %2230 = vrot.lane.b32.xlu1 %v859_v40, %s5739_s22  ;;  %2427 = vrot.lane.b32.xlu0 %v858_v41, %s5738_s21  ;;  %v108_v41 = vld [vmem:[%s8554_s0 + $0x1a0] sm:$0xff] }
  0xff   :  { %v5441_v44 = vpop.f32.mrf.mxu0  ;;  %5551 = vmatmul.mubr.msk.f32.gmra.mxu1 %vm119_vm2, %v106_v24 }
 0x100   :  { %5553 = vmatprep.mubr.msk.f32.mxu1 %vm5733_vm1, %v5732_v1  ;;  %v110_v44 = vld [vmem:[%s8554_s0 + $0x1b0] sm:$0xff] }
 0x101   :  { %v6210_v46 = vpop.f32.mrf.mxu0 }
 0x102   :  { %2622 = vrot.lane.b32.xlu1 %v859_v40, %s5740_s23  ;;  %2624 = vrot.lane.b32.xlu0 %v860_v45, %s5740_s23 }
 0x103   :  { %v5444_v48 = vpop.f32.mrf.mxu0  ;;  %5554 = vmatmul.mubr.msk.f32.gmra.mxu1 %vm119_vm2, %v107_v31 }
 0x104   :  { %5556 = vmatprep.mubr.msk.f32.mxu1 %vm5733_vm1, %v5732_v1  ;;  %v927_v48 = vcombine.high %v6155_v21, %v6155_v21 }
 0x105   :  { %v436_v50 = vpop.f32.mrf.mxu0 }
 0x106   :  { %2429 = vrot.lane.b32.xlu1 %v868_v47, %s5738_s21  ;;  %2232 = vrot.lane.b32.xlu0 %v860_v45, %s5739_s22  ;;  %v437_v51 = vadd.f32 %v6061_v7, %v436_v50  ;;  %v112_v50 = vld [vmem:[%s8554_s0 + $0x1c0] sm:$0x3] }
 0x107   :  { %v5447_v52 = vpop.f32.mrf.mxu0  ;;  %5557 = vmatmul.mubr.msk.f32.gmra.mxu1 %vm119_vm2, %v108_v41 }
 0x108   :  { %v660_v55 = vmax.f32 %v437_v51, 0.0  ;;  %5559 = vmatprep.mubr.msk.f32.mxu1 %vm5733_vm1, %v5732_v1  ;;  %v93_v51 = vld [vmem:[%s8554_s0 + $0x128] sm:$0xff] }
 0x109   :  { %v441_v56 = vpop.f32.mrf.mxu0 }
 0x10a   :  { %2234 = vrot.lane.b32.xlu1 %v876_v53, %s5739_s22  ;;  %2431 = vrot.lane.b32.xlu0 %v875_v54, %s5738_s21  ;;  %v1014_v57 = vcombine.high %v660_v55, %v660_v55  ;;  %v6222_v58 = vrot.slane %v660_v55, %v6064_v10  ;;  %v442_v60 = vadd.f32 %v6061_v7, %v441_v56 }
 0x10b   :  { %v5450_v61 = vpop.f32.mrf.mxu0  ;;  %v944_v54 = vcombine.high %v6177_v30, %v6177_v30 }
 0x10c   :  { %v6226_v63 = vrot.slane %v1014_v57, %v6064_v10  ;;  %1795 = vst.msk [vmem:[#allocation2 + $0x38] sm:$0x3] %vm1780_vm3, %v6222_v58  ;;  %v661_v0 = vmax.f32 %v442_v60, 0.0 }
 0x10d   :  { %v446_v2 = vpop.f32.mrf.mxu0 }
 0x10e   :  { %2626 = vrot.lane.b32.xlu1 %v876_v53, %s5740_s23  ;;  %2236 = vrot.lane.b32.xlu0 %v877_v62, %s5739_s22  ;;  %3216 = vst.msk [vmem:[#allocation2 + $0x1e] sm:$0x3] %vm1780_vm3, %v6226_v63  ;;  %1796 = vst.msk [vmem:[#allocation2 + $0x3c] sm:$0x3] %vm1780_vm3, %v6226_v63  ;;  %v447_v5 = vadd.f32 %v6061_v7, %v446_v2  ;;  %v1031_v6 = vcombine.high %v661_v0, %v661_v0  ;;  %v94_v2 = vld [vmem:[%s8554_s0 + $0x130] sm:$0xff] }
 0x10f   :  { %v6240_v8 = vrot.slane %v661_v0, %v6064_v10  ;;  %v5453_v9 = vpop.f32.mrf.mxu0  ;;  %v928_v53 = vcombine.high %v6163_v25, %v6163_v25 }
 0x110   :  { %v662_v11 = vmax.f32 %v447_v5, 0.0  ;;  %v6243_v59 = vrot.slane %v1031_v6, %v6064_v10  ;;  %v946_v5 = vcombine.high %v6187_v35, %v6187_v35 }
 0x111   :  { %3217 = vst.msk [vmem:[#allocation2 + $0x22] sm:$0x3] %vm1780_vm3, %v6240_v8  ;;  %1797 = vst.msk [vmem:[#allocation2 + $0x40] sm:$0x3] %vm1780_vm3, %v6240_v8  ;;  %v451_v26 = vpop.f32.mrf.mxu0 }
 0x112   :  { %2433 = vrot.lane.b32.xlu1 %v885_v3, %s5738_s21  ;;  %2628 = vrot.lane.b32.xlu0 %v877_v62, %s5740_s23  ;;  %v1048_v15 = vcombine.high %v662_v11, %v662_v11  ;;  %v6258_v16 = vrot.slane %v662_v11, %v6064_v10  ;;  %3218 = vst.msk [vmem:[#allocation2 + $0x26] sm:$0x3] %vm1780_vm3, %v6243_v59  ;;  %1798 = vst.msk [vmem:[#allocation2 + $0x44] sm:$0x3] %vm1780_vm3, %v6243_v59 }
 0x113   :  { %v452_v27 = vadd.f32 %v6061_v7, %v451_v26  ;;  %v5456_v28 = vpop.f32.mrf.mxu0  ;;  %v945_v62 = vcombine.high %v6181_v34, %v6181_v34  ;;  %v961_v11 = vcombine.high %v6201_v38, %v6201_v38 }
 0x114   :  { %v6267_v19 = vrot.slane %v1048_v15, %v6064_v10  ;;  %3219 = vst.msk [vmem:[#allocation2 + $0x2a] sm:$0x3] %vm1780_vm3, %v6258_v16  ;;  %1799 = vst.msk [vmem:[#allocation2 + $0x48] sm:$0x3] %vm1780_vm3, %v6258_v16  ;;  %v96_v28 = vld [vmem:[%s8554_s0 + $0x140] sm:$0xff] }
 0x115   :  { %v663_v29 = vmax.f32 %v452_v27, 0.0  ;;  %v6369_v45 = vpop.f32.mrf.mxu0  ;;  %v427_v27 = vadd.f32 %v6061_v7, %v6206_v42 }
 0x116   :  { %2630 = vrot.lane.b32.xlu1 %v893_v18, %s5740_s23  ;;  %2815 = vrot.lane.b32.xlu0 %v6133_v4, %s5741_s5  ;;  %3220 = vst.msk [vmem:[#allocation2 + $0x2e] sm:$0x3] %vm1780_vm3, %v6267_v19  ;;  %1800 = vst.msk [vmem:[#allocation2 + $0x4c] sm:$0x3] %vm1780_vm3, %v6267_v19  ;;  %v90_v4 = vld [vmem:[%s8554_s0 + $0x110] sm:$0xff]  ;;  %v95_v18 = vld [vmem:[%s8554_s0 + $0x138] sm:$0xff] }
 0x117   :  { %5503 = vmatmul.mubr.msk.f32.gmra.mxu0 %vm119_vm2, %v90_v4  ;;  %v1065_v33 = vcombine.high %v663_v29, %v663_v29  ;;  %v6324_v37 = vrot.slane %v663_v29, %v6064_v10  ;;  %v5459_v47 = vpop.f32.mrf.mxu0 }
 0x118   :  { %5505 = vmatprep.mubr.msk.f32.mxu0 %vm5733_vm1, %v5732_v1 }
 0x119   :  { %v6335_v40 = vrot.slane %v1065_v33, %v6064_v10  ;;  %3221 = vst.msk [vmem:[#allocation2 + $0x32] sm:$0x3] %vm1780_vm3, %v6324_v37  ;;  %1801 = vst.msk [vmem:[#allocation2 + $0x50] sm:$0x3] %vm1780_vm3, %v6324_v37 }
 0x11a   :  { %2041 = vrot.lane.b32.xlu1 %v6142_v12, %s5737_s12  ;;  %1844 = vrot.lane.b32.xlu0 %v894_v23, %s5736_s11 }
 0x11b   :  { %5506 = vmatmul.mubr.msk.f32.gmra.mxu0 %vm119_vm2, %v91_v32  ;;  %3222 = vst.msk [vmem:[#allocation2 + $0x36] sm:$0x3] %vm1780_vm3, %v6335_v40 }
 0x11c   :  { %5508 = vmatprep.mubr.msk.f32.mxu0 %vm5733_vm1, %v5732_v1 }
 0x11e   :  { %2817 = vrot.lane.b32.xlu1 %v6142_v12, %s5741_s5  ;;  %3012 = vrot.lane.b32.xlu0 %v894_v23, %s5734_s27  ;;  %v109_v12 = vld [vmem:[%s8554_s0 + $0x1a8] sm:$0xff]  ;;  %v960_v23 = vrot.slane %v946_v5, %v6064_v10 }
 0x11f   :  { %5560 = vmatmul.mubr.msk.f32.gmra.mxu1 %vm119_vm2, %v109_v12  ;;  %5509 = vmatmul.mubr.msk.f32.gmra.mxu0 %vm119_vm2, %v92_v49  ;;  %v658_v12 = vmax.f32 %v427_v27, 0.0 }
 0x120   :  { %5562 = vmatprep.mubr.msk.f32.mxu1 %vm5733_vm1, %v5732_v1  ;;  %5511 = vmatprep.mubr.msk.f32.mxu0 %vm5733_vm1, %v5732_v1  ;;  %v962_v41 = vcombine.high %v960_v23, %v960_v23 }
 0x122   :  { %3014 = vrot.lane.b32.xlu1 %v910_v39, %s5734_s27  ;;  %2819 = vrot.lane.b32.xlu0 %v6146_v17, %s5741_s5 }
 0x123   :  { %5563 = vmatmul.mubr.msk.f32.gmra.mxu1 %vm119_vm2, %v110_v44  ;;  %5512 = vmatmul.mubr.msk.f32.gmra.mxu0 %vm119_vm2, %v93_v51 }
 0x124   :  { %5565 = vmatprep.mubr.msk.f32.mxu1 %vm5733_vm1, %v5732_v1  ;;  %5514 = vmatprep.mubr.msk.f32.mxu0 %vm5733_vm1, %v5732_v1 }
 0x126   :  { %1846 = vrot.lane.b32.xlu1 %v910_v39, %s5736_s11  ;;  %2043 = vrot.lane.b32.xlu0 %v6146_v17, %s5737_s12  ;;  %v111_v17 = vld [vmem:[%s8554_s0 + $0x1b8] sm:$0xff] }
 0x127   :  { %5566 = vmatmul.mubr.msk.f32.gmra.mxu1 %vm119_vm2, %v111_v17  ;;  %5515 = vmatmul.mubr.msk.f32.gmra.mxu0 %vm119_vm2, %v94_v2 }
 0x128   :  { %5568 = vmatprep.mubr.msk.f32.mxu1 %vm5733_vm1, %v5732_v1  ;;  %5517 = vmatprep.mubr.msk.f32.mxu0 %vm5733_vm1, %v5732_v1 }
 0x12a   :  { %2821 = vrot.lane.b32.xlu1 %v6155_v21, %s5741_s5  ;;  %3016 = vrot.lane.b32.xlu0 %v911_v43, %s5734_s27 }
 0x12b   :  { %5569 = vmatmul.mubr.msk.f32.gmra.mxu1 %vm119_vm2, %v112_v50  ;;  %5518 = vmatmul.mubr.msk.f32.gmra.mxu0 %vm119_vm2, %v95_v18 }
 0x12c   :  { %5520 = vmatprep.mubr.msk.f32.mxu0 %vm5733_vm1, %v5732_v1 }
 0x12e   :  { %2045 = vrot.lane.b32.xlu1 %v6155_v21, %s5737_s12  ;;  %1848 = vrot.lane.b32.xlu0 %v911_v43, %s5736_s11  ;;  %v6398_v21 = vpop.f32.mrf.mxu0  ;;  %v97_v43 = vld [vmem:[%s8554_s0 + $0x148] sm:$0xff] }
 0x12f   :  { %5521 = vmatmul.mubr.msk.f32.gmra.mxu0 %vm119_vm2, %v96_v28 }
 0x130   :  { %v5462_v52 = vpop.f32.mrf.mxu0  ;;  %5523 = vmatprep.mubr.msk.f32.mxu0 %vm5733_vm1, %v5732_v1 }
 0x131   :  { %v432_v52 = vadd.f32 %v6061_v7, %v6210_v46 }
 0x132   :  { %3018 = vrot.lane.b32.xlu1 %v927_v48, %s5734_s27  ;;  %2047 = vrot.lane.b32.xlu0 %v6163_v25, %s5737_s12 }
 0x133   :  { %5524 = vmatmul.mubr.msk.f32.gmra.mxu0 %vm119_vm2, %v97_v43 }
 0x134   :  { %5526 = vmatprep.mubr.msk.f32.mxu0 %vm5733_vm1, %v5732_v1 }
 0x136   :  { %1850 = vrot.lane.b32.xlu1 %v927_v48, %s5736_s11  ;;  %2823 = vrot.lane.b32.xlu0 %v6163_v25, %s5741_s5  ;;  %v6422_v25 = vpop.f32.mrf.mxu0  ;;  %v987_v48 = vrot.slane %v658_v12, %v6064_v10 }
 0x138   :  { %v5465_v57 = vpop.f32.mrf.mxu0 }
 0x13a   :  { %2049 = vrot.lane.b32.xlu1 %v6177_v30, %s5737_s12  ;;  %1852 = vrot.lane.b32.xlu0 %v928_v53, %s5736_s11  ;;  %v471_v0 = vpop.f32.mrf.mxu0 }
 0x13e   :  { %2825 = vrot.lane.b32.xlu1 %v6177_v30, %s5741_s5  ;;  %3020 = vrot.lane.b32.xlu0 %v928_v53, %s5734_s27  ;;  %v422_v30 = vadd.f32 %v6061_v7, %v6189_v36  ;;  %v472_v36 = vadd.f32 %v6061_v7, %v471_v0 }
 0x140   :  { %v6438_v3 = vmax.f32 %v422_v30, 0.0  ;;  %v6449_v13 = vmax.f32 %v472_v36, 0.0  ;;  %v6525_v30 = vmax.f32 %v432_v52, 0.0  ;;  %v1029_v52 = vcombine.high %v6222_v58, %v6222_v58 }
 0x142   :  { %3022 = vrot.lane.b32.xlu1 %v944_v54, %s5734_s27  ;;  %2827 = vrot.lane.b32.xlu0 %v6181_v34, %s5741_s5  ;;  %v970_v14 = vrot.slane %v6438_v3, %v6064_v10  ;;  %v1133_v35 = vcombine.high %v6449_v13, %v6449_v13  ;;  %v963_v44 = vcombine.high %v6438_v3, %v6438_v3 }
 0x143   :  { %v1004_v3 = vrot.slane %v6525_v30, %v6064_v10 }
 0x144   :  { %v1831_v55 = vpop.permute.xlu1 %1830  ;;  %v2028_v56 = vpop.permute.xlu0 %2027  ;;  %v6467_v24 = vrot.slane %v1133_v35, %v6064_v10  ;;  %v978_v39 = vcombine.high %v970_v14, %v970_v14  ;;  %v977_v51 = vrot.slane %v963_v44, %v6064_v10 }
 0x145   :  { %1978 = vst.msk [vmem:[#allocation2] sm:$0x3] %vm1977_vm4, %v1831_v55  ;;  %v995_v55 = vcombine.high %v987_v48, %v987_v48 }
 0x146   :  { %2175 = vst.msk [vmem:[#allocation2] sm:$0x3] %vm2174_vm5, %v2028_v56  ;;  %1854 = vrot.lane.b32.xlu1 %v944_v54, %s5736_s11  ;;  %2051 = vrot.lane.b32.xlu0 %v6181_v34, %s5737_s12  ;;  %v5468_v34 = vpop.f32.mrf.mxu0  ;;  %v979_v56 = vcombine.high %v977_v51, %v977_v51 }
 0x147   :  { %1802 = vst.msk [vmem:[#allocation2 + $0x54] sm:$0x3] %vm1780_vm3, %v6467_v24 }
 0x148   :  { %v2030_v60 = vpop.permute.xlu1 %2029  ;;  %v1833_v61 = vpop.permute.xlu0 %1832 }
 0x149   :  { %1979 = vst.msk [vmem:[#allocation2 + $0x4] sm:$0x3] %vm1977_vm4, %v1833_v61  ;;  %v980_v61 = vcombine.high %v658_v12, %v658_v12 }
 0x14a   :  { %2176 = vst.msk [vmem:[#allocation2 + $0x4] sm:$0x3] %vm2174_vm5, %v2030_v60  ;;  %2053 = vrot.lane.b32.xlu1 %v6201_v38, %s5737_s12  ;;  %3024 = vrot.lane.b32.xlu0 %v945_v62, %s5734_s27  ;;  %v476_v38 = vpop.f32.mrf.mxu0 }
 0x14b   :  { %v477_v15 = vadd.f32 %v6061_v7, %v476_v38  ;;  %v994_v5 = vrot.slane %v980_v61, %v6064_v10  ;;  %v1030_v61 = vcombine.high %v6226_v63, %v6226_v63 }
 0x14c   :  { %v1835_v6 = vpop.permute.xlu1 %1834  ;;  %v2032_v9 = vpop.permute.xlu0 %2031 }
 0x14d   :  { %1980 = vst.msk [vmem:[#allocation2 + $0x8] sm:$0x3] %vm1977_vm4, %v1835_v6  ;;  %v668_v26 = vmax.f32 %v477_v15, 0.0  ;;  %v5471_v4 = vpop.f32.mrf.mxu0  ;;  %v996_v18 = vcombine.high %v994_v5, %v994_v5 }
 0x14e   :  { %2177 = vst.msk [vmem:[#allocation2 + $0x8] sm:$0x3] %vm2174_vm5, %v2032_v9  ;;  %2238 = vrot.lane.b32.xlu1 %v961_v11, %s5739_s22  ;;  %1856 = vrot.lane.b32.xlu0 %v945_v62, %s5736_s11 }
 0x14f   :  { %v1150_v29 = vcombine.high %v668_v26, %v668_v26  ;;  %v6484_v31 = vrot.slane %v668_v26, %v6064_v10  ;;  %v481_v57 = vpop.f32.mrf.mxu0  ;;  %v1012_v26 = vcombine.high %v1004_v3, %v1004_v3 }
 0x150   :  { %v2034_v20 = vpop.permute.xlu1 %2033  ;;  %v1837_v22 = vpop.permute.xlu0 %1836  ;;  %v482_v60 = vadd.f32 %v6061_v7, %v481_v57  ;;  %v99_v57 = vld [vmem:[%s8554_s0 + $0x158] sm:$0xff] }
 0x151   :  { %1981 = vst.msk [vmem:[#allocation2 + $0xc] sm:$0x3] %vm1977_vm4, %v1837_v22  ;;  %v6489_v42 = vrot.slane %v1150_v29, %v6064_v10  ;;  %v5474_v46 = vpop.f32.mrf.mxu0 }
 0x152   :  { %2178 = vst.msk [vmem:[#allocation2 + $0xc] sm:$0x3] %vm2174_vm5, %v2034_v20  ;;  %2437 = vrot.lane.b32.xlu1 %v970_v14, %s5738_s21  ;;  %2435 = vrot.lane.b32.xlu0 %v960_v23, %s5738_s21  ;;  %v669_v2 = vmax.f32 %v482_v60, 0.0  ;;  %v100_v46 = vld [vmem:[%s8554_s0 + $0x160] sm:$0xff] }
 0x153   :  { %3223 = vst.msk [vmem:[#allocation2 + $0x3a] sm:$0x3] %vm1780_vm3, %v6484_v31  ;;  %1803 = vst.msk [vmem:[#allocation2 + $0x58] sm:$0x3] %vm1780_vm3, %v6484_v31  ;;  %v486_v6 = vpop.f32.mrf.mxu0 }
 0x154   :  { %v1839_v32 = vpop.permute.xlu1 %1838  ;;  %v2036_v33 = vpop.permute.xlu0 %2035  ;;  %3224 = vst.msk [vmem:[#allocation2 + $0x3e] sm:$0x3] %vm1780_vm3, %v6489_v42  ;;  %1804 = vst.msk [vmem:[#allocation2 + $0x5c] sm:$0x3] %vm1780_vm3, %v6489_v42  ;;  %v1167_v36 = vcombine.high %v669_v2, %v669_v2  ;;  %v6538_v34 = vrot.slane %v669_v2, %v6064_v10  ;;  %v487_v35 = vadd.f32 %v6061_v7, %v486_v6  ;;  %v101_v2 = vld [vmem:[%s8554_s0 + $0x168] sm:$0xff] }
 0x155   :  { %1982 = vst.msk [vmem:[#allocation2 + $0x10] sm:$0x3] %vm1977_vm4, %v1839_v32  ;;  %v5477_v38 = vpop.f32.mrf.mxu0 }
 0x156   :  { %2179 = vst.msk [vmem:[#allocation2 + $0x10] sm:$0x3] %vm2174_vm5, %v2036_v33  ;;  %2242 = vrot.lane.b32.xlu1 %v978_v39, %s5739_s22  ;;  %2632 = vrot.lane.b32.xlu0 %v962_v41, %s5740_s23  ;;  %v6542_v14 = vrot.slane %v1167_v36, %v6064_v10  ;;  %v670_v15 = vmax.f32 %v487_v35, 0.0 }
 0x157   :  { %3225 = vst.msk [vmem:[#allocation2 + $0x42] sm:$0x3] %vm1780_vm3, %v6538_v34  ;;  %1805 = vst.msk [vmem:[#allocation2 + $0x60] sm:$0x3] %vm1780_vm3, %v6538_v34  ;;  %v491_v20 = vpop.f32.mrf.mxu0 }
 0x158   :  { %v2038_v47 = vpop.permute.xlu1 %2037  ;;  %v1841_v17 = vpop.permute.xlu0 %1840  ;;  %3226 = vst.msk [vmem:[#allocation2 + $0x46] sm:$0x3] %vm1780_vm3, %v6542_v14  ;;  %1806 = vst.msk [vmem:[#allocation2 + $0x64] sm:$0x3] %vm1780_vm3, %v6542_v14  ;;  %v1184_v4 = vcombine.high %v670_v15, %v670_v15  ;;  %v6558_v27 = vrot.slane %v670_v15, %v6064_v10  ;;  %v492_v28 = vadd.f32 %v6061_v7, %v491_v20 }
 0x159   :  { %1983 = vst.msk [vmem:[#allocation2 + $0x14] sm:$0x3] %vm1977_vm4, %v1841_v17  ;;  %v5480_v29 = vpop.f32.mrf.mxu0 }
 0x15a   :  { %2180 = vst.msk [vmem:[#allocation2 + $0x14] sm:$0x3] %vm2174_vm5, %v2038_v47  ;;  %2634 = vrot.lane.b32.xlu1 %v978_v39, %s5740_s23  ;;  %2240 = vrot.lane.b32.xlu0 %v962_v41, %s5739_s22  ;;  %v6566_v32 = vrot.slane %v1184_v4, %v6064_v10  ;;  %v6572_v33 = vmax.f32 %v492_v28, 0.0  ;;  %v997_v39 = vcombine.high %v6525_v30, %v6525_v30  ;;  %v6688_v29 = vld [vmem:[%s8557_s3] ss:$0 sm:$0xff] }
 0x15b   :  { %3227 = vst.msk [vmem:[#allocation2 + $0x4a] sm:$0x3] %vm1780_vm3, %v6558_v27  ;;  %1807 = vst.msk [vmem:[#allocation2 + $0x68] sm:$0x3] %vm1780_vm3, %v6558_v27  ;;  %v6574_v7 = vpop.f32.mrf.mxu0 }
 0x15c   :  { %v1843_v49 = vpop.permute.xlu1 %1842  ;;  %v2040_v50 = vpop.permute.xlu0 %2039  ;;  %3228 = vst.msk [vmem:[#allocation2 + $0x4e] sm:$0x3] %vm1780_vm3, %v6566_v32  ;;  %1808 = vst.msk [vmem:[#allocation2 + $0x6c] sm:$0x3] %vm1780_vm3, %v6566_v32  ;;  %v6584_v43 = vrot.slane %v6572_v33, %v6064_v10  ;;  %v1011_v47 = vrot.slane %v997_v39, %v6064_v10 }
 0x15d   :  { %1984 = vst.msk [vmem:[#allocation2 + $0x18] sm:$0x3] %vm1977_vm4, %v1843_v49  ;;  %v5483_v44 = vpop.f32.mrf.mxu0 }
 0x15e   :  { %2181 = vst.msk [vmem:[#allocation2 + $0x18] sm:$0x3] %vm2174_vm5, %v2040_v50  ;;  %2441 = vrot.lane.b32.xlu1 %v987_v48, %s5738_s21  ;;  %2439 = vrot.lane.b32.xlu0 %v977_v51, %s5738_s21  ;;  %v1013_v49 = vcombine.high %v1011_v47, %v1011_v47 }
 0x15f   :  { %3229 = vst.msk [vmem:[#allocation2 + $0x52] sm:$0x3] %vm1780_vm3, %v6584_v43  ;;  %v6670_v35 = vpop.f32.mrf.mxu0 }
 0x160   :  { %v2422_v53 = vpop.permute.xlu1 %2421  ;;  %v2225_v54 = vpop.permute.xlu0 %2224 }
 0x161   :  { %2372 = vst.msk [vmem:[#allocation2] sm:$0x3] %vm2371_vm6, %v2225_v54  ;;  %v5486_v20 = vpop.f32.mrf.mxu0 }
 0x162   :  { %2246 = vrot.lane.b32.xlu1 %v995_v55, %s5739_s22  ;;  %2244 = vrot.lane.b32.xlu0 %v979_v56, %s5739_s22  ;;  %2569 = vst.msk [vmem:[#allocation2] sm:$0x3] %vm2568_vm7, %v2422_v53 }
 0x164   :  { %v2227_v62 = vpop.permute.xlu1 %2226  ;;  %v2424_v0 = vpop.permute.xlu0 %2423 }
 0x165   :  { %2373 = vst.msk [vmem:[#allocation2 + $0x4] sm:$0x3] %vm2371_vm6, %v2227_v62 }
 0x166   :  { %2570 = vst.msk [vmem:[#allocation2 + $0x4] sm:$0x3] %vm2568_vm7, %v2424_v0  ;;  %2638 = vrot.lane.b32.xlu1 %v995_v55, %s5740_s23  ;;  %2636 = vrot.lane.b32.xlu0 %v979_v56, %s5740_s23  ;;  %v98_v55 = vld [vmem:[%s8554_s0 + $0x150] sm:$0xff]  ;;  %v1046_v0 = vcombine.high %v6240_v8, %v6240_v8 }
 0x167   :  { %5527 = vmatmul.mubr.msk.f32.gmra.mxu0 %vm119_vm2, %v98_v55 }
 0x168   :  { %v2619_v9 = vpop.permute.xlu1 %2618  ;;  %v2229_v11 = vpop.permute.xlu0 %2228  ;;  %5529 = vmatprep.mubr.msk.f32.mxu0 %vm5733_vm1, %v5732_v1 }
 0x169   :  { %2766 = vst.msk [vmem:[#allocation2] sm:$0x3] %vm2765_vm8, %v2619_v9 }
 0x16a   :  { %2374 = vst.msk [vmem:[#allocation2 + $0x8] sm:$0x3] %vm2371_vm6, %v2229_v11  ;;  %2445 = vrot.lane.b32.xlu1 %v1004_v3, %s5738_s21  ;;  %2443 = vrot.lane.b32.xlu0 %v994_v5, %s5738_s21  ;;  %v1047_v11 = vcombine.high %v6243_v59, %v6243_v59 }
 0x16b   :  { %5530 = vmatmul.mubr.msk.f32.gmra.mxu0 %vm119_vm2, %v99_v57 }
 0x16c   :  { %v2426_v22 = vpop.permute.xlu1 %2425  ;;  %v2621_v23 = vpop.permute.xlu0 %2620  ;;  %5532 = vmatprep.mubr.msk.f32.mxu0 %vm5733_vm1, %v5732_v1 }
 0x16d   :  { %2571 = vst.msk [vmem:[#allocation2 + $0x8] sm:$0x3] %vm2568_vm7, %v2426_v22 }
 0x16e   :  { %2767 = vst.msk [vmem:[#allocation2 + $0x4] sm:$0x3] %vm2765_vm8, %v2621_v23  ;;  %2250 = vrot.lane.b32.xlu1 %v1012_v26, %s5739_s22  ;;  %2640 = vrot.lane.b32.xlu0 %v996_v18, %s5740_s23 }
 0x16f   :  { %5533 = vmatmul.mubr.msk.f32.gmra.mxu0 %vm119_vm2, %v100_v46 }
 0x170   :  { %v2231_v41 = vpop.permute.xlu1 %2230  ;;  %v2428_v12 = vpop.permute.xlu0 %2427  ;;  %5535 = vmatprep.mubr.msk.f32.mxu0 %vm5733_vm1, %v5732_v1 }
 0x171   :  { %2375 = vst.msk [vmem:[#allocation2 + $0xc] sm:$0x3] %vm2371_vm6, %v2231_v41  ;;  %v457_v41 = vadd.f32 %v6688_v29, %v6369_v45 }
 0x172   :  { %2572 = vst.msk [vmem:[#allocation2 + $0xc] sm:$0x3] %vm2568_vm7, %v2428_v12  ;;  %2642 = vrot.lane.b32.xlu1 %v1012_v26, %s5740_s23  ;;  %2248 = vrot.lane.b32.xlu0 %v996_v18, %s5739_s22  ;;  %v1063_v18 = vcombine.high %v6258_v16, %v6258_v16 }
 0x173   :  { %5536 = vmatmul.mubr.msk.f32.gmra.mxu0 %vm119_vm2, %v101_v2 }
 0x174   :  { %v2623_v17 = vpop.permute.xlu1 %2622  ;;  %v2625_v48 = vpop.permute.xlu0 %2624  ;;  %5538 = vmatprep.mubr.msk.f32.mxu0 %vm5733_vm1, %v5732_v1 }
 0x175   :  { %2768 = vst.msk [vmem:[#allocation2 + $0x8] sm:$0x3] %vm2765_vm8, %v2623_v17  ;;  %2769 = vst.msk [vmem:[#allocation2 + $0xc] sm:$0x3] %vm2765_vm8, %v2625_v48 }
 0x176   :  { %2829 = vrot.lane.b32.xlu1 %v6222_v58, %s5741_s5  ;;  %2447 = vrot.lane.b32.xlu0 %v1011_v47, %s5738_s21 }
 0x178   :  { %v2430_v50 = vpop.permute.xlu1 %2429  ;;  %v2233_v51 = vpop.permute.xlu0 %2232 }
 0x179   :  { %2376 = vst.msk [vmem:[#allocation2 + $0x10] sm:$0x3] %vm2371_vm6, %v2233_v51 }
 0x17a   :  { %2573 = vst.msk [vmem:[#allocation2 + $0x10] sm:$0x3] %vm2568_vm7, %v2430_v50  ;;  %3026 = vrot.lane.b32.xlu1 %v1029_v52, %s5734_s27  ;;  %2644 = vrot.lane.b32.xlu0 %v1013_v49, %s5740_s23  ;;  %v1064_v49 = vcombine.high %v6267_v19, %v6267_v19 }
 0x17c   :  { %v2235_v53 = vpop.permute.xlu1 %2234  ;;  %v2432_v54 = vpop.permute.xlu0 %2431 }
 0x17d   :  { %2377 = vst.msk [vmem:[#allocation2 + $0x14] sm:$0x3] %vm2371_vm6, %v2235_v53 }
 0x17e   :  { %2574 = vst.msk [vmem:[#allocation2 + $0x14] sm:$0x3] %vm2568_vm7, %v2432_v54  ;;  %1858 = vrot.lane.b32.xlu1 %v1029_v52, %s5736_s11  ;;  %2055 = vrot.lane.b32.xlu0 %v6226_v63, %s5737_s12  ;;  %v664_v52 = vmax.f32 %v457_v41, 0.0 }
 0x180   :  { %v2627_v58 = vpop.permute.xlu1 %2626  ;;  %v2237_v56 = vpop.permute.xlu0 %2236  ;;  %v1089_v2 = vrot.slane %v664_v52, %v6064_v10 }
 0x181   :  { %2770 = vst.msk [vmem:[#allocation2 + $0x10] sm:$0x3] %vm2765_vm8, %v2627_v58 }
 0x182   :  { %2378 = vst.msk [vmem:[#allocation2 + $0x18] sm:$0x3] %vm2371_vm6, %v2237_v56  ;;  %2057 = vrot.lane.b32.xlu1 %v6240_v8, %s5737_s12  ;;  %2831 = vrot.lane.b32.xlu0 %v6226_v63, %s5741_s5  ;;  %v1080_v56 = vcombine.high %v6324_v37, %v6324_v37 }
 0x184   :  { %v2434_v30 = vpop.permute.xlu1 %2433  ;;  %v2629_v60 = vpop.permute.xlu0 %2628 }
 0x185   :  { %2575 = vst.msk [vmem:[#allocation2 + $0x18] sm:$0x3] %vm2568_vm7, %v2434_v30 }
 0x186   :  { %2771 = vst.msk [vmem:[#allocation2 + $0x14] sm:$0x3] %vm2765_vm8, %v2629_v60  ;;  %2833 = vrot.lane.b32.xlu1 %v6240_v8, %s5741_s5  ;;  %1860 = vrot.lane.b32.xlu0 %v1030_v61, %s5736_s11  ;;  %v1082_v60 = vcombine.high %v664_v52, %v664_v52 }
 0x188   :  { %v2631_v63 = vpop.permute.xlu1 %2630  ;;  %v2816_v62 = vpop.permute.xlu0 %2815 }
 0x189   :  { %2772 = vst.msk [vmem:[#allocation2 + $0x18] sm:$0x3] %vm2765_vm8, %v2631_v63 }
 0x18a   :  { %2963 = vst.msk [vmem:[#allocation2] sm:$0x3] %vm2962_vm9, %v2816_v62  ;;  %3030 = vrot.lane.b32.xlu1 %v1046_v0, %s5734_s27  ;;  %3028 = vrot.lane.b32.xlu0 %v1030_v61, %s5734_s27  ;;  %v1081_v62 = vcombine.high %v6335_v40, %v6335_v40 }
 0x18c   :  { %v2042_v3 = vpop.permute.xlu1 %2041  ;;  %v1845_v36 = vpop.permute.xlu0 %1844 }
 0x18d   :  { %1985 = vst.msk [vmem:[#allocation2 + $0x1c] sm:$0x3] %vm1977_vm4, %v1845_v36  ;;  %v462_v36 = vadd.f32 %v6688_v29, %v6398_v21  ;;  %v1097_v21 = vcombine.high %v1089_v2, %v1089_v2 }
 0x18e   :  { %2182 = vst.msk [vmem:[#allocation2 + $0x1c] sm:$0x3] %vm2174_vm5, %v2042_v3  ;;  %1862 = vrot.lane.b32.xlu1 %v1046_v0, %s5736_s11  ;;  %2835 = vrot.lane.b32.xlu0 %v6243_v59, %s5741_s5  ;;  %v1096_v3 = vrot.slane %v1082_v60, %v6064_v10 }
 0x190   :  { %v2818_v8 = vpop.permute.xlu1 %2817  ;;  %v3013_v5 = vpop.permute.xlu0 %3012 }
 0x191   :  { %2964 = vst.msk [vmem:[#allocation2 + $0x4] sm:$0x3] %vm2962_vm9, %v2818_v8 }
 0x192   :  { %3160 = vst.msk [vmem:[#allocation2] sm:$0x3] %vm3159_vm10, %v3013_v5  ;;  %2837 = vrot.lane.b32.xlu1 %v6258_v16, %s5741_s5  ;;  %2059 = vrot.lane.b32.xlu0 %v6243_v59, %s5737_s12  ;;  %v6678_v59 = vpop.f32.mrf.mxu0 }
 0x194   :  { %v3015_v6 = vpop.permute.xlu1 %3014  ;;  %v2820_v9 = vpop.permute.xlu0 %2819 }
 0x195   :  { %3161 = vst.msk [vmem:[#allocation2 + $0x4] sm:$0x3] %vm3159_vm10, %v3015_v6  ;;  %v5489_v26 = vpop.f32.mrf.mxu0 }
 0x196   :  { %2965 = vst.msk [vmem:[#allocation2 + $0x8] sm:$0x3] %vm2962_vm9, %v2820_v9  ;;  %2061 = vrot.lane.b32.xlu1 %v6258_v16, %s5737_s12  ;;  %3032 = vrot.lane.b32.xlu0 %v1047_v11, %s5734_s27  ;;  %v102_v26 = vld [vmem:[%s8554_s0 + $0x170] sm:$0xff] }
 0x197   :  { %v511_v16 = vpop.f32.mrf.mxu0  ;;  %5539 = vmatmul.mubr.msk.f32.gmra.mxu0 %vm119_vm2, %v102_v26  ;;  %vm4729_vm2 = vcmask 517120  }
 0x198   :  { %v1847_v38 = vpop.permute.xlu1 %1846  ;;  %v2044_v15 = vpop.permute.xlu0 %2043  ;;  %v512_v39 = vadd.f32 %v6688_v29, %v511_v16 }
 0x199   :  { %1986 = vst.msk [vmem:[#allocation2 + $0x20] sm:$0x3] %vm1977_vm4, %v1847_v38  ;;  %v5492_v12 = vpop.f32.mrf.mxu0  ;;  %v665_v38 = vmax.f32 %v462_v36, 0.0 }
 0x19a   :  { %2183 = vst.msk [vmem:[#allocation2 + $0x20] sm:$0x3] %vm2174_vm5, %v2044_v15  ;;  %3034 = vrot.lane.b32.xlu1 %v1063_v18, %s5734_s27  ;;  %1864 = vrot.lane.b32.xlu0 %v1047_v11, %s5736_s11  ;;  %v675_v44 = vmax.f32 %v512_v39, 0.0  ;;  %v1098_v11 = vcombine.high %v1096_v3, %v1096_v3 }
 0x19b   :  { %v516_v47 = vpop.f32.mrf.mxu0  ;;  %v1099_v20 = vcombine.high %v665_v38, %v665_v38  ;;  %v1106_v16 = vrot.slane %v665_v38, %v6064_v10  ;;  %v1165_v38 = vcombine.high %v6484_v31, %v6484_v31 }
 0x19c   :  { %v2822_v22 = vpop.permute.xlu1 %2821  ;;  %v3017_v23 = vpop.permute.xlu0 %3016  ;;  %v1269_v50 = vcombine.high %v675_v44, %v675_v44  ;;  %v6702_v51 = vrot.slane %v675_v44, %v6064_v10  ;;  %v517_v45 = vadd.f32 %v6688_v29, %v516_v47 }
 0x19d   :  { %2966 = vst.msk [vmem:[#allocation2 + $0xc] sm:$0x3] %vm2962_vm9, %v2822_v22  ;;  %v5495_v53 = vpop.f32.mrf.mxu0  ;;  %v1114_v47 = vcombine.high %v1106_v16, %v1106_v16 }
 0x19e   :  { %3162 = vst.msk [vmem:[#allocation2 + $0x8] sm:$0x3] %vm3159_vm10, %v3017_v23  ;;  %1866 = vrot.lane.b32.xlu1 %v1063_v18, %s5736_s11  ;;  %2063 = vrot.lane.b32.xlu0 %v6267_v19, %s5737_s12  ;;  %v6710_v54 = vrot.slane %v1269_v50, %v6064_v10 }
 0x19f   :  { %1809 = vst.msk [vmem:[#allocation2 + $0x70] sm:$0x3] %vm1780_vm3, %v6702_v51 }
 0x1a0   :  { %v2046_v4 = vpop.permute.xlu1 %2045  ;;  %v1849_v28 = vpop.permute.xlu0 %1848  ;;  %3230 = vst.msk [vmem:[#allocation2 + $0x56] sm:$0x3] %vm1780_vm3, %v6710_v54  ;;  %1810 = vst.msk [vmem:[#allocation2 + $0x74] sm:$0x3] %vm1780_vm3, %v6710_v54 }
 0x1a1   :  { %1987 = vst.msk [vmem:[#allocation2 + $0x24] sm:$0x3] %vm1977_vm4, %v1849_v28  ;;  %v467_v28 = vadd.f32 %v6688_v29, %v6422_v25 }
 0x1a2   :  { %2184 = vst.msk [vmem:[#allocation2 + $0x24] sm:$0x3] %vm2174_vm5, %v2046_v4  ;;  %2065 = vrot.lane.b32.xlu1 %v6324_v37, %s5737_s12  ;;  %2839 = vrot.lane.b32.xlu0 %v6267_v19, %s5741_s5  ;;  %v676_v19 = vmax.f32 %v517_v45, 0.0  ;;  %v1113_v4 = vrot.slane %v1099_v20, %v6064_v10 }
 0x1a3   :  { %v666_v44 = vmax.f32 %v467_v28, 0.0  ;;  %v6837_v28 = vcombine.high %v6489_v42, %v6489_v42 }
 0x1a4   :  { %v3019_v17 = vpop.permute.xlu1 %3018  ;;  %v2048_v48 = vpop.permute.xlu0 %2047  ;;  %v1286_v57 = vcombine.high %v676_v19, %v676_v19  ;;  %v6721_v30 = vrot.slane %v676_v19, %v6064_v10  ;;  %v1115_v12 = vcombine.high %v1113_v4, %v1113_v4 }
 0x1a5   :  { %3163 = vst.msk [vmem:[#allocation2 + $0xc] sm:$0x3] %vm3159_vm10, %v3019_v17  ;;  %v1116_v25 = vcombine.high %v666_v44, %v666_v44  ;;  %v1123_v45 = vrot.slane %v666_v44, %v6064_v10 }
 0x1a6   :  { %2841 = vrot.lane.b32.xlu1 %v6324_v37, %s5741_s5  ;;  %1868 = vrot.lane.b32.xlu0 %v1064_v49, %s5736_s11  ;;  %v6728_v37 = vld.sshfl [vmem:[#allocation2] sm:$0xff pattern:$0x76325410]  ;;  %v6731_v61 = vrot.slane %v1286_v57, %v6064_v10  ;;  %3231 = vst.msk [vmem:[#allocation2 + $0x5a] sm:$0x3] %vm1780_vm3, %v6721_v30 }
 0x1a7   :  { %1811 = vst.msk [vmem:[#allocation2 + $0x78] sm:$0x3] %vm1780_vm3, %v6721_v30  ;;  %v1130_v52 = vrot.slane %v1116_v25, %v6064_v10 }
 0x1a8   :  { %v1851_v55 = vpop.permute.xlu1 %1850  ;;  %v2824_v58 = vpop.permute.xlu0 %2823  ;;  %3232 = vst.msk [vmem:[#allocation2 + $0x5e] sm:$0x3] %vm1780_vm3, %v6731_v61  ;;  %1812 = vst.msk [vmem:[#allocation2 + $0x7c] sm:$0x3] %vm1780_vm3, %v6731_v61 }
 0x1a9   :  { %1988 = vst.msk [vmem:[#allocation2 + $0x28] sm:$0x3] %vm1977_vm4, %v1851_v55  ;;  %v6793_v55 = vcombine.high %v1130_v52, %v1130_v52 }
 0x1aa   :  { %2967 = vst.msk [vmem:[#allocation2 + $0x10] sm:$0x3] %vm2962_vm9, %v2824_v58  ;;  %3038 = vrot.lane.b32.xlu1 %v1080_v56, %s5734_s27  ;;  %3036 = vrot.lane.b32.xlu0 %v1064_v49, %s5734_s27  ;;  %v1131_v58 = vcombine.high %v1123_v45, %v1123_v45 }
 0x1ab   :  { %2185 = vst.msk [vmem:[#allocation2 + $0x28] sm:$0x3] %vm2174_vm5, %v2048_v48 }
 0x1ac   :  { %v2050_v46 = vpop.permute.xlu1 %2049  ;;  %v1853_v63 = vpop.permute.xlu0 %1852  ;;  %v6739_v0 = vld.sshfl [vmem:[#allocation2 + $0x8] sm:$0xff pattern:$0x76325410] }
 0x1ad   :  { %1989 = vst.msk [vmem:[#allocation2 + $0x2c] sm:$0x3] %vm1977_vm4, %v1853_v63  ;;  %v3372_v6 = vcombine.low %v6728_v37, %v6739_v0  ;;  %v3373_v9 = vcombine.high %v6728_v37, %v6739_v0  ;;  %v1149_v63 = vcombine.high %v6467_v24, %v6467_v24 }
 0x1ae   :  { %2186 = vst.msk [vmem:[#allocation2 + $0x2c] sm:$0x3] %vm2174_vm5, %v2050_v46  ;;  %1870 = vrot.lane.b32.xlu1 %v1080_v56, %s5736_s11  ;;  %2252 = vrot.lane.b32.xlu0 %v1081_v62, %s5739_s22 }
 0x1af   :  { %5186 = vmatprep.mubr.msk.f32.mxu1 %vm3668_vm11, %v3373_v9 }
 0x1b0   :  { %v2826_v8 = vpop.permute.xlu1 %2825  ;;  %v3021_v5 = vpop.permute.xlu0 %3020 }
 0x1b1   :  { %2968 = vst.msk [vmem:[#allocation2 + $0x14] sm:$0x3] %vm2962_vm9, %v2826_v8  ;;  %v521_v62 = vpop.f32.mrf.mxu0 }
 0x1b2   :  { %3164 = vst.msk [vmem:[#allocation2 + $0x10] sm:$0x3] %vm3159_vm10, %v3021_v5  ;;  %2449 = vrot.lane.b32.xlu1 %v1089_v2, %s5738_s21  ;;  %2451 = vrot.lane.b32.xlu0 %v1096_v3, %s5738_s21  ;;  %v522_v36 = vadd.f32 %v6688_v29, %v521_v62 }
 0x1b3   :  { %v5498_v8 = vpop.f32.mrf.mxu0 }
 0x1b4   :  { %v3023_v15 = vpop.permute.xlu1 %3022  ;;  %v2828_v18 = vpop.permute.xlu0 %2827  ;;  %v677_v5 = vmax.f32 %v522_v36, 0.0 }
 0x1b5   :  { %3165 = vst.msk [vmem:[#allocation2 + $0x14] sm:$0x3] %vm3159_vm10, %v3023_v15 }
 0x1b6   :  { %2969 = vst.msk [vmem:[#allocation2 + $0x18] sm:$0x3] %vm2962_vm9, %v2828_v18  ;;  %2254 = vrot.lane.b32.xlu1 %v1097_v21, %s5739_s22  ;;  %2648 = vrot.lane.b32.xlu0 %v1098_v11, %s5740_s23  ;;  %v6819_v15 = vrot.slane %v677_v5, %v6064_v10 }
 0x1b7   :  { %v526_v9 = vpop.f32.mrf.mxu0 }
 0x1b8   :  { %v1855_v22 = vpop.permute.xlu1 %1854  ;;  %v2052_v23 = vpop.permute.xlu0 %2051  ;;  %v527_v18 = vadd.f32 %v6688_v29, %v526_v9  ;;  %3233 = vst.msk [vmem:[#allocation2 + $0x62] sm:$0x3] %vm1780_vm3, %v6819_v15  ;;  %1813 = vst.msk [vmem:[#allocation2 + $0x80] sm:$0x3] %vm1780_vm3, %v6819_v15 }
 0x1b9   :  { %1990 = vst.msk [vmem:[#allocation2 + $0x30] sm:$0x3] %vm1977_vm4, %v1855_v22  ;;  %v5501_v20 = vpop.f32.mrf.mxu0 }
 0x1ba   :  { %2187 = vst.msk [vmem:[#allocation2 + $0x30] sm:$0x3] %vm2174_vm5, %v2052_v23  ;;  %2646 = vrot.lane.b32.xlu1 %v1097_v21, %s5740_s23  ;;  %2256 = vrot.lane.b32.xlu0 %v1098_v11, %s5739_s22  ;;  %v1303_v21 = vcombine.high %v677_v5, %v677_v5  ;;  %v678_v23 = vmax.f32 %v527_v18, 0.0  ;;  %v1182_v18 = vcombine.high %v6538_v34, %v6538_v34 }
 0x1bb   :  { %v1183_v20 = vcombine.high %v6542_v14, %v6542_v14 }
 0x1bc   :  { %v2054_v39 = vpop.permute.xlu1 %2053  ;;  %v3025_v41 = vpop.permute.xlu0 %3024  ;;  %v6827_v22 = vrot.slane %v1303_v21, %v6064_v10 }
 0x1bd   :  { %3166 = vst.msk [vmem:[#allocation2 + $0x18] sm:$0x3] %vm3159_vm10, %v3025_v41  ;;  %v6844_v41 = vrot.slane %v678_v23, %v6064_v10 }
 0x1be   :  { %2453 = vrot.lane.b32.xlu1 %v1106_v16, %s5738_s21  ;;  %2455 = vrot.lane.b32.xlu0 %v1113_v4, %s5738_s21  ;;  %3234 = vst.msk [vmem:[#allocation2 + $0x66] sm:$0x3] %vm1780_vm3, %v6827_v22  ;;  %1814 = vst.msk [vmem:[#allocation2 + $0x84] sm:$0x3] %vm1780_vm3, %v6827_v22 }
 0x1bf   :  { %3235 = vst.msk [vmem:[#allocation2 + $0x6a] sm:$0x3] %vm1780_vm3, %v6844_v41  ;;  %1815 = vst.msk [vmem:[#allocation2 + $0x88] sm:$0x3] %vm1780_vm3, %v6844_v41 }
 0x1c0   :  { %v2239_v17 = vpop.permute.xlu1 %2238  ;;  %v1857_v48 = vpop.permute.xlu0 %1856 }
 0x1c1   :  { %2379 = vst.msk [vmem:[#allocation2 + $0x1c] sm:$0x3] %vm2371_vm6, %v2239_v17 }
 0x1c2   :  { %1991 = vst.msk [vmem:[#allocation2 + $0x34] sm:$0x3] %vm1977_vm4, %v1857_v48  ;;  %2258 = vrot.lane.b32.xlu1 %v1114_v47, %s5739_s22  ;;  %2260 = vrot.lane.b32.xlu0 %v1115_v12, %s5739_s22 }
 0x1c3   :  { %2188 = vst.msk [vmem:[#allocation2 + $0x34] sm:$0x3] %vm2174_vm5, %v2054_v39  ;;  %v1320_v39 = vcombine.high %v678_v23, %v678_v23 }
 0x1c4   :  { %v2438_v49 = vpop.permute.xlu1 %2437  ;;  %v2436_v50 = vpop.permute.xlu0 %2435 }
 0x1c5   :  { %2576 = vst.msk [vmem:[#allocation2 + $0x1c] sm:$0x3] %vm2568_vm7, %v2436_v50  ;;  %v6851_v44 = vrot.slane %v1320_v39, %v6064_v10  ;;  %v1199_v39 = vcombine.high %v6558_v27, %v6558_v27 }
 0x1c6   :  { %2650 = vrot.lane.b32.xlu1 %v1114_v47, %s5740_s23  ;;  %2652 = vrot.lane.b32.xlu0 %v1115_v12, %s5740_s23  ;;  %v36_v47 = vld [vmem:[%s8555_s1 + $0x80] sm:$0xff] }
 0x1c7   :  { %3236 = vst.msk [vmem:[#allocation2 + $0x6e] sm:$0x3] %vm1780_vm3, %v6851_v44 }
 0x1c8   :  { %v2243_v53 = vpop.permute.xlu1 %2242  ;;  %v2633_v19 = vpop.permute.xlu0 %2632 }
 0x1c9   :  { %2381 = vst.msk [vmem:[#allocation2 + $0x24] sm:$0x3] %vm2371_vm6, %v2243_v53 }
 0x1ca   :  { %2773 = vst.msk [vmem:[#allocation2 + $0x1c] sm:$0x3] %vm2765_vm8, %v2633_v19  ;;  %2457 = vrot.lane.b32.xlu1 %v1123_v45, %s5738_s21  ;;  %2459 = vrot.lane.b32.xlu0 %v1130_v52, %s5738_s21 }
 0x1cc   :  { %v2635_v56 = vpop.permute.xlu1 %2634  ;;  %v2241_v57 = vpop.permute.xlu0 %2240 }
 0x1cd   :  { %2380 = vst.msk [vmem:[#allocation2 + $0x20] sm:$0x3] %vm2371_vm6, %v2241_v57 }
 0x1ce   :  { %2577 = vst.msk [vmem:[#allocation2 + $0x20] sm:$0x3] %vm2568_vm7, %v2438_v49  ;;  %2262 = vrot.lane.b32.xlu1 %v1131_v58, %s5739_s22  ;;  %2656 = vrot.lane.b32.xlu0 %v6793_v55, %s5740_s23 }
 0x1cf   :  { %2774 = vst.msk [vmem:[#allocation2 + $0x20] sm:$0x3] %vm2765_vm8, %v2635_v56 }
 0x1d0   :  { %v2442_v60 = vpop.permute.xlu1 %2441  ;;  %v2440_v46 = vpop.permute.xlu0 %2439 }
 0x1d1   :  { %2578 = vst.msk [vmem:[#allocation2 + $0x24] sm:$0x3] %vm2568_vm7, %v2440_v46  ;;  %v1216_v46 = vcombine.high %v6584_v43, %v6584_v43 }
 0x1d2   :  { %2654 = vrot.lane.b32.xlu1 %v1131_v58, %s5740_s23  ;;  %2843 = vrot.lane.b32.xlu0 %v6467_v24, %s5741_s5 }
 0x1d4   :  { %v2247_v2 = vpop.permute.xlu1 %2246  ;;  %v2245_v3 = vpop.permute.xlu0 %2244 }
 0x1d5   :  { %2383 = vst.msk [vmem:[#allocation2 + $0x2c] sm:$0x3] %vm2371_vm6, %v2247_v2  ;;  %2382 = vst.msk [vmem:[#allocation2 + $0x28] sm:$0x3] %vm2371_vm6, %v2245_v3 }
 0x1d6   :  { %2579 = vst.msk [vmem:[#allocation2 + $0x28] sm:$0x3] %vm2568_vm7, %v2442_v60  ;;  %2845 = vrot.lane.b32.xlu1 %v6484_v31, %s5741_s5  ;;  %3040 = vrot.lane.b32.xlu0 %v1149_v63, %s5734_s27 }
 0x1d7   :  { %v6833_v26 = vpop.f32.mrf.mxu0 }
 0x1d8   :  { %v2639_v24 = vpop.permute.xlu1 %2638  ;;  %v2637_v11 = vpop.permute.xlu0 %2636 }
 0x1d9   :  { %2776 = vst.msk [vmem:[#allocation2 + $0x28] sm:$0x3] %vm2765_vm8, %v2639_v24  ;;  %2775 = vst.msk [vmem:[#allocation2 + $0x24] sm:$0x3] %vm2765_vm8, %v2637_v11  ;;  %v5504_v12 = vpop.f32.mrf.mxu0 }
 0x1da   :  { %3042 = vrot.lane.b32.xlu1 %v1165_v38, %s5734_s27  ;;  %1872 = vrot.lane.b32.xlu0 %v1149_v63, %s5736_s11 }
 0x1db   :  { %v6860_v17 = vpop.f32.mrf.mxu0 }
 0x1dc   :  { %v2446_v16 = vpop.permute.xlu1 %2445  ;;  %v2444_v4 = vpop.permute.xlu0 %2443 }
 0x1dd   :  { %2580 = vst.msk [vmem:[#allocation2 + $0x2c] sm:$0x3] %vm2568_vm7, %v2444_v4  ;;  %v5507_v49 = vpop.f32.mrf.mxu0 }
 0x1de   :  { %1874 = vrot.lane.b32.xlu1 %v1165_v38, %s5736_s11  ;;  %1876 = vrot.lane.b32.xlu0 %v6837_v28, %s5736_s11 }
 0x1df   :  { %v6904_v63 = vpop.f32.mrf.mxu0 }
 0x1e0   :  { %v2251_v48 = vpop.permute.xlu1 %2250  ;;  %v2641_v25 = vpop.permute.xlu0 %2640 }
 0x1e1   :  { %2385 = vst.msk [vmem:[#allocation2 + $0x34] sm:$0x3] %vm2371_vm6, %v2251_v48  ;;  %v5510_v3 = vpop.f32.mrf.mxu0 }
 0x1e2   :  { %2777 = vst.msk [vmem:[#allocation2 + $0x2c] sm:$0x3] %vm2765_vm8, %v2641_v25  ;;  %3643 = vrot.lane.b32.xlu1 %v36_v47, %s5734_s27  ;;  %2067 = vrot.lane.b32.xlu0 %v6335_v40, %s5737_s12  ;;  %v1201_v40 = vcombine.high %v6572_v33, %v6572_v33 }
 0x1e3   :  { %v546_v8 = vpop.f32.mrf.mxu0 }
 0x1e4   :  { %v2643_v50 = vpop.permute.xlu1 %2642  ;;  %v2249_v45 = vpop.permute.xlu0 %2248  ;;  %v1215_v56 = vrot.slane %v1201_v40, %v6064_v10  ;;  %v547_v9 = vadd.f32 %v6688_v29, %v546_v8 }
 0x1e5   :  { %2384 = vst.msk [vmem:[#allocation2 + $0x30] sm:$0x3] %vm2371_vm6, %v2249_v45  ;;  %v5513_v24 = vpop.f32.mrf.mxu0 }
 0x1e6   :  { %2581 = vst.msk [vmem:[#allocation2 + $0x30] sm:$0x3] %vm2568_vm7, %v2446_v16  ;;  %2069 = vrot.lane.b32.xlu1 %v6484_v31, %s5737_s12  ;;  %2071 = vrot.lane.b32.xlu0 %v6489_v42, %s5737_s12  ;;  %v497_v31 = vadd.f32 %v6688_v29, %v6574_v7  ;;  %v6894_v7 = vcombine.high %v1215_v56, %v1215_v56  ;;  %v6920_v11 = vmax.f32 %v547_v9, 0.0 }
 0x1e7   :  { %2778 = vst.msk [vmem:[#allocation2 + $0x30] sm:$0x3] %vm2765_vm8, %v2643_v50  ;;  %v551_v50 = vpop.f32.mrf.mxu0 }
 0x1e8   :  { %v2830_v52 = vpop.permute.xlu1 %2829  ;;  %v2448_v53 = vpop.permute.xlu0 %2447  ;;  %v1388_v23 = vcombine.high %v6920_v11, %v6920_v11 }
 0x1e9   :  { %2970 = vst.msk [vmem:[#allocation2 + $0x1c] sm:$0x3] %vm2962_vm9, %v2830_v52  ;;  %v5516_v40 = vpop.f32.mrf.mxu0 }
 0x1ea   :  { %2582 = vst.msk [vmem:[#allocation2 + $0x34] sm:$0x3] %vm2568_vm7, %v2448_v53  ;;  %2073 = vrot.lane.b32.xlu1 %v6538_v34, %s5737_s12  ;;  %2847 = vrot.lane.b32.xlu0 %v6489_v42, %s5741_s5  ;;  %v672_v42 = vmax.f32 %v497_v31, 0.0  ;;  %v6933_v16 = vrot.slane %v1388_v23, %v6064_v10  ;;  %v552_v53 = vadd.f32 %v6688_v29, %v551_v50 }
 0x1ec   :  { %v3027_v19 = vpop.permute.xlu1 %3026  ;;  %v2645_v58 = vpop.permute.xlu0 %2644  ;;  %v1225_v60 = vrot.slane %v672_v42, %v6064_v10  ;;  %1816 = vst.msk [vmem:[#allocation2 + $0x8c] sm:$0x3] %vm1780_vm3, %v6933_v16  ;;  %v1218_v12 = vcombine.high %v672_v42, %v672_v42  ;;  %v683_v31 = vmax.f32 %v552_v53, 0.0  ;;  %v6961_v42 = vcombine.high %v6566_v32, %v6566_v32 }
 0x1ed   :  { %3167 = vst.msk [vmem:[#allocation2 + $0x1c] sm:$0x3] %vm3159_vm10, %v3027_v19 }
 0x1ee   :  { %2779 = vst.msk [vmem:[#allocation2 + $0x34] sm:$0x3] %vm2765_vm8, %v2645_v58  ;;  %2849 = vrot.lane.b32.xlu1 %v6538_v34, %s5741_s5  ;;  %2851 = vrot.lane.b32.xlu0 %v6542_v14, %s5741_s5  ;;  %v6907_v36 = vcombine.high %v1225_v60, %v1225_v60  ;;  %v1140_v34 = vrot.slane %v6449_v13, %v6064_v10 }
 0x1ef   :  { %v1232_v13 = vrot.slane %v1218_v12, %v6064_v10 }
 0x1f0   :  { %v1859_v57 = vpop.permute.xlu1 %1858  ;;  %v2056_v33 = vpop.permute.xlu0 %2055  ;;  %v1148_v19 = vcombine.high %v1140_v34, %v1140_v34 }
 0x1f1   :  { %1992 = vst.msk [vmem:[#allocation2 + $0x38] sm:$0x3] %vm1977_vm4, %v1859_v57  ;;  %v1405_v57 = vcombine.high %v683_v31, %v683_v31 }
 0x1f2   :  { %2189 = vst.msk [vmem:[#allocation2 + $0x38] sm:$0x3] %vm2174_vm5, %v2056_v33  ;;  %2853 = vrot.lane.b32.xlu1 %v6558_v27, %s5741_s5  ;;  %2264 = vrot.lane.b32.xlu0 %v6793_v55, %s5739_s22  ;;  %v6964_v33 = vrot.slane %v683_v31, %v6064_v10 }
 0x1f4   :  { %v2058_v62 = vpop.permute.xlu1 %2057  ;;  %v2832_v2 = vpop.permute.xlu0 %2831  ;;  %3237 = vst.msk [vmem:[#allocation2 + $0x72] sm:$0x3] %vm1780_vm3, %v6964_v33  ;;  %1817 = vst.msk [vmem:[#allocation2 + $0x90] sm:$0x3] %vm1780_vm3, %v6964_v33 }
 0x1f5   :  { %2971 = vst.msk [vmem:[#allocation2 + $0x20] sm:$0x3] %vm2962_vm9, %v2832_v2 }
 0x1f6   :  { %2266 = vrot.lane.b32.xlu1 %v1216_v46, %s5739_s22  ;;  %2268 = vrot.lane.b32.xlu0 %v6894_v7, %s5739_s22  ;;  %v6972_v46 = vrot.slane %v1405_v57, %v6064_v10 }
 0x1f8   :  { %v2834_v5 = vpop.permute.xlu1 %2833  ;;  %v1861_v55 = vpop.permute.xlu0 %1860  ;;  %3238 = vst.msk [vmem:[#allocation2 + $0x76] sm:$0x3] %vm1780_vm3, %v6972_v46  ;;  %1818 = vst.msk [vmem:[#allocation2 + $0x94] sm:$0x3] %vm1780_vm3, %v6972_v46 }
 0x1f9   :  { %2972 = vst.msk [vmem:[#allocation2 + $0x24] sm:$0x3] %vm2962_vm9, %v2834_v5 }
 0x1fa   :  { %1993 = vst.msk [vmem:[#allocation2 + $0x3c] sm:$0x3] %vm1977_vm4, %v1861_v55  ;;  %2270 = vrot.lane.b32.xlu1 %v6907_v36, %s5739_s22  ;;  %3044 = vrot.lane.b32.xlu0 %v6837_v28, %s5734_s27 }
 0x1fb   :  { %2190 = vst.msk [vmem:[#allocation2 + $0x3c] sm:$0x3] %vm2174_vm5, %v2058_v62 }
 0x1fc   :  { %v3031_v38 = vpop.permute.xlu1 %3030  ;;  %v3029_v21 = vpop.permute.xlu0 %3028 }
 0x1fd   :  { %3169 = vst.msk [vmem:[#allocation2 + $0x24] sm:$0x3] %vm3159_vm10, %v3031_v38  ;;  %3168 = vst.msk [vmem:[#allocation2 + $0x20] sm:$0x3] %vm3159_vm10, %v3029_v21 }
 0x1fe   :  { %3046 = vrot.lane.b32.xlu1 %v1182_v18, %s5734_s27  ;;  %3048 = vrot.lane.b32.xlu0 %v1183_v20, %s5734_s27 }
 0x200   :  { %v1863_v4 = vpop.permute.xlu1 %1862  ;;  %v2836_v28 = vpop.permute.xlu0 %2835 }
 0x201   :  { %1994 = vst.msk [vmem:[#allocation2 + $0x40] sm:$0x3] %vm1977_vm4, %v1863_v4 }
 0x202   :  { %2973 = vst.msk [vmem:[#allocation2 + $0x28] sm:$0x3] %vm2962_vm9, %v2836_v28  ;;  %3050 = vrot.lane.b32.xlu1 %v1199_v39, %s5734_s27  ;;  %2461 = vrot.lane.b32.xlu0 %v1140_v34, %s5738_s21 }
 0x204   :  { %v2838_v47 = vpop.permute.xlu1 %2837  ;;  %v2060_v48 = vpop.permute.xlu0 %2059 }
 0x205   :  { %2974 = vst.msk [vmem:[#allocation2 + $0x2c] sm:$0x3] %vm2962_vm9, %v2838_v47  ;;  %v502_v47 = vadd.f32 %v6688_v29, %v6670_v35 }
 0x206   :  { %2191 = vst.msk [vmem:[#allocation2 + $0x40] sm:$0x3] %vm2174_vm5, %v2060_v48  ;;  %2463 = vrot.lane.b32.xlu1 %v1215_v56, %s5738_s21  ;;  %2465 = vrot.lane.b32.xlu0 %v1225_v60, %s5738_s21  ;;  %v556_v60 = vpop.f32.mrf.mxu0 }
 0x207   :  { %v557_v62 = vadd.f32 %v6688_v29, %v556_v60 }
 0x208   :  { %v2062_v25 = vpop.permute.xlu1 %2061  ;;  %v3033_v49 = vpop.permute.xlu0 %3032 }
 0x209   :  { %3170 = vst.msk [vmem:[#allocation2 + $0x28] sm:$0x3] %vm3159_vm10, %v3033_v49  ;;  %v5519_v2 = vpop.f32.mrf.mxu0  ;;  %v684_v5 = vmax.f32 %v557_v62, 0.0  ;;  %v673_v49 = vmax.f32 %v502_v47, 0.0 }
 0x20a   :  { %2467 = vrot.lane.b32.xlu1 %v1232_v13, %s5738_s21  ;;  %1878 = vrot.lane.b32.xlu0 %v1182_v18, %s5736_s11  ;;  %v1234_v18 = vcombine.high %v1232_v13, %v1232_v13 }
 0x20b   :  { %v561_v55 = vpop.f32.mrf.mxu0  ;;  %v1422_v9 = vcombine.high %v684_v5, %v684_v5  ;;  %v6989_v24 = vrot.slane %v684_v5, %v6064_v10  ;;  %v1242_v31 = vrot.slane %v673_v49, %v6064_v10 }
 0x20c   :  { %v3035_v45 = vpop.permute.xlu1 %3034  ;;  %v1865_v52 = vpop.permute.xlu0 %1864  ;;  %v562_v38 = vadd.f32 %v6688_v29, %v561_v55 }
 0x20d   :  { %3171 = vst.msk [vmem:[#allocation2 + $0x2c] sm:$0x3] %vm3159_vm10, %v3035_v45  ;;  %v5522_v21 = vpop.f32.mrf.mxu0  ;;  %v6993_v34 = vrot.slane %v1422_v9, %v6064_v10  ;;  %v1284_v9 = vcombine.high %v6702_v51, %v6702_v51 }
 0x20e   :  { %1995 = vst.msk [vmem:[#allocation2 + $0x44] sm:$0x3] %vm1977_vm4, %v1865_v52  ;;  %1880 = vrot.lane.b32.xlu1 %v1183_v20, %s5736_s11  ;;  %1882 = vrot.lane.b32.xlu0 %v1199_v39, %s5736_s11  ;;  %v507_v52 = vadd.f32 %v6688_v29, %v6678_v59  ;;  %v1250_v59 = vcombine.high %v1242_v31, %v1242_v31 }
 0x20f   :  { %2192 = vst.msk [vmem:[#allocation2 + $0x44] sm:$0x3] %vm2174_vm5, %v2062_v25 }
 0x210   :  { %v1867_v58 = vpop.permute.xlu1 %1866  ;;  %v2064_v56 = vpop.permute.xlu0 %2063  ;;  %3239 = vst.msk [vmem:[#allocation2 + $0x7a] sm:$0x3] %vm1780_vm3, %v6989_v24  ;;  %1819 = vst.msk [vmem:[#allocation2 + $0x98] sm:$0x3] %vm1780_vm3, %v6989_v24 }
 0x211   :  { %1996 = vst.msk [vmem:[#allocation2 + $0x48] sm:$0x3] %vm1977_vm4, %v1867_v58 }
 0x212   :  { %2193 = vst.msk [vmem:[#allocation2 + $0x48] sm:$0x3] %vm2174_vm5, %v2064_v56  ;;  %1884 = vrot.lane.b32.xlu1 %v6961_v42, %s5736_s11  ;;  %2658 = vrot.lane.b32.xlu0 %v1148_v19, %s5740_s23  ;;  %v674_v19 = vmax.f32 %v507_v52, 0.0  ;;  %v7112_v52 = vcombine.high %v6731_v61, %v6731_v61 }
 0x213   :  { %3240 = vst.msk [vmem:[#allocation2 + $0x7e] sm:$0x3] %vm1780_vm3, %v6993_v34  ;;  %1820 = vst.msk [vmem:[#allocation2 + $0x9c] sm:$0x3] %vm1780_vm3, %v6993_v34 }
 0x214   :  { %v2066_v3 = vpop.permute.xlu1 %2065  ;;  %v2840_v8 = vpop.permute.xlu0 %2839  ;;  %v1259_v57 = vrot.slane %v674_v19, %v6064_v10 }
 0x215   :  { %2975 = vst.msk [vmem:[#allocation2 + $0x30] sm:$0x3] %vm2962_vm9, %v2840_v8 }
 0x216   :  { %2660 = vrot.lane.b32.xlu1 %v6894_v7, %s5740_s23  ;;  %2662 = vrot.lane.b32.xlu0 %v6907_v36, %s5740_s23  ;;  %v685_v7 = vmax.f32 %v562_v38, 0.0  ;;  %v566_v36 = vpop.f32.mrf.mxu0  ;;  %v7069_v2 = vcombine.high %v1259_v57, %v1259_v57  ;;  %v1285_v38 = vcombine.high %v6710_v54, %v6710_v54 }
 0x217   :  { %v567_v4 = vadd.f32 %v6688_v29, %v566_v36 }
 0x218   :  { %v2842_v20 = vpop.permute.xlu1 %2841  ;;  %v1869_v23 = vpop.permute.xlu0 %1868  ;;  %v1439_v28 = vcombine.high %v685_v7, %v685_v7  ;;  %v7011_v39 = vrot.slane %v685_v7, %v6064_v10 }
 0x219   :  { %2976 = vst.msk [vmem:[#allocation2 + $0x34] sm:$0x3] %vm2962_vm9, %v2842_v20  ;;  %v5525_v12 = vpop.f32.mrf.mxu0  ;;  %v7015_v25 = vmax.f32 %v567_v4, 0.0 }
 0x21a   :  { %1997 = vst.msk [vmem:[#allocation2 + $0x4c] sm:$0x3] %vm1977_vm4, %v1869_v23  ;;  %2664 = vrot.lane.b32.xlu1 %v1234_v18, %s5740_s23  ;;  %2075 = vrot.lane.b32.xlu0 %v6542_v14, %s5737_s12  ;;  %v7020_v14 = vrot.slane %v1439_v28, %v6064_v10 }
 0x21b   :  { %2194 = vst.msk [vmem:[#allocation2 + $0x4c] sm:$0x3] %vm2174_vm5, %v2066_v3  ;;  %v7032_v35 = vrot.slane %v7015_v25, %v6064_v10 }
 0x21c   :  { %v3039_v48 = vpop.permute.xlu1 %3038  ;;  %v3037_v13 = vpop.permute.xlu0 %3036  ;;  %3241 = vst.msk [vmem:[#allocation2 + $0x82] sm:$0x3] %vm1780_vm3, %v7011_v39  ;;  %1821 = vst.msk [vmem:[#allocation2 + $0xa0] sm:$0x3] %vm1780_vm3, %v7011_v39 }
 0x21d   :  { %3173 = vst.msk [vmem:[#allocation2 + $0x34] sm:$0x3] %vm3159_vm10, %v3039_v48  ;;  %3172 = vst.msk [vmem:[#allocation2 + $0x30] sm:$0x3] %vm3159_vm10, %v3037_v13 }
 0x21e   :  { %2077 = vrot.lane.b32.xlu1 %v6558_v27, %s5737_s12  ;;  %2079 = vrot.lane.b32.xlu0 %v6566_v32, %s5737_s12  ;;  %3242 = vst.msk [vmem:[#allocation2 + $0x86] sm:$0x3] %vm1780_vm3, %v7020_v14  ;;  %1822 = vst.msk [vmem:[#allocation2 + $0xa4] sm:$0x3] %vm1780_vm3, %v7020_v14  ;;  %v1235_v27 = vcombine.high %v673_v49, %v673_v49 }
 0x21f   :  { %3243 = vst.msk [vmem:[#allocation2 + $0x8a] sm:$0x3] %vm1780_vm3, %v7032_v35 }
 0x220   :  { %v1871_v50 = vpop.permute.xlu1 %1870  ;;  %v2253_v45 = vpop.permute.xlu0 %2252 }
 0x221   :  { %1998 = vst.msk [vmem:[#allocation2 + $0x50] sm:$0x3] %vm1977_vm4, %v1871_v50 }
 0x222   :  { %2386 = vst.msk [vmem:[#allocation2 + $0x38] sm:$0x3] %vm2371_vm6, %v2253_v45  ;;  %2081 = vrot.lane.b32.xlu1 %v6584_v43, %s5737_s12  ;;  %2855 = vrot.lane.b32.xlu0 %v6566_v32, %s5741_s5  ;;  %v1249_v43 = vrot.slane %v1235_v27, %v6064_v10 }
 0x224   :  { %v2450_v53 = vpop.permute.xlu1 %2449  ;;  %v2452_v40 = vpop.permute.xlu0 %2451  ;;  %v7061_v56 = vcombine.high %v1249_v43, %v1249_v43 }
 0x225   :  { %2583 = vst.msk [vmem:[#allocation2 + $0x38] sm:$0x3] %vm2568_vm7, %v2450_v53 }
 0x226   :  { %2857 = vrot.lane.b32.xlu1 %v6702_v51, %s5741_s5  ;;  %2859 = vrot.lane.b32.xlu0 %v6710_v54, %s5741_s5  ;;  %v1252_v51 = vcombine.high %v674_v19, %v674_v19 }
 0x227   :  { %v7094_v7 = vpop.f32.mrf.mxu0 }
 0x228   :  { %v2255_v32 = vpop.permute.xlu1 %2254  ;;  %v2649_v58 = vpop.permute.xlu0 %2648  ;;  %v1266_v36 = vrot.slane %v1252_v51, %v6064_v10 }
 0x229   :  { %2387 = vst.msk [vmem:[#allocation2 + $0x3c] sm:$0x3] %vm2371_vm6, %v2255_v32  ;;  %v5528_v12 = vpop.f32.mrf.mxu0  ;;  %v5688_v32 = vld.sshfl [vmem:[#allocation2 + $0x18] sm:$0xff pattern:$0x76325410] }
 0x22a   :  { %2584 = vst.msk [vmem:[#allocation2 + $0x3c] sm:$0x3] %vm2568_vm7, %v2452_v40  ;;  %2861 = vrot.lane.b32.xlu1 %v6721_v30, %s5741_s5  ;;  %2272 = vrot.lane.b32.xlu0 %v1234_v18, %s5739_s22  ;;  %v1301_v18 = vcombine.high %v6721_v30, %v6721_v30 }
 0x22b   :  { %2781 = vst.msk [vmem:[#allocation2 + $0x3c] sm:$0x3] %vm2765_vm8, %v2649_v58  ;;  %v7102_v47 = vpop.f32.mrf.mxu0 }
 0x22c   :  { %v2647_v60 = vpop.permute.xlu1 %2646  ;;  %v2257_v62 = vpop.permute.xlu0 %2256 }
 0x22d   :  { %2780 = vst.msk [vmem:[#allocation2 + $0x38] sm:$0x3] %vm2765_vm8, %v2647_v60  ;;  %v5531_v49 = vpop.f32.mrf.mxu0  ;;  %v5689_v60 = vld.sshfl [vmem:[#allocation2 + $0x10] sm:$0xff pattern:$0x76325410] }
 0x22e   :  { %2388 = vst.msk [vmem:[#allocation2 + $0x40] sm:$0x3] %vm2371_vm6, %v2257_v62  ;;  %2274 = vrot.lane.b32.xlu1 %v1250_v59, %s5739_s22  ;;  %2276 = vrot.lane.b32.xlu0 %v7061_v56, %s5739_s22 }
 0x22f   :  { %v7108_v50 = vpop.f32.mrf.mxu0 }
 0x230   :  { %v2454_v3 = vpop.permute.xlu1 %2453  ;;  %v2456_v8 = vpop.permute.xlu0 %2455 }
 0x231   :  { %2585 = vst.msk [vmem:[#allocation2 + $0x40] sm:$0x3] %vm2568_vm7, %v2454_v3  ;;  %v5534_v53 = vpop.f32.mrf.mxu0 }
 0x232   :  { %2278 = vrot.lane.b32.xlu1 %v7069_v2, %s5739_s22  ;;  %3052 = vrot.lane.b32.xlu0 %v6961_v42, %s5734_s27 }
 0x233   :  { %v586_v40 = vpop.f32.mrf.mxu0 }
 0x234   :  { %v2259_v5 = vpop.permute.xlu1 %2258  ;;  %v2261_v55 = vpop.permute.xlu0 %2260  ;;  %v587_v19 = vadd.f32 %v6688_v29, %v586_v40 }
 0x235   :  { %2389 = vst.msk [vmem:[#allocation2 + $0x44] sm:$0x3] %vm2371_vm6, %v2259_v5  ;;  %2390 = vst.msk [vmem:[#allocation2 + $0x48] sm:$0x3] %vm2371_vm6, %v2261_v55  ;;  %v5537_v58 = vpop.f32.mrf.mxu0 }
 0x236   :  { %2586 = vst.msk [vmem:[#allocation2 + $0x44] sm:$0x3] %vm2568_vm7, %v2456_v8  ;;  %3054 = vrot.lane.b32.xlu1 %v1284_v9, %s5734_s27  ;;  %3056 = vrot.lane.b32.xlu0 %v1285_v38, %s5734_s27  ;;  %v5690_v55 = vld.sshfl [vmem:[#allocation2 + $0x28] sm:$0xff pattern:$0x76325410] }
 0x238   :  { %v2651_v21 = vpop.permute.xlu1 %2650  ;;  %v2653_v42 = vpop.permute.xlu0 %2652 }
 0x239   :  { %2782 = vst.msk [vmem:[#allocation2 + $0x40] sm:$0x3] %vm2765_vm8, %v2651_v21  ;;  %2783 = vst.msk [vmem:[#allocation2 + $0x44] sm:$0x3] %vm2765_vm8, %v2653_v42 }
 0x23a   :  { %3058 = vrot.lane.b32.xlu1 %v1301_v18, %s5734_s27  ;;  %2469 = vrot.lane.b32.xlu0 %v1242_v31, %s5738_s21 }
 0x23c   :  { %v2458_v20 = vpop.permute.xlu1 %2457  ;;  %v2460_v23 = vpop.permute.xlu0 %2459 }
 0x23d   :  { %2587 = vst.msk [vmem:[#allocation2 + $0x48] sm:$0x3] %vm2568_vm7, %v2458_v20 }
 0x23e   :  { %2471 = vrot.lane.b32.xlu1 %v1249_v43, %s5738_s21  ;;  %2473 = vrot.lane.b32.xlu0 %v1259_v57, %s5738_s21  ;;  %v690_v57 = vmax.f32 %v587_v19, 0.0 }
 0x240   :  { %v2263_v4 = vpop.permute.xlu1 %2262  ;;  %v2657_v28 = vpop.permute.xlu0 %2656  ;;  %v1524_v8 = vcombine.high %v690_v57, %v690_v57  ;;  %v7127_v5 = vrot.slane %v690_v57, %v6064_v10 }
 0x241   :  { %2391 = vst.msk [vmem:[#allocation2 + $0x4c] sm:$0x3] %vm2371_vm6, %v2263_v4 }
 0x242   :  { %2588 = vst.msk [vmem:[#allocation2 + $0x4c] sm:$0x3] %vm2568_vm7, %v2460_v23  ;;  %2475 = vrot.lane.b32.xlu1 %v1266_v36, %s5738_s21  ;;  %1886 = vrot.lane.b32.xlu0 %v1284_v9, %s5736_s11  ;;  %v5691_v9 = vld.sshfl [vmem:[#allocation2 + $0x20] sm:$0xff pattern:$0x76325410]  ;;  %v3390_v23 = vcombine.low %v5689_v60, %v5688_v32 }
 0x243   :  { %2785 = vst.msk [vmem:[#allocation2 + $0x4c] sm:$0x3] %vm2765_vm8, %v2657_v28  ;;  %v3408_v4 = vcombine.low %v5691_v9, %v5690_v55 }
 0x244   :  { %v2655_v48 = vpop.permute.xlu1 %2654  ;;  %v2844_v13 = vpop.permute.xlu0 %2843  ;;  %1823 = vst.msk [vmem:[#allocation2 + $0xa8] sm:$0x3] %vm1780_vm3, %v7127_v5 }
 0x245   :  { %2784 = vst.msk [vmem:[#allocation2 + $0x48] sm:$0x3] %vm2765_vm8, %v2655_v48 }
 0x246   :  { %2977 = vst.msk [vmem:[#allocation2 + $0x38] sm:$0x3] %vm2962_vm9, %v2844_v13  ;;  %1888 = vrot.lane.b32.xlu1 %v1285_v38, %s5736_s11  ;;  %1890 = vrot.lane.b32.xlu0 %v1301_v18, %s5736_s11  ;;  %v5693_v18 = vld.sshfl [vmem:[#allocation2 + $0x30] sm:$0xff pattern:$0x76325410] }
 0x248   :  { %v2846_v45 = vpop.permute.xlu1 %2845  ;;  %v3041_v27 = vpop.permute.xlu0 %3040 }
 0x249   :  { %2978 = vst.msk [vmem:[#allocation2 + $0x3c] sm:$0x3] %vm2962_vm9, %v2846_v45 }
 0x24a   :  { %3174 = vst.msk [vmem:[#allocation2 + $0x38] sm:$0x3] %vm3159_vm10, %v3041_v27  ;;  %1892 = vrot.lane.b32.xlu1 %v7112_v52, %s5736_s11  ;;  %2666 = vrot.lane.b32.xlu0 %v1250_v59, %s5740_s23  ;;  %v1268_v59 = vcombine.high %v1266_v36, %v1266_v36  ;;  %v3409_v36 = vcombine.high %v5691_v9, %v5690_v55 }
 0x24b   :  { %v1335_v55 = vcombine.high %v6844_v41, %v6844_v41 }
 0x24c   :  { %v3043_v31 = vpop.permute.xlu1 %3042  ;;  %v1873_v43 = vpop.permute.xlu0 %1872 }
 0x24d   :  { %3175 = vst.msk [vmem:[#allocation2 + $0x3c] sm:$0x3] %vm3159_vm10, %v3043_v31 }
 0x24e   :  { %1999 = vst.msk [vmem:[#allocation2 + $0x54] sm:$0x3] %vm1977_vm4, %v1873_v43  ;;  %2668 = vrot.lane.b32.xlu1 %v7061_v56, %s5740_s23  ;;  %2670 = vrot.lane.b32.xlu0 %v7069_v2, %s5740_s23  ;;  %v7135_v56 = vrot.slane %v1524_v8, %v6064_v10  ;;  %v532_v2 = vadd.f32 %v6688_v29, %v6833_v26 }
 0x250   :  { %v1875_v62 = vpop.permute.xlu1 %1874  ;;  %v1877_v3 = vpop.permute.xlu0 %1876  ;;  %3244 = vst.msk [vmem:[#allocation2 + $0x8e] sm:$0x3] %vm1780_vm3, %v7135_v56  ;;  %1824 = vst.msk [vmem:[#allocation2 + $0xac] sm:$0x3] %vm1780_vm3, %v7135_v56  ;;  %v679_v26 = vmax.f32 %v532_v2, 0.0 }
 0x251   :  { %2000 = vst.msk [vmem:[#allocation2 + $0x58] sm:$0x3] %vm1977_vm4, %v1875_v62  ;;  %2001 = vst.msk [vmem:[#allocation2 + $0x5c] sm:$0x3] %vm1977_vm4, %v1877_v3  ;;  %v596_v62 = vpop.f32.mrf.mxu1 }
 0x252   :  { %2672 = vrot.lane.b32.xlu1 %v1268_v59, %s5740_s23  ;;  %2083 = vrot.lane.b32.xlu0 %v6710_v54, %s5737_s12  ;;  %v3391_v54 = vcombine.high %v5689_v60, %v5688_v32  ;;  %v1337_v37 = vcombine.high %v679_v26, %v679_v26  ;;  %v1344_v12 = vrot.slane %v679_v26, %v6064_v10 }
 0x253   :  { %v1318_v60 = vcombine.high %v6819_v15, %v6819_v15  ;;  %v1319_v59 = vcombine.high %v6827_v22, %v6827_v22  ;;  %v5543_v9 = vpop.f32.mrf.mxu1 }
 0x254   :  { %v3644_v38 = vpop.permute.xlu1 %3643  ;;  %v2068_v21 = vpop.permute.xlu0 %2067  ;;  %v5692_v42 = vld.sshfl [vmem:[#allocation2 + $0x38] sm:$0xff pattern:$0x76325410]  ;;  %v7178_v45 = vcombine.high %v1344_v12, %v1344_v12 }
 0x255   :  { %2195 = vst.msk [vmem:[#allocation2 + $0x50] sm:$0x3] %vm2174_vm5, %v2068_v21  ;;  %3758 = vmatpush2.msra.mxu1 %v3644_v38  ;;  %v3427_v28 = vcombine.high %v5693_v18, %v5692_v42  ;;  %v3426_v49 = vcombine.low %v5693_v18, %v5692_v42 }
 0x256   :  { %2085 = vrot.lane.b32.xlu1 %v6721_v30, %s5737_s12  ;;  %3760 = vmatmul.mubr.f32.vlgmr.msra.gmra.mxu1 %v3372_v6  ;;  %v537_v30 = vadd.f32 %v6688_v29, %v6860_v17  ;;  %v1336_v17 = vcombine.high %v6851_v44, %v6851_v44 }
 0x257   :  { %2087 = vrot.lane.b32.xlu0 %v6731_v61, %s5737_s12  ;;  %5187 = vmatprep.mubr.msk.f32.mxu1 %vm3668_vm11, %v3391_v54  ;;  %v601_v54 = vpop.f32.mrf.mxu1 }
 0x258   :  { %v2070_v51 = vpop.permute.xlu1 %2069  ;;  %v2072_v20 = vpop.permute.xlu0 %2071  ;;  %v7168_v29 = vmax.f32 %v537_v30, 0.0 }
 0x259   :  { %2196 = vst.msk [vmem:[#allocation2 + $0x54] sm:$0x3] %vm2174_vm5, %v2070_v51  ;;  %2197 = vst.msk [vmem:[#allocation2 + $0x58] sm:$0x3] %vm2174_vm5, %v2072_v20 }
 0x25a   :  { %2089 = vrot.lane.b32.xlu1 %v6819_v15, %s5737_s12  ;;  %3765 = vmatmul.mubr.f32.gmra.mxu1 %v3390_v23  ;;  %v1361_v27 = vrot.slane %v7168_v29, %v6064_v10  ;;  %v1354_v42 = vcombine.high %v7168_v29, %v7168_v29  ;;  %v5546_v23 = vpop.f32.mrf.mxu1 }
 0x25b   :  { %2863 = vrot.lane.b32.xlu0 %v6731_v61, %s5741_s5  ;;  %5188 = vmatprep.mubr.msk.f32.mxu1 %vm3668_vm11, %v3409_v36  ;;  %v1351_v61 = vrot.slane %v1337_v37, %v6064_v10 }
 0x25c   :  { %v2074_v0 = vpop.permute.xlu1 %2073  ;;  %v2848_v6 = vpop.permute.xlu0 %2847  ;;  %v7189_v43 = vcombine.high %v1361_v27, %v1361_v27  ;;  %v1368_v37 = vrot.slane %v1354_v42, %v6064_v10 }
 0x25d   :  { %2198 = vst.msk [vmem:[#allocation2 + $0x5c] sm:$0x3] %vm2174_vm5, %v2074_v0  ;;  %v7184_v53 = vcombine.high %v1351_v61, %v1351_v61  ;;  %v7242_v30 = vpop.f32.mrf.mxu1 }
 0x25e   :  { %2979 = vst.msk [vmem:[#allocation2 + $0x40] sm:$0x3] %vm2962_vm9, %v2848_v6  ;;  %2865 = vrot.lane.b32.xlu1 %v6819_v15, %s5741_s5  ;;  %3770 = vmatmul.mubr.f32.gmra.mxu1 %v3408_v4 }
 0x25f   :  { %2867 = vrot.lane.b32.xlu0 %v6827_v22, %s5741_s5  ;;  %5189 = vmatprep.mubr.msk.f32.mxu1 %vm3668_vm11, %v3427_v28 }
 0x260   :  { %v2850_v48 = vpop.permute.xlu1 %2849  ;;  %v2852_v13 = vpop.permute.xlu0 %2851 }
 0x261   :  { %2980 = vst.msk [vmem:[#allocation2 + $0x44] sm:$0x3] %vm2962_vm9, %v2850_v48  ;;  %2981 = vst.msk [vmem:[#allocation2 + $0x48] sm:$0x3] %vm2962_vm9, %v2852_v13 }
 0x262   :  { %2869 = vrot.lane.b32.xlu1 %v6844_v41, %s5741_s5  ;;  %3775 = vmatmul.mubr.f32.gmra.mxu1 %v3426_v49 }
 0x263   :  { %2280 = vrot.lane.b32.xlu0 %v1336_v17, %s5739_s22  ;;  %v591_v17 = vpop.f32.mrf.mxu0 }
 0x264   :  { %v2854_v40 = vpop.permute.xlu1 %2853  ;;  %v2265_v31 = vpop.permute.xlu0 %2264 }
 0x265   :  { %2982 = vst.msk [vmem:[#allocation2 + $0x4c] sm:$0x3] %vm2962_vm9, %v2854_v40 }
 0x266   :  { %2392 = vst.msk [vmem:[#allocation2 + $0x50] sm:$0x3] %vm2371_vm6, %v2265_v31  ;;  %2282 = vrot.lane.b32.xlu1 %v7178_v45, %s5739_s22  ;;  %v5540_v31 = vpop.f32.mrf.mxu0 }
 0x267   :  { %2284 = vrot.lane.b32.xlu0 %v7184_v53, %s5739_s22 }
 0x268   :  { %v2267_v19 = vpop.permute.xlu1 %2266  ;;  %v2269_v32 = vpop.permute.xlu0 %2268 }
 0x269   :  { %2393 = vst.msk [vmem:[#allocation2 + $0x54] sm:$0x3] %vm2371_vm6, %v2267_v19  ;;  %2394 = vst.msk [vmem:[#allocation2 + $0x58] sm:$0x3] %vm2371_vm6, %v2269_v32  ;;  %v7269_v32 = vcombine.high %v6933_v16, %v6933_v16 }
 0x26a   :  { %2286 = vrot.lane.b32.xlu1 %v7189_v43, %s5739_s22 }
 0x26b   :  { %3060 = vrot.lane.b32.xlu0 %v7112_v52, %s5734_s27  ;;  %v7212_v52 = vld [vmem:[%s8557_s3] ss:$0 sm:$0xff] }
 0x26c   :  { %v2271_v58 = vpop.permute.xlu1 %2270  ;;  %v3045_v57 = vpop.permute.xlu0 %3044  ;;  %v597_v3 = vadd.f32 %v7212_v52, %v596_v62  ;;  %v602_v51 = vadd.f32 %v7212_v52, %v601_v54  ;;  %v592_v40 = vadd.f32 %v7212_v52, %v591_v17 }
 0x26d   :  { %2395 = vst.msk [vmem:[#allocation2 + $0x5c] sm:$0x3] %vm2371_vm6, %v2271_v58 }
 0x26e   :  { %3176 = vst.msk [vmem:[#allocation2 + $0x40] sm:$0x3] %vm3159_vm10, %v3045_v57  ;;  %3062 = vrot.lane.b32.xlu1 %v1318_v60, %s5734_s27  ;;  %v692_v2 = vmax.f32 %v597_v3, 0.0  ;;  %v693_v36 = vmax.f32 %v602_v51, 0.0  ;;  %v691_v58 = vmax.f32 %v592_v40, 0.0 }
 0x26f   :  { %3064 = vrot.lane.b32.xlu0 %v1319_v59, %s5734_s27 }
 0x270   :  { %v3047_v15 = vpop.permute.xlu1 %3046  ;;  %v3049_v8 = vpop.permute.xlu0 %3048  ;;  %v1558_v38 = vcombine.high %v692_v2, %v692_v2  ;;  %v7222_v21 = vrot.slane %v692_v2, %v6064_v10  ;;  %v1575_v4 = vcombine.high %v693_v36, %v693_v36  ;;  %v7246_v28 = vrot.slane %v693_v36, %v6064_v10 }
 0x271   :  { %3177 = vst.msk [vmem:[#allocation2 + $0x44] sm:$0x3] %vm3159_vm10, %v3047_v15  ;;  %3178 = vst.msk [vmem:[#allocation2 + $0x48] sm:$0x3] %vm3159_vm10, %v3049_v8  ;;  %v1541_v8 = vcombine.high %v691_v58, %v691_v58 }
 0x272   :  { %3066 = vrot.lane.b32.xlu1 %v1335_v55, %s5734_s27  ;;  %v7230_v20 = vrot.slane %v1558_v38, %v6064_v10  ;;  %3247 = vst.msk [vmem:[#allocation2 + $0x9a] sm:$0x3] %vm1780_vm3, %v7222_v21  ;;  %1827 = vst.msk [vmem:[#allocation2 + $0xb8] sm:$0x3] %vm1780_vm3, %v7222_v21 }
 0x273   :  { %2477 = vrot.lane.b32.xlu0 %v1344_v12, %s5738_s21  ;;  %v5549_v12 = vpop.f32.mrf.mxu1  ;;  %3249 = vst.msk [vmem:[#allocation2 + $0xa2] sm:$0x3] %vm1780_vm3, %v7246_v28  ;;  %1829 = vst.msk [vmem:[#allocation2 + $0xc0] sm:$0x3] %vm1780_vm3, %v7246_v28 }
 0x274   :  { %v3051_v26 = vpop.permute.xlu1 %3050  ;;  %v2462_v18 = vpop.permute.xlu0 %2461  ;;  %3248 = vst.msk [vmem:[#allocation2 + $0x9e] sm:$0x3] %vm1780_vm3, %v7230_v20  ;;  %1828 = vst.msk [vmem:[#allocation2 + $0xbc] sm:$0x3] %vm1780_vm3, %v7230_v20 }
 0x275   :  { %3179 = vst.msk [vmem:[#allocation2 + $0x4c] sm:$0x3] %vm3159_vm10, %v3051_v26  ;;  %v7259_v48 = vpop.f32.mrf.mxu1  ;;  %v7303_v26 = vcombine.high %v1368_v37, %v1368_v37 }
 0x276   :  { %2589 = vst.msk [vmem:[#allocation2 + $0x50] sm:$0x3] %vm2568_vm7, %v2462_v18  ;;  %2479 = vrot.lane.b32.xlu1 %v1351_v61, %s5738_s21  ;;  %v7252_v61 = vrot.slane %v1575_v4, %v6064_v10 }
 0x277   :  { %2481 = vrot.lane.b32.xlu0 %v1361_v27, %s5738_s21  ;;  %v5552_v19 = vpop.f32.mrf.mxu1 }
 0x278   :  { %v2464_v0 = vpop.permute.xlu1 %2463  ;;  %v2466_v6 = vpop.permute.xlu0 %2465  ;;  %v5694_v29 = vld.sshfl [vmem:[#allocation2 + $0x40] sm:$0xff pattern:$0x76325410]  ;;  %3250 = vst.msk [vmem:[#allocation2 + $0xa6] sm:$0x3] %vm1780_vm3, %v7252_v61 }
 0x279   :  { %2590 = vst.msk [vmem:[#allocation2 + $0x54] sm:$0x3] %vm2568_vm7, %v2464_v0  ;;  %2591 = vst.msk [vmem:[#allocation2 + $0x58] sm:$0x3] %vm2568_vm7, %v2466_v6  ;;  %v7272_v57 = vpop.f32.mrf.mxu1 }
 0x27a   :  { %2483 = vrot.lane.b32.xlu1 %v1368_v37, %s5738_s21 }
 0x27b   :  { %1894 = vrot.lane.b32.xlu0 %v1318_v60, %s5736_s11  ;;  %v5555_v2 = vpop.f32.mrf.mxu1 }
 0x27c   :  { %v2468_v13 = vpop.permute.xlu1 %2467  ;;  %v1879_v49 = vpop.permute.xlu0 %1878  ;;  %v5695_v27 = vld.sshfl [vmem:[#allocation2 + $0x48] sm:$0xff pattern:$0x76325410] }
 0x27d   :  { %2592 = vst.msk [vmem:[#allocation2 + $0x5c] sm:$0x3] %vm2568_vm7, %v2468_v13  ;;  %v3445_v3 = vcombine.high %v5694_v29, %v5695_v27  ;;  %v3444_v15 = vcombine.low %v5694_v29, %v5695_v27  ;;  %v7291_v9 = vpop.f32.mrf.mxu1  ;;  %v542_v29 = vadd.f32 %v7212_v52, %v6904_v63 }
 0x27e   :  { %2002 = vst.msk [vmem:[#allocation2 + $0x60] sm:$0x3] %vm1977_vm4, %v1879_v49  ;;  %1896 = vrot.lane.b32.xlu1 %v1319_v59, %s5736_s11  ;;  %v7277_v59 = vrot.slane %v691_v58, %v6064_v10 }
 0x27f   :  { %1898 = vrot.lane.b32.xlu0 %v1335_v55, %s5736_s11  ;;  %5190 = vmatprep.mubr.msk.f32.mxu1 %vm3668_vm11, %v3445_v3  ;;  %v7283_v55 = vrot.slane %v1541_v8, %v6064_v10  ;;  %v681_v19 = vmax.f32 %v542_v29, 0.0 }
 0x280   :  { %v1881_v60 = vpop.permute.xlu1 %1880  ;;  %v1883_v62 = vpop.permute.xlu0 %1882  ;;  %3780 = vmatmul.mubr.f32.gmra.mxu1 %v3444_v15  ;;  %3245 = vst.msk [vmem:[#allocation2 + $0x92] sm:$0x3] %vm1780_vm3, %v7277_v59  ;;  %1825 = vst.msk [vmem:[#allocation2 + $0xb0] sm:$0x3] %vm1780_vm3, %v7277_v59 }
 0x281   :  { %2003 = vst.msk [vmem:[#allocation2 + $0x64] sm:$0x3] %vm1977_vm4, %v1881_v60  ;;  %2004 = vst.msk [vmem:[#allocation2 + $0x68] sm:$0x3] %vm1977_vm4, %v1883_v62 }
 0x282   :  { %1900 = vrot.lane.b32.xlu1 %v7269_v32, %s5736_s11  ;;  %3246 = vst.msk [vmem:[#allocation2 + $0x96] sm:$0x3] %vm1780_vm3, %v7283_v55  ;;  %1826 = vst.msk [vmem:[#allocation2 + $0xb4] sm:$0x3] %vm1780_vm3, %v7283_v55 }
 0x283   :  { %2674 = vrot.lane.b32.xlu0 %v7178_v45, %s5740_s23  ;;  %v5558_v45 = vpop.f32.mrf.mxu1 }
 0x284   :  { %v1885_v38 = vpop.permute.xlu1 %1884  ;;  %v2659_v54 = vpop.permute.xlu0 %2658 }
 0x285   :  { %2005 = vst.msk [vmem:[#allocation2 + $0x6c] sm:$0x3] %vm1977_vm4, %v1885_v38  ;;  %v626_v42 = vpop.f32.mrf.mxu1 }
 0x286   :  { %2786 = vst.msk [vmem:[#allocation2 + $0x50] sm:$0x3] %vm2765_vm8, %v2659_v54  ;;  %2676 = vrot.lane.b32.xlu1 %v7184_v53, %s5740_s23  ;;  %v627_v23 = vadd.f32 %v7212_v52, %v626_v42  ;;  %v1371_v54 = vcombine.high %v681_v19, %v681_v19 }
 0x287   :  { %2678 = vrot.lane.b32.xlu0 %v7189_v43, %s5740_s23  ;;  %v5561_v36 = vpop.f32.mrf.mxu1 }
 0x288   :  { %v2661_v18 = vpop.permute.xlu1 %2660  ;;  %v2663_v51 = vpop.permute.xlu0 %2662  ;;  %v698_v0 = vmax.f32 %v627_v23, 0.0 }
 0x289   :  { %2787 = vst.msk [vmem:[#allocation2 + $0x54] sm:$0x3] %vm2765_vm8, %v2661_v18  ;;  %2788 = vst.msk [vmem:[#allocation2 + $0x58] sm:$0x3] %vm2765_vm8, %v2663_v51  ;;  %v631_v53 = vpop.f32.mrf.mxu1  ;;  %v1378_v18 = vrot.slane %v681_v19, %v6064_v10 }
 0x28a   :  { %2680 = vrot.lane.b32.xlu1 %v7303_v26, %s5740_s23  ;;  %v1660_v6 = vcombine.high %v698_v0, %v698_v0  ;;  %v7313_v4 = vrot.slane %v698_v0, %v6064_v10  ;;  %v632_v12 = vadd.f32 %v7212_v52, %v631_v53  ;;  %v1385_v0 = vrot.slane %v1371_v54, %v6064_v10 }
 0x28b   :  { %2091 = vrot.lane.b32.xlu0 %v6827_v22, %s5737_s12  ;;  %v5564_v17 = vpop.f32.mrf.mxu1  ;;  %v1386_v53 = vcombine.high %v1378_v18, %v1378_v18 }
 0x28c   :  { %v2665_v43 = vpop.permute.xlu1 %2664  ;;  %v2076_v37 = vpop.permute.xlu0 %2075  ;;  %v7323_v22 = vrot.slane %v1660_v6, %v6064_v10  ;;  %3251 = vst.msk [vmem:[#allocation2 + $0xaa] sm:$0x3] %vm1780_vm3, %v7313_v4  ;;  %v699_v13 = vmax.f32 %v632_v12, 0.0  ;;  %v7375_v6 = vcombine.high %v1385_v0, %v1385_v0  ;;  %v1471_v12 = vcombine.high %v7032_v35, %v7032_v35 }
 0x28d   :  { %2789 = vst.msk [vmem:[#allocation2 + $0x5c] sm:$0x3] %vm2765_vm8, %v2665_v43  ;;  %v636_v49 = vpop.f32.mrf.mxu1 }
 0x28e   :  { %2199 = vst.msk [vmem:[#allocation2 + $0x60] sm:$0x3] %vm2174_vm5, %v2076_v37  ;;  %2093 = vrot.lane.b32.xlu1 %v6844_v41, %s5737_s12  ;;  %v1677_v40 = vcombine.high %v699_v13, %v699_v13  ;;  %v7332_v31 = vrot.slane %v699_v13, %v6064_v10  ;;  %v637_v41 = vadd.f32 %v7212_v52, %v636_v49 }
 0x28f   :  { %2095 = vrot.lane.b32.xlu0 %v6851_v44, %s5737_s12  ;;  %3252 = vst.msk [vmem:[#allocation2 + $0xae] sm:$0x3] %vm1780_vm3, %v7323_v22  ;;  %v5567_v58 = vpop.f32.mrf.mxu1  ;;  %v1420_v49 = vcombine.high %v6964_v33, %v6964_v33 }
 0x290   :  { %v2078_v63 = vpop.permute.xlu1 %2077  ;;  %v2080_v27 = vpop.permute.xlu0 %2079  ;;  %v7340_v44 = vrot.slane %v1677_v40, %v6064_v10  ;;  %3253 = vst.msk [vmem:[#allocation2 + $0xb2] sm:$0x3] %vm1780_vm3, %v7332_v31  ;;  %v700_v60 = vmax.f32 %v637_v41, 0.0  ;;  %v1395_v58 = vrot.slane %v6920_v11, %v6064_v10 }
 0x291   :  { %2200 = vst.msk [vmem:[#allocation2 + $0x64] sm:$0x3] %vm2174_vm5, %v2078_v63  ;;  %2201 = vst.msk [vmem:[#allocation2 + $0x68] sm:$0x3] %vm2174_vm5, %v2080_v27  ;;  %v641_v62 = vpop.f32.mrf.mxu1  ;;  %v1421_v63 = vcombine.high %v6972_v46, %v6972_v46 }
 0x292   :  { %2097 = vrot.lane.b32.xlu1 %v6964_v33, %s5737_s12  ;;  %3254 = vst.msk [vmem:[#allocation2 + $0xb6] sm:$0x3] %vm1780_vm3, %v7340_v44  ;;  %v1694_v8 = vcombine.high %v700_v60, %v700_v60  ;;  %v7349_v2 = vrot.slane %v700_v60, %v6064_v10  ;;  %v642_v38 = vadd.f32 %v7212_v52, %v641_v62 }
 0x293   :  { %2871 = vrot.lane.b32.xlu0 %v6933_v16, %s5741_s5  ;;  %v5570_v45 = vpop.f32.mrf.mxu1 }
 0x294   :  { %v2082_v3 = vpop.permute.xlu1 %2081  ;;  %v2856_v15 = vpop.permute.xlu0 %2855  ;;  %v7357_v16 = vrot.slane %v1694_v8, %v6064_v10  ;;  %3255 = vst.msk [vmem:[#allocation2 + $0xba] sm:$0x3] %vm1780_vm3, %v7349_v2  ;;  %v701_v42 = vmax.f32 %v642_v38, 0.0  ;;  %v7422_v45 = vcombine.high %v6993_v34, %v6993_v34 }
 0x295   :  { %2202 = vst.msk [vmem:[#allocation2 + $0x6c] sm:$0x3] %vm2174_vm5, %v2082_v3 }
 0x296   :  { %2983 = vst.msk [vmem:[#allocation2 + $0x50] sm:$0x3] %vm2962_vm9, %v2856_v15  ;;  %2873 = vrot.lane.b32.xlu1 %v6964_v33, %s5741_s5  ;;  %v1717_v36 = vrot.slane %v701_v42, %v6064_v10  ;;  %v1456_v33 = vcombine.high %v7015_v25, %v7015_v25 }
 0x297   :  { %2875 = vrot.lane.b32.xlu0 %v6972_v46, %s5741_s5  ;;  %3256 = vst.msk [vmem:[#allocation2 + $0xbe] sm:$0x3] %vm1780_vm3, %v7357_v16 }
 0x298   :  { %v2858_v51 = vpop.permute.xlu1 %2857  ;;  %v2860_v23 = vpop.permute.xlu0 %2859  ;;  %3257 = vst.msk [vmem:[#allocation2 + $0xc2] sm:$0x3] %vm1780_vm3, %v1717_v36  ;;  %v1470_v60 = vrot.slane %v1456_v33, %v6064_v10  ;;  %v1403_v36 = vcombine.high %v1395_v58, %v1395_v58  ;;  %vm4743_vm3 = vcmask 1041920  }
 0x299   :  { %2984 = vst.msk [vmem:[#allocation2 + $0x54] sm:$0x3] %vm2962_vm9, %v2858_v51  ;;  %2985 = vst.msk [vmem:[#allocation2 + $0x58] sm:$0x3] %vm2962_vm9, %v2860_v23 }
 0x29a   :  { %2877 = vrot.lane.b32.xlu1 %v6989_v24, %s5741_s5 }
 0x29b   :  { %2288 = vrot.lane.b32.xlu0 %v7303_v26, %s5739_s22 }
 0x29c   :  { %v2862_v43 = vpop.permute.xlu1 %2861  ;;  %v2273_v37 = vpop.permute.xlu0 %2272 }
 0x29d   :  { %2986 = vst.msk [vmem:[#allocation2 + $0x5c] sm:$0x3] %vm2962_vm9, %v2862_v43 }
 0x29e   :  { %2396 = vst.msk [vmem:[#allocation2 + $0x60] sm:$0x3] %vm2371_vm6, %v2273_v37  ;;  %2290 = vrot.lane.b32.xlu1 %v1386_v53, %s5739_s22 }
 0x29f   :  { %2292 = vrot.lane.b32.xlu0 %v7375_v6, %s5739_s22 }
 0x2a0   :  { %v2275_v29 = vpop.permute.xlu1 %2274  ;;  %v2277_v17 = vpop.permute.xlu0 %2276 }
 0x2a1   :  { %2397 = vst.msk [vmem:[#allocation2 + $0x64] sm:$0x3] %vm2371_vm6, %v2275_v29  ;;  %2398 = vst.msk [vmem:[#allocation2 + $0x68] sm:$0x3] %vm2371_vm6, %v2277_v17  ;;  %v572_v29 = vadd.f32 %v7212_v52, %v7094_v7  ;;  %v577_v7 = vadd.f32 %v7212_v52, %v7102_v47 }
 0x2a2   :  { %2294 = vrot.lane.b32.xlu1 %v1471_v12, %s5739_s22 }
 0x2a3   :  { %3068 = vrot.lane.b32.xlu0 %v7269_v32, %s5734_s27  ;;  %v1437_v32 = vcombine.high %v6989_v24, %v6989_v24  ;;  %v687_v17 = vmax.f32 %v572_v29, 0.0 }
 0x2a4   :  { %v2279_v26 = vpop.permute.xlu1 %2278  ;;  %v3053_v13 = vpop.permute.xlu0 %3052 }
 0x2a5   :  { %2399 = vst.msk [vmem:[#allocation2 + $0x6c] sm:$0x3] %vm2371_vm6, %v2279_v26  ;;  %v1473_v26 = vcombine.high %v687_v17, %v687_v17 }
 0x2a6   :  { %3180 = vst.msk [vmem:[#allocation2 + $0x50] sm:$0x3] %vm3159_vm10, %v3053_v13  ;;  %3070 = vrot.lane.b32.xlu1 %v1420_v49, %s5734_s27 }
 0x2a7   :  { %3072 = vrot.lane.b32.xlu0 %v1421_v63, %s5734_s27 }
 0x2a8   :  { %v3055_v27 = vpop.permute.xlu1 %3054  ;;  %v3057_v40 = vpop.permute.xlu0 %3056 }
 0x2a9   :  { %3181 = vst.msk [vmem:[#allocation2 + $0x54] sm:$0x3] %vm3159_vm10, %v3055_v27  ;;  %3182 = vst.msk [vmem:[#allocation2 + $0x58] sm:$0x3] %vm3159_vm10, %v3057_v40  ;;  %v1487_v27 = vrot.slane %v1473_v26, %v6064_v10 }
 0x2aa   :  { %3074 = vrot.lane.b32.xlu1 %v1437_v32, %s5734_s27 }
 0x2ab   :  { %2485 = vrot.lane.b32.xlu0 %v1378_v18, %s5738_s21 }
 0x2ac   :  { %v3059_v41 = vpop.permute.xlu1 %3058  ;;  %v2470_v19 = vpop.permute.xlu0 %2469 }
 0x2ad   :  { %3183 = vst.msk [vmem:[#allocation2 + $0x5c] sm:$0x3] %vm3159_vm10, %v3059_v41  ;;  %v7470_v41 = vcombine.high %v1487_v27, %v1487_v27 }
 0x2ae   :  { %2593 = vst.msk [vmem:[#allocation2 + $0x60] sm:$0x3] %vm2568_vm7, %v2470_v19  ;;  %2487 = vrot.lane.b32.xlu1 %v1385_v0, %s5738_s21  ;;  %v1472_v0 = vcombine.high %v1470_v60, %v1470_v60 }
 0x2af   :  { %2489 = vrot.lane.b32.xlu0 %v1395_v58, %s5738_s21 }
 0x2b0   :  { %v2472_v62 = vpop.permute.xlu1 %2471  ;;  %v2474_v3 = vpop.permute.xlu0 %2473  ;;  %v5696_v25 = vld.sshfl [vmem:[#allocation2 + $0x50] sm:$0xff pattern:$0x76325410] }
 0x2b1   :  { %2594 = vst.msk [vmem:[#allocation2 + $0x64] sm:$0x3] %vm2568_vm7, %v2472_v62  ;;  %2595 = vst.msk [vmem:[#allocation2 + $0x68] sm:$0x3] %vm2568_vm7, %v2474_v3 }
 0x2b2   :  { %2491 = vrot.lane.b32.xlu1 %v1470_v60, %s5738_s21 }
 0x2b3   :  { %1902 = vrot.lane.b32.xlu0 %v1420_v49, %s5736_s11  ;;  %v1480_v49 = vrot.slane %v687_v17, %v6064_v10 }
 0x2b4   :  { %v2476_v11 = vpop.permute.xlu1 %2475  ;;  %v1887_v15 = vpop.permute.xlu0 %1886  ;;  %v5697_v8 = vld.sshfl [vmem:[#allocation2 + $0x58] sm:$0xff pattern:$0x76325410] }
 0x2b5   :  { %2596 = vst.msk [vmem:[#allocation2 + $0x6c] sm:$0x3] %vm2568_vm7, %v2476_v11  ;;  %v3463_v42 = vcombine.high %v5696_v25, %v5697_v8  ;;  %v3462_v18 = vcombine.low %v5696_v25, %v5697_v8  ;;  %v1488_v40 = vcombine.high %v1480_v49, %v1480_v49  ;;  %v1454_v25 = vcombine.high %v7011_v39, %v7011_v39 }
 0x2b6   :  { %2006 = vst.msk [vmem:[#allocation2 + $0x70] sm:$0x3] %vm1977_vm4, %v1887_v15  ;;  %1904 = vrot.lane.b32.xlu1 %v1421_v63, %s5736_s11  ;;  %v688_v63 = vmax.f32 %v577_v7, 0.0  ;;  %v1455_v15 = vcombine.high %v7020_v14, %v7020_v14 }
 0x2b7   :  { %1906 = vrot.lane.b32.xlu0 %v1437_v32, %s5736_s11  ;;  %5191 = vmatprep.mubr.msk.f32.mxu1 %vm3668_vm11, %v3463_v42 }
 0x2b8   :  { %v1889_v38 = vpop.permute.xlu1 %1888  ;;  %v1891_v54 = vpop.permute.xlu0 %1890  ;;  %3785 = vmatmul.mubr.f32.gmra.mxu1 %v3462_v18  ;;  %v1497_v32 = vrot.slane %v688_v63, %v6064_v10 }
 0x2b9   :  { %2007 = vst.msk [vmem:[#allocation2 + $0x74] sm:$0x3] %vm1977_vm4, %v1889_v38  ;;  %2008 = vst.msk [vmem:[#allocation2 + $0x78] sm:$0x3] %vm1977_vm4, %v1891_v54  ;;  %v1539_v38 = vcombine.high %v7127_v5, %v7127_v5 }
 0x2ba   :  { %1908 = vrot.lane.b32.xlu1 %v7422_v45, %s5736_s11  ;;  %v1505_v58 = vcombine.high %v1497_v32, %v1497_v32 }
 0x2bb   :  { %2682 = vrot.lane.b32.xlu0 %v1386_v53, %s5740_s23 }
 0x2bc   :  { %v1893_v51 = vpop.permute.xlu1 %1892  ;;  %v2667_v23 = vpop.permute.xlu0 %2666 }
 0x2bd   :  { %2009 = vst.msk [vmem:[#allocation2 + $0x7c] sm:$0x3] %vm1977_vm4, %v1893_v51 }
 0x2be   :  { %2790 = vst.msk [vmem:[#allocation2 + $0x60] sm:$0x3] %vm2765_vm8, %v2667_v23  ;;  %2684 = vrot.lane.b32.xlu1 %v7375_v6, %s5740_s23 }
 0x2bf   :  { %2686 = vrot.lane.b32.xlu0 %v1403_v36, %s5740_s23 }
 0x2c0   :  { %v2669_v43 = vpop.permute.xlu1 %2668  ;;  %v2671_v37 = vpop.permute.xlu0 %2670 }
 0x2c1   :  { %2791 = vst.msk [vmem:[#allocation2 + $0x64] sm:$0x3] %vm2765_vm8, %v2669_v43  ;;  %2792 = vst.msk [vmem:[#allocation2 + $0x68] sm:$0x3] %vm2765_vm8, %v2671_v37 }
 0x2c2   :  { %2688 = vrot.lane.b32.xlu1 %v1472_v0, %s5740_s23 }
 0x2c3   :  { %2099 = vrot.lane.b32.xlu0 %v6972_v46, %s5737_s12 }
 0x2c4   :  { %v2673_v53 = vpop.permute.xlu1 %2672  ;;  %v2084_v12 = vpop.permute.xlu0 %2083 }
 0x2c5   :  { %2793 = vst.msk [vmem:[#allocation2 + $0x6c] sm:$0x3] %vm2765_vm8, %v2673_v53  ;;  %v7511_v53 = vcombine.high %v7135_v56, %v7135_v56 }
 0x2c6   :  { %2203 = vst.msk [vmem:[#allocation2 + $0x70] sm:$0x3] %vm2174_vm5, %v2084_v12  ;;  %2101 = vrot.lane.b32.xlu1 %v6989_v24, %s5737_s12 }
 0x2c7   :  { %2103 = vrot.lane.b32.xlu0 %v6993_v34, %s5737_s12 }
 0x2c8   :  { %v2086_v6 = vpop.permute.xlu1 %2085 }
 0x2c9   :  { %2204 = vst.msk [vmem:[#allocation2 + $0x74] sm:$0x3] %vm2174_vm5, %v2086_v6  ;;  %v2088_v46 = vpop.permute.xlu0 %2087 }
 0x2ca   :  { %2205 = vst.msk [vmem:[#allocation2 + $0x78] sm:$0x3] %vm2174_vm5, %v2088_v46  ;;  %2105 = vrot.lane.b32.xlu1 %v7011_v39, %s5737_s12 }
 0x2cb   :  { %2879 = vrot.lane.b32.xlu0 %v6993_v34, %s5741_s5 }
 0x2cc   :  { %v2090_v24 = vpop.permute.xlu1 %2089 }
 0x2cd   :  { %2206 = vst.msk [vmem:[#allocation2 + $0x7c] sm:$0x3] %vm2174_vm5, %v2090_v24  ;;  %v2864_v13 = vpop.permute.xlu0 %2863 }
 0x2ce   :  { %2987 = vst.msk [vmem:[#allocation2 + $0x60] sm:$0x3] %vm2962_vm9, %v2864_v13  ;;  %2881 = vrot.lane.b32.xlu1 %v7011_v39, %s5741_s5  ;;  %v1490_v39 = vcombine.high %v688_v63, %v688_v63  ;;  %v582_v63 = vadd.f32 %v7212_v52, %v7108_v50 }
 0x2cf   :  { %2883 = vrot.lane.b32.xlu0 %v7020_v14, %s5741_s5 }
 0x2d0   :  { %v2866_v34 = vpop.permute.xlu1 %2865 }
 0x2d1   :  { %2988 = vst.msk [vmem:[#allocation2 + $0x64] sm:$0x3] %vm2962_vm9, %v2866_v34  ;;  %v2868_v47 = vpop.permute.xlu0 %2867 }
 0x2d2   :  { %2989 = vst.msk [vmem:[#allocation2 + $0x68] sm:$0x3] %vm2962_vm9, %v2868_v47  ;;  %2885 = vrot.lane.b32.xlu1 %v7127_v5, %s5741_s5  ;;  %v1504_v5 = vrot.slane %v1490_v39, %v6064_v10 }
 0x2d3   :  { %2296 = vrot.lane.b32.xlu0 %v1472_v0, %s5739_s22 }
 0x2d4   :  { %v2870_v33 = vpop.permute.xlu1 %2869  ;;  %v1506_v7 = vcombine.high %v1504_v5, %v1504_v5 }
 0x2d5   :  { %2990 = vst.msk [vmem:[#allocation2 + $0x6c] sm:$0x3] %vm2962_vm9, %v2870_v33  ;;  %v2281_v19 = vpop.permute.xlu0 %2280 }
 0x2d6   :  { %2400 = vst.msk [vmem:[#allocation2 + $0x70] sm:$0x3] %vm2371_vm6, %v2281_v19  ;;  %2298 = vrot.lane.b32.xlu1 %v1488_v40, %s5739_s22 }
 0x2d7   :  { %2300 = vrot.lane.b32.xlu0 %v7470_v41, %s5739_s22 }
 0x2d8   :  { %v2283_v60 = vpop.permute.xlu1 %2282 }
 0x2d9   :  { %2401 = vst.msk [vmem:[#allocation2 + $0x74] sm:$0x3] %vm2371_vm6, %v2283_v60  ;;  %v2285_v62 = vpop.permute.xlu0 %2284 }
 0x2da   :  { %2402 = vst.msk [vmem:[#allocation2 + $0x78] sm:$0x3] %vm2371_vm6, %v2285_v62  ;;  %2302 = vrot.lane.b32.xlu1 %v1505_v58, %s5739_s22 }
 0x2db   :  { %3076 = vrot.lane.b32.xlu0 %v7422_v45, %s5734_s27 }
 0x2dc   :  { %v2287_v3 = vpop.permute.xlu1 %2286 }
 0x2dd   :  { %2403 = vst.msk [vmem:[#allocation2 + $0x7c] sm:$0x3] %vm2371_vm6, %v2287_v3  ;;  %v3061_v11 = vpop.permute.xlu0 %3060 }
 0x2de   :  { %3184 = vst.msk [vmem:[#allocation2 + $0x60] sm:$0x3] %vm3159_vm10, %v3061_v11  ;;  %3078 = vrot.lane.b32.xlu1 %v1454_v25, %s5734_s27 }
 0x2df   :  { %3080 = vrot.lane.b32.xlu0 %v1455_v15, %s5734_s27 }
 0x2e0   :  { %v3063_v8 = vpop.permute.xlu1 %3062 }
 0x2e1   :  { %3185 = vst.msk [vmem:[#allocation2 + $0x64] sm:$0x3] %vm3159_vm10, %v3063_v8  ;;  %v3065_v54 = vpop.permute.xlu0 %3064 }
 0x2e2   :  { %3186 = vst.msk [vmem:[#allocation2 + $0x68] sm:$0x3] %vm3159_vm10, %v3065_v54  ;;  %3082 = vrot.lane.b32.xlu1 %v1539_v38, %s5734_s27 }
 0x2e3   :  { %2493 = vrot.lane.b32.xlu0 %v1480_v49, %s5738_s21 }
 0x2e4   :  { %v3067_v45 = vpop.permute.xlu1 %3066 }
 0x2e5   :  { %3187 = vst.msk [vmem:[#allocation2 + $0x6c] sm:$0x3] %vm3159_vm10, %v3067_v45  ;;  %v2478_v42 = vpop.permute.xlu0 %2477 }
 0x2e6   :  { %2597 = vst.msk [vmem:[#allocation2 + $0x70] sm:$0x3] %vm2568_vm7, %v2478_v42  ;;  %2495 = vrot.lane.b32.xlu1 %v1487_v27, %s5738_s21 }
 0x2e7   :  { %2497 = vrot.lane.b32.xlu0 %v1497_v32, %s5738_s21 }
 0x2e8   :  { %v2480_v18 = vpop.permute.xlu1 %2479  ;;  %v5698_v23 = vld.sshfl [vmem:[#allocation2 + $0x60] sm:$0xff pattern:$0x76325410] }
 0x2e9   :  { %2598 = vst.msk [vmem:[#allocation2 + $0x74] sm:$0x3] %vm2568_vm7, %v2480_v18  ;;  %v2482_v51 = vpop.permute.xlu0 %2481 }
 0x2ea   :  { %2599 = vst.msk [vmem:[#allocation2 + $0x78] sm:$0x3] %vm2568_vm7, %v2482_v51  ;;  %2499 = vrot.lane.b32.xlu1 %v1504_v5, %s5738_s21 }
 0x2eb   :  { %1910 = vrot.lane.b32.xlu0 %v1454_v25, %s5736_s11 }
 0x2ec   :  { %v2484_v36 = vpop.permute.xlu1 %2483  ;;  %v5699_v0 = vld.sshfl [vmem:[#allocation2 + $0x68] sm:$0xff pattern:$0x76325410] }
 0x2ed   :  { %2600 = vst.msk [vmem:[#allocation2 + $0x7c] sm:$0x3] %vm2568_vm7, %v2484_v36  ;;  %v1895_v43 = vpop.permute.xlu0 %1894  ;;  %v3481_v12 = vcombine.high %v5698_v23, %v5699_v0  ;;  %v3480_v29 = vcombine.low %v5698_v23, %v5699_v0 }
 0x2ee   :  { %2010 = vst.msk [vmem:[#allocation2 + $0x80] sm:$0x3] %vm1977_vm4, %v1895_v43  ;;  %1912 = vrot.lane.b32.xlu1 %v1455_v15, %s5736_s11  ;;  %v1556_v15 = vcombine.high %v7277_v59, %v7277_v59 }
 0x2ef   :  { %1914 = vrot.lane.b32.xlu0 %v1539_v38, %s5736_s11  ;;  %5192 = vmatprep.mubr.msk.f32.mxu1 %vm3668_vm11, %v3481_v12  ;;  %v1557_v38 = vcombine.high %v7283_v55, %v7283_v55 }
 0x2f0   :  { %v1897_v37 = vpop.permute.xlu1 %1896  ;;  %3790 = vmatmul.mubr.f32.gmra.mxu1 %v3480_v29 }
 0x2f1   :  { %2011 = vst.msk [vmem:[#allocation2 + $0x84] sm:$0x3] %vm1977_vm4, %v1897_v37  ;;  %v1899_v6 = vpop.permute.xlu0 %1898 }
 0x2f2   :  { %2012 = vst.msk [vmem:[#allocation2 + $0x88] sm:$0x3] %vm1977_vm4, %v1899_v6  ;;  %1916 = vrot.lane.b32.xlu1 %v7511_v53, %s5736_s11 }
 0x2f3   :  { %2690 = vrot.lane.b32.xlu0 %v1488_v40, %s5740_s23 }
 0x2f4   :  { %v1901_v17 = vpop.permute.xlu1 %1900 }
 0x2f5   :  { %2013 = vst.msk [vmem:[#allocation2 + $0x8c] sm:$0x3] %vm1977_vm4, %v1901_v17  ;;  %v2675_v46 = vpop.permute.xlu0 %2674 }
 0x2f6   :  { %2794 = vst.msk [vmem:[#allocation2 + $0x70] sm:$0x3] %vm2765_vm8, %v2675_v46  ;;  %2692 = vrot.lane.b32.xlu1 %v7470_v41, %s5740_s23  ;;  %v1591_v41 = vcombine.high %v7252_v61, %v7252_v61 }
 0x2f7   :  { %2694 = vrot.lane.b32.xlu0 %v1505_v58, %s5740_s23 }
 0x2f8   :  { %v2677_v24 = vpop.permute.xlu1 %2676 }
 0x2f9   :  { %2795 = vst.msk [vmem:[#allocation2 + $0x74] sm:$0x3] %vm2765_vm8, %v2677_v24  ;;  %v2679_v26 = vpop.permute.xlu0 %2678 }
 0x2fa   :  { %2796 = vst.msk [vmem:[#allocation2 + $0x78] sm:$0x3] %vm2765_vm8, %v2679_v26  ;;  %2696 = vrot.lane.b32.xlu1 %v1506_v7, %s5740_s23 }
 0x2fb   :  { %2107 = vrot.lane.b32.xlu0 %v7020_v14, %s5737_s12  ;;  %v607_v14 = vadd.f32 %v7212_v52, %v7242_v30 }
 0x2fc   :  { %v2681_v13 = vpop.permute.xlu1 %2680 }
 0x2fd   :  { %2797 = vst.msk [vmem:[#allocation2 + $0x7c] sm:$0x3] %vm2765_vm8, %v2681_v13  ;;  %v2092_v49 = vpop.permute.xlu0 %2091  ;;  %v694_v40 = vmax.f32 %v607_v14, 0.0 }
 0x2fe   :  { %2207 = vst.msk [vmem:[#allocation2 + $0x80] sm:$0x3] %vm2174_vm5, %v2092_v49  ;;  %2109 = vrot.lane.b32.xlu1 %v7032_v35, %s5737_s12  ;;  %v689_v35 = vmax.f32 %v582_v63, 0.0  ;;  %v7613_v63 = vcombine.high %v7230_v20, %v7230_v20 }
 0x2ff   :  { %2111 = vrot.lane.b32.xlu0 %v7135_v56, %s5737_s12  ;;  %v1599_v33 = vrot.slane %v694_v40, %v6064_v10  ;;  %v1592_v23 = vcombine.high %v694_v40, %v694_v40  ;;  %v622_v40 = vadd.f32 %v7212_v52, %v7291_v9  ;;  %v612_v9 = vadd.f32 %v7212_v52, %v7259_v48 }
 0x300   :  { %v2094_v34 = vpop.permute.xlu1 %2093  ;;  %v1514_v30 = vrot.slane %v689_v35, %v6064_v10  ;;  %v1507_v39 = vcombine.high %v689_v35, %v689_v35 }
 0x301   :  { %2208 = vst.msk [vmem:[#allocation2 + $0x84] sm:$0x3] %vm2174_vm5, %v2094_v34  ;;  %v2096_v27 = vpop.permute.xlu0 %2095  ;;  %v7563_v62 = vcombine.high %v1599_v33, %v1599_v33 }
 0x302   :  { %2209 = vst.msk [vmem:[#allocation2 + $0x88] sm:$0x3] %vm2174_vm5, %v2096_v27  ;;  %2113 = vrot.lane.b32.xlu1 %v7277_v59, %s5737_s12  ;;  %v7560_v19 = vcombine.high %v1514_v30, %v1514_v30  ;;  %v1521_v51 = vrot.slane %v1507_v39, %v6064_v10 }
 0x303   :  { %2887 = vrot.lane.b32.xlu0 %v7135_v56, %s5741_s5 }
 0x304   :  { %v2098_v47 = vpop.permute.xlu1 %2097  ;;  %v1523_v35 = vcombine.high %v1521_v51, %v1521_v51 }
 0x305   :  { %2210 = vst.msk [vmem:[#allocation2 + $0x8c] sm:$0x3] %vm2174_vm5, %v2098_v47  ;;  %v2872_v50 = vpop.permute.xlu0 %2871 }
 0x306   :  { %2991 = vst.msk [vmem:[#allocation2 + $0x70] sm:$0x3] %vm2962_vm9, %v2872_v50  ;;  %2889 = vrot.lane.b32.xlu1 %v7277_v59, %s5741_s5  ;;  %v1573_v59 = vcombine.high %v7222_v21, %v7222_v21 }
 0x307   :  { %2891 = vrot.lane.b32.xlu0 %v7283_v55, %s5741_s5 }
 0x308   :  { %v2874_v32 = vpop.permute.xlu1 %2873 }
 0x309   :  { %2992 = vst.msk [vmem:[#allocation2 + $0x74] sm:$0x3] %vm2962_vm9, %v2874_v32  ;;  %v2876_v56 = vpop.permute.xlu0 %2875 }
 0x30a   :  { %2993 = vst.msk [vmem:[#allocation2 + $0x78] sm:$0x3] %vm2962_vm9, %v2876_v56  ;;  %2893 = vrot.lane.b32.xlu1 %v7222_v21, %s5741_s5 }
 0x30b   :  { %2304 = vrot.lane.b32.xlu0 %v1506_v7, %s5739_s22 }
 0x30c   :  { %v2878_v58 = vpop.permute.xlu1 %2877 }
 0x30d   :  { %2994 = vst.msk [vmem:[#allocation2 + $0x7c] sm:$0x3] %vm2962_vm9, %v2878_v58  ;;  %v2289_v60 = vpop.permute.xlu0 %2288 }
 0x30e   :  { %2404 = vst.msk [vmem:[#allocation2 + $0x80] sm:$0x3] %vm2371_vm6, %v2289_v60  ;;  %2306 = vrot.lane.b32.xlu1 %v7560_v19, %s5739_s22 }
 0x30f   :  { %2308 = vrot.lane.b32.xlu0 %v1591_v41, %s5739_s22 }
 0x310   :  { %v2291_v3 = vpop.permute.xlu1 %2290 }
 0x311   :  { %2405 = vst.msk [vmem:[#allocation2 + $0x84] sm:$0x3] %vm2371_vm6, %v2291_v3  ;;  %v2293_v25 = vpop.permute.xlu0 %2292 }
 0x312   :  { %2406 = vst.msk [vmem:[#allocation2 + $0x88] sm:$0x3] %vm2371_vm6, %v2293_v25  ;;  %2310 = vrot.lane.b32.xlu1 %v7563_v62, %s5739_s22 }
 0x313   :  { %3084 = vrot.lane.b32.xlu0 %v7511_v53, %s5734_s27  ;;  %v1606_v53 = vrot.slane %v1592_v23, %v6064_v10 }
 0x314   :  { %v2295_v11 = vpop.permute.xlu1 %2294 }
 0x315   :  { %2407 = vst.msk [vmem:[#allocation2 + $0x8c] sm:$0x3] %vm2371_vm6, %v2295_v11  ;;  %v3069_v8 = vpop.permute.xlu0 %3068 }
 0x316   :  { %3188 = vst.msk [vmem:[#allocation2 + $0x70] sm:$0x3] %vm3159_vm10, %v3069_v8  ;;  %3086 = vrot.lane.b32.xlu1 %v1556_v15, %s5734_s27  ;;  %v7582_v54 = vpop.f32.mrf.mxu1 }
 0x317   :  { %3088 = vrot.lane.b32.xlu0 %v1557_v38, %s5734_s27 }
 0x318   :  { %v3071_v45 = vpop.permute.xlu1 %3070  ;;  %v3763_v42 = vpop.f32.mrf.mxu1 }
 0x319   :  { %3189 = vst.msk [vmem:[#allocation2 + $0x74] sm:$0x3] %vm3159_vm10, %v3071_v45  ;;  %v3073_v5 = vpop.permute.xlu0 %3072 }
 0x31a   :  { %3190 = vst.msk [vmem:[#allocation2 + $0x78] sm:$0x3] %vm3159_vm10, %v3073_v5  ;;  %3090 = vrot.lane.b32.xlu1 %v1573_v59, %s5734_s27  ;;  %v7590_v18 = vpop.f32.mrf.mxu1 }
 0x31b   :  { %2501 = vrot.lane.b32.xlu0 %v1514_v30, %s5738_s21  ;;  %v1608_v30 = vcombine.high %v1606_v53, %v1606_v53 }
 0x31c   :  { %v3075_v36 = vpop.permute.xlu1 %3074  ;;  %v3768_v0 = vpop.f32.mrf.mxu1 }
 0x31d   :  { %3191 = vst.msk [vmem:[#allocation2 + $0x7c] sm:$0x3] %vm3159_vm10, %v3075_v36  ;;  %v2486_v43 = vpop.permute.xlu0 %2485 }
 0x31e   :  { %2601 = vst.msk [vmem:[#allocation2 + $0x80] sm:$0x3] %vm2568_vm7, %v2486_v43  ;;  %2503 = vrot.lane.b32.xlu1 %v1521_v51, %s5738_s21  ;;  %v7597_v37 = vpop.f32.mrf.mxu1 }
 0x31f   :  { %2505 = vrot.lane.b32.xlu0 %v1599_v33, %s5738_s21  ;;  %v7632_v33 = vmax.f32 %v622_v40, 0.0 }
 0x320   :  { %v2488_v12 = vpop.permute.xlu1 %2487  ;;  %v3773_v29 = vpop.f32.mrf.mxu1  ;;  %v5700_v46 = vld.sshfl [vmem:[#allocation2 + $0x70] sm:$0xff pattern:$0x76325410] }
 0x321   :  { %2602 = vst.msk [vmem:[#allocation2 + $0x84] sm:$0x3] %vm2568_vm7, %v2488_v12  ;;  %v2490_v6 = vpop.permute.xlu0 %2489  ;;  %v1643_v58 = vcombine.high %v7632_v33, %v7632_v33 }
 0x322   :  { %2603 = vst.msk [vmem:[#allocation2 + $0x88] sm:$0x3] %vm2568_vm7, %v2490_v6  ;;  %2507 = vrot.lane.b32.xlu1 %v1606_v53, %s5738_s21  ;;  %v7604_v17 = vpop.f32.mrf.mxu1  ;;  %v7681_v53 = vcombine.high %v7246_v28, %v7246_v28 }
 0x323   :  { %1918 = vrot.lane.b32.xlu0 %v1556_v15, %s5736_s11  ;;  %v1657_v48 = vrot.slane %v1643_v58, %v6064_v10 }
 0x324   :  { %v2492_v7 = vpop.permute.xlu1 %2491  ;;  %v3778_v24 = vpop.f32.mrf.mxu1  ;;  %v5701_v26 = vld.sshfl [vmem:[#allocation2 + $0x78] sm:$0xff pattern:$0x76325410] }
 0x325   :  { %2604 = vst.msk [vmem:[#allocation2 + $0x8c] sm:$0x3] %vm2568_vm7, %v2492_v7  ;;  %v1903_v13 = vpop.permute.xlu0 %1902  ;;  %v3499_v34 = vcombine.high %v5700_v46, %v5701_v26  ;;  %v3498_v27 = vcombine.low %v5700_v46, %v5701_v26  ;;  %v1659_v12 = vcombine.high %v1657_v48, %v1657_v48  ;;  %v1675_v46 = vcombine.high %v7313_v4, %v7313_v4 }
 0x326   :  { %2014 = vst.msk [vmem:[#allocation2 + $0x90] sm:$0x3] %vm1977_vm4, %v1903_v13  ;;  %1920 = vrot.lane.b32.xlu1 %v1557_v38, %s5736_s11 }
 0x327   :  { %1922 = vrot.lane.b32.xlu0 %v1573_v59, %s5736_s11  ;;  %5193 = vmatprep.mubr.msk.f32.mxu1 %vm3668_vm11, %v3499_v34 }
 0x328   :  { %v1905_v49 = vpop.permute.xlu1 %1904  ;;  %3795 = vmatmul.mubr.f32.gmra.mxu1 %v3498_v27 }
 0x329   :  { %2015 = vst.msk [vmem:[#allocation2 + $0x94] sm:$0x3] %vm1977_vm4, %v1905_v49  ;;  %v1907_v14 = vpop.permute.xlu0 %1906 }
 0x32a   :  { %2016 = vst.msk [vmem:[#allocation2 + $0x98] sm:$0x3] %vm1977_vm4, %v1907_v14  ;;  %1924 = vrot.lane.b32.xlu1 %v7613_v63, %s5736_s11 }
 0x32b   :  { %2698 = vrot.lane.b32.xlu0 %v7560_v19, %s5740_s23 }
 0x32c   :  { %v1909_v47 = vpop.permute.xlu1 %1908 }
 0x32d   :  { %2017 = vst.msk [vmem:[#allocation2 + $0x9c] sm:$0x3] %vm1977_vm4, %v1909_v47  ;;  %v2683_v50 = vpop.permute.xlu0 %2682 }
 0x32e   :  { %2798 = vst.msk [vmem:[#allocation2 + $0x80] sm:$0x3] %vm2765_vm8, %v2683_v50  ;;  %2700 = vrot.lane.b32.xlu1 %v1523_v35, %s5740_s23 }
 0x32f   :  { %2702 = vrot.lane.b32.xlu0 %v7563_v62, %s5740_s23 }
 0x330   :  { %v2685_v32 = vpop.permute.xlu1 %2684 }
 0x331   :  { %2799 = vst.msk [vmem:[#allocation2 + $0x84] sm:$0x3] %vm2765_vm8, %v2685_v32  ;;  %v2687_v56 = vpop.permute.xlu0 %2686 }
 0x332   :  { %2800 = vst.msk [vmem:[#allocation2 + $0x88] sm:$0x3] %vm2765_vm8, %v2687_v56  ;;  %2704 = vrot.lane.b32.xlu1 %v1608_v30, %s5740_s23 }
 0x333   :  { %2115 = vrot.lane.b32.xlu0 %v7283_v55, %s5737_s12  ;;  %v695_v55 = vmax.f32 %v612_v9, 0.0 }
 0x334   :  { %v2689_v41 = vpop.permute.xlu1 %2688 }
 0x335   :  { %2801 = vst.msk [vmem:[#allocation2 + $0x8c] sm:$0x3] %vm2765_vm8, %v2689_v41  ;;  %v2100_v19 = vpop.permute.xlu0 %2099  ;;  %v1609_v25 = vcombine.high %v695_v55, %v695_v55  ;;  %v1616_v15 = vrot.slane %v695_v55, %v6064_v10 }
 0x336   :  { %2211 = vst.msk [vmem:[#allocation2 + $0x90] sm:$0x3] %vm2174_vm5, %v2100_v19  ;;  %2117 = vrot.lane.b32.xlu1 %v7222_v21, %s5737_s12  ;;  %v617_v21 = vadd.f32 %v7212_v52, %v7272_v57  ;;  %v1676_v19 = vcombine.high %v7323_v22, %v7323_v22 }
 0x337   :  { %2119 = vrot.lane.b32.xlu0 %v7230_v20, %s5737_s12  ;;  %v1624_v39 = vcombine.high %v1616_v15, %v1616_v15 }
 0x338   :  { %v2102_v60 = vpop.permute.xlu1 %2101  ;;  %v696_v8 = vmax.f32 %v617_v21, 0.0 }
 0x339   :  { %2212 = vst.msk [vmem:[#allocation2 + $0x94] sm:$0x3] %vm2174_vm5, %v2102_v60  ;;  %v2104_v62 = vpop.permute.xlu0 %2103  ;;  %v1692_v60 = vcombine.high %v7332_v31, %v7332_v31 }
 0x33a   :  { %2213 = vst.msk [vmem:[#allocation2 + $0x98] sm:$0x3] %vm2174_vm5, %v2104_v62  ;;  %2121 = vrot.lane.b32.xlu1 %v7246_v28, %s5737_s12  ;;  %v1633_v45 = vrot.slane %v696_v8, %v6064_v10  ;;  %v1693_v62 = vcombine.high %v7340_v44, %v7340_v44 }
 0x33b   :  { %2895 = vrot.lane.b32.xlu0 %v7230_v20, %s5741_s5  ;;  %v1623_v20 = vrot.slane %v1609_v25, %v6064_v10 }
 0x33c   :  { %v2106_v3 = vpop.permute.xlu1 %2105  ;;  %v1641_v23 = vcombine.high %v1633_v45, %v1633_v45 }
 0x33d   :  { %2214 = vst.msk [vmem:[#allocation2 + $0x9c] sm:$0x3] %vm2174_vm5, %v2106_v3  ;;  %v2880_v11 = vpop.permute.xlu0 %2879  ;;  %v1625_v59 = vcombine.high %v1623_v20, %v1623_v20 }
 0x33e   :  { %2995 = vst.msk [vmem:[#allocation2 + $0x80] sm:$0x3] %vm2962_vm9, %v2880_v11  ;;  %2897 = vrot.lane.b32.xlu1 %v7246_v28, %s5741_s5  ;;  %v1626_v28 = vcombine.high %v696_v8, %v696_v8 }
 0x33f   :  { %2899 = vrot.lane.b32.xlu0 %v1657_v48, %s5741_s5  ;;  %v1709_v48 = vcombine.high %v7349_v2, %v7349_v2 }
 0x340   :  { %v2882_v38 = vpop.permute.xlu1 %2881  ;;  %v7667_v57 = vpop.f32.mrf.mxu1 }
 0x341   :  { %2996 = vst.msk [vmem:[#allocation2 + $0x84] sm:$0x3] %vm2962_vm9, %v2882_v38  ;;  %v2884_v52 = vpop.permute.xlu0 %2883  ;;  %v1710_v38 = vcombine.high %v7357_v16, %v7357_v16 }
 0x342   :  { %2997 = vst.msk [vmem:[#allocation2 + $0x88] sm:$0x3] %vm2962_vm9, %v2884_v52  ;;  %2901 = vrot.lane.b32.xlu1 %v7313_v4, %s5741_s5  ;;  %v3783_v51 = vpop.f32.mrf.mxu1  ;;  %v1640_v4 = vrot.slane %v1626_v28, %v6064_v10  ;;  %v51_v52 = vld [vmem:[%s8555_s1 + $0xf8] sm:$0xff] }
 0x343   :  { %2312 = vrot.lane.b32.xlu0 %v1608_v30, %s5739_s22 }
 0x344   :  { %v2886_v42 = vpop.permute.xlu1 %2885  ;;  %v1642_v35 = vcombine.high %v1640_v4, %v1640_v4 }
 0x345   :  { %2998 = vst.msk [vmem:[#allocation2 + $0x8c] sm:$0x3] %vm2962_vm9, %v2886_v42  ;;  %v2297_v5 = vpop.permute.xlu0 %2296  ;;  %v50_v42 = vld [vmem:[%s8555_s1 + $0xf0] sm:$0xff] }
 0x346   :  { %2408 = vst.msk [vmem:[#allocation2 + $0x90] sm:$0x3] %vm2371_vm6, %v2297_v5  ;;  %2314 = vrot.lane.b32.xlu1 %v1624_v39, %s5739_s22  ;;  %v5667_v5 = vld [vmem:[%s8555_s1 + $0x78] sm:$0xff] }
 0x347   :  { %2316 = vrot.lane.b32.xlu0 %v1625_v59, %s5739_s22 }
 0x348   :  { %v2299_v36 = vpop.permute.xlu1 %2298 }
 0x349   :  { %2409 = vst.msk [vmem:[#allocation2 + $0x94] sm:$0x3] %vm2371_vm6, %v2299_v36  ;;  %v2301_v0 = vpop.permute.xlu0 %2300 }
 0x34a   :  { %2410 = vst.msk [vmem:[#allocation2 + $0x98] sm:$0x3] %vm2371_vm6, %v2301_v0  ;;  %2318 = vrot.lane.b32.xlu1 %v1641_v23, %s5739_s22  ;;  %v5668_v0 = vld [vmem:[%s8555_s1 + $0x70] sm:$0xff] }
 0x34b   :  { %3092 = vrot.lane.b32.xlu0 %v7613_v63, %s5734_s27 }
 0x34c   :  { %v2303_v43 = vpop.permute.xlu1 %2302 }
 0x34d   :  { %2411 = vst.msk [vmem:[#allocation2 + $0x9c] sm:$0x3] %vm2371_vm6, %v2303_v43  ;;  %v3077_v29 = vpop.permute.xlu0 %3076 }
 0x34e   :  { %3192 = vst.msk [vmem:[#allocation2 + $0x80] sm:$0x3] %vm3159_vm10, %v3077_v29  ;;  %3094 = vrot.lane.b32.xlu1 %v7681_v53, %s5734_s27  ;;  %v5669_v29 = vld [vmem:[%s8555_s1 + $0x68] sm:$0xff] }
 0x34f   :  { %3096 = vrot.lane.b32.xlu0 %v1659_v12, %s5734_s27 }
 0x350   :  { %v3079_v6 = vpop.permute.xlu1 %3078 }
 0x351   :  { %3193 = vst.msk [vmem:[#allocation2 + $0x84] sm:$0x3] %vm3159_vm10, %v3079_v6  ;;  %v3081_v7 = vpop.permute.xlu0 %3080 }
 0x352   :  { %3194 = vst.msk [vmem:[#allocation2 + $0x88] sm:$0x3] %vm3159_vm10, %v3081_v7  ;;  %3098 = vrot.lane.b32.xlu1 %v1675_v46, %s5734_s27  ;;  %v47_v46 = vld [vmem:[%s8555_s1 + $0xd8] sm:$0xff] }
 0x353   :  { %2509 = vrot.lane.b32.xlu0 %v1616_v15, %s5738_s21 }
 0x354   :  { %v3083_v24 = vpop.permute.xlu1 %3082 }
 0x355   :  { %3195 = vst.msk [vmem:[#allocation2 + $0x8c] sm:$0x3] %vm3159_vm10, %v3083_v24  ;;  %v2494_v26 = vpop.permute.xlu0 %2493  ;;  %v5670_v24 = vld [vmem:[%s8555_s1 + $0x60] sm:$0xff] }
 0x356   :  { %2605 = vst.msk [vmem:[#allocation2 + $0x90] sm:$0x3] %vm2568_vm7, %v2494_v26  ;;  %2511 = vrot.lane.b32.xlu1 %v1623_v20, %s5738_s21 }
 0x357   :  { %2513 = vrot.lane.b32.xlu0 %v1633_v45, %s5738_s21  ;;  %v7769_v45 = vld [vmem:[%s8557_s3] ss:$0 sm:$0xff] }
 0x358   :  { %v2496_v13 = vpop.permute.xlu1 %2495  ;;  %v5702_v63 = vld.sshfl [vmem:[#allocation2 + $0x80] sm:$0xff pattern:$0x76325410] }
 0x359   :  { %2606 = vst.msk [vmem:[#allocation2 + $0x94] sm:$0x3] %vm2568_vm7, %v2496_v13  ;;  %v2498_v49 = vpop.permute.xlu0 %2497  ;;  %v46_v13 = vld [vmem:[%s8555_s1 + $0xd0] sm:$0xff] }
 0x35a   :  { %2607 = vst.msk [vmem:[#allocation2 + $0x98] sm:$0x3] %vm2568_vm7, %v2498_v49  ;;  %2515 = vrot.lane.b32.xlu1 %v1640_v4, %s5738_s21 }
 0x35b   :  { %2706 = vrot.lane.b32.xlu0 %v1624_v39, %s5740_s23 }
 0x35c   :  { %v2500_v34 = vpop.permute.xlu1 %2499  ;;  %v5703_v27 = vld.sshfl [vmem:[#allocation2 + $0x88] sm:$0xff pattern:$0x76325410] }
 0x35d   :  { %2608 = vst.msk [vmem:[#allocation2 + $0x9c] sm:$0x3] %vm2568_vm7, %v2500_v34  ;;  %v1911_v14 = vpop.permute.xlu0 %1910  ;;  %v3517_v50 = vcombine.high %v5702_v63, %v5703_v27  ;;  %v3516_v40 = vcombine.low %v5702_v63, %v5703_v27  ;;  %v5671_v63 = vld [vmem:[%s8555_s1 + $0x58] sm:$0xff] }
 0x35e   :  { %2018 = vst.msk [vmem:[#allocation2 + $0xa0] sm:$0x3] %vm1977_vm4, %v1911_v14  ;;  %2708 = vrot.lane.b32.xlu1 %v1625_v59, %s5740_s23 }
 0x35f   :  { %2710 = vrot.lane.b32.xlu0 %v1641_v23, %s5740_s23  ;;  %5194 = vmatprep.mubr.msk.f32.mxu1 %vm3668_vm11, %v3517_v50  ;;  %v49_v23 = vld [vmem:[%s8555_s1 + $0xe8] sm:$0xff]  ;;  %v5672_v50 = vld [vmem:[%s8555_s1 + $0x50] sm:$0xff] }
 0x360   :  { %v1913_v47 = vpop.permute.xlu1 %1912  ;;  %3800 = vmatmul.mubr.f32.gmra.mxu1 %v3516_v40 }
 0x361   :  { %2019 = vst.msk [vmem:[#allocation2 + $0xa4] sm:$0x3] %vm1977_vm4, %v1913_v47  ;;  %v1915_v30 = vpop.permute.xlu0 %1914 }
 0x362   :  { %2020 = vst.msk [vmem:[#allocation2 + $0xa8] sm:$0x3] %vm1977_vm4, %v1915_v30  ;;  %2712 = vrot.lane.b32.xlu1 %v1642_v35, %s5740_s23  ;;  %v44_v30 = vld [vmem:[%s8555_s1 + $0xc0] sm:$0xff] }
 0x363   :  { %2903 = vrot.lane.b32.xlu0 %v7323_v22, %s5741_s5 }
 0x364   :  { %v1917_v32 = vpop.permute.xlu1 %1916 }
 0x365   :  { %2021 = vst.msk [vmem:[#allocation2 + $0xac] sm:$0x3] %vm1977_vm4, %v1917_v32  ;;  %v2691_v56 = vpop.permute.xlu0 %2690 }
 0x366   :  { %2802 = vst.msk [vmem:[#allocation2 + $0x90] sm:$0x3] %vm2765_vm8, %v2691_v56  ;;  %2905 = vrot.lane.b32.xlu1 %v7332_v31, %s5741_s5  ;;  %v5673_v56 = vld [vmem:[%s8555_s1 + $0x48] sm:$0xff] }
 0x367   :  { %2907 = vrot.lane.b32.xlu0 %v7340_v44, %s5741_s5  ;;  %v1650_v44 = vrot.slane %v7632_v33, %v6064_v10 }
 0x368   :  { %v2693_v41 = vpop.permute.xlu1 %2692 }
 0x369   :  { %2803 = vst.msk [vmem:[#allocation2 + $0x94] sm:$0x3] %vm2765_vm8, %v2693_v41  ;;  %v2695_v9 = vpop.permute.xlu0 %2694  ;;  %v1658_v25 = vcombine.high %v1650_v44, %v1650_v44 }
 0x36a   :  { %2804 = vst.msk [vmem:[#allocation2 + $0x98] sm:$0x3] %vm2765_vm8, %v2695_v9  ;;  %2909 = vrot.lane.b32.xlu1 %v7349_v2, %s5741_s5 }
 0x36b   :  { %3100 = vrot.lane.b32.xlu0 %v1676_v19, %s5734_s27 }
 0x36c   :  { %v2697_v58 = vpop.permute.xlu1 %2696 }
 0x36d   :  { %2805 = vst.msk [vmem:[#allocation2 + $0x9c] sm:$0x3] %vm2765_vm8, %v2697_v58  ;;  %v2108_v55 = vpop.permute.xlu0 %2107 }
 0x36e   :  { %2215 = vst.msk [vmem:[#allocation2 + $0xa0] sm:$0x3] %vm2174_vm5, %v2108_v55  ;;  %3102 = vrot.lane.b32.xlu1 %v1692_v60, %s5734_s27 }
 0x36f   :  { %3104 = vrot.lane.b32.xlu0 %v1693_v62, %s5734_s27 }
 0x370   :  { %v2110_v22 = vpop.permute.xlu1 %2109 }
 0x371   :  { %2216 = vst.msk [vmem:[#allocation2 + $0xa4] sm:$0x3] %vm2174_vm5, %v2110_v22  ;;  %v2112_v21 = vpop.permute.xlu0 %2111 }
 0x372   :  { %2217 = vst.msk [vmem:[#allocation2 + $0xa8] sm:$0x3] %vm2174_vm5, %v2112_v21  ;;  %3106 = vrot.lane.b32.xlu1 %v1709_v48, %s5734_s27 }
 0x373   :  { %1926 = vrot.lane.b32.xlu0 %v7681_v53, %s5736_s11  ;;  %v48_v53 = vld [vmem:[%s8555_s1 + $0xe0] sm:$0xff] }
 0x374   :  { %v2114_v31 = vpop.permute.xlu1 %2113 }
 0x375   :  { %2218 = vst.msk [vmem:[#allocation2 + $0xac] sm:$0x3] %vm2174_vm5, %v2114_v31  ;;  %v2888_v3 = vpop.permute.xlu0 %2887 }
 0x376   :  { %2999 = vst.msk [vmem:[#allocation2 + $0x90] sm:$0x3] %vm2962_vm9, %v2888_v3  ;;  %2123 = vrot.lane.b32.xlu1 %v7252_v61, %s5737_s12 }
 0x377   :  { %2320 = vrot.lane.b32.xlu0 %v1642_v35, %s5739_s22  ;;  %v45_v35 = vld [vmem:[%s8555_s1 + $0xc8] sm:$0xff] }
 0x378   :  { %v2890_v2 = vpop.permute.xlu1 %2889  ;;  %v7752_v33 = vpop.f32.mrf.mxu1 }
 0x379   :  { %3000 = vst.msk [vmem:[#allocation2 + $0x94] sm:$0x3] %vm2962_vm9, %v2890_v2  ;;  %v2892_v11 = vpop.permute.xlu0 %2891 }
 0x37a   :  { %3001 = vst.msk [vmem:[#allocation2 + $0x98] sm:$0x3] %vm2962_vm9, %v2892_v11  ;;  %2517 = vrot.lane.b32.xlu1 %v1650_v44, %s5738_s21  ;;  %v3788_v61 = vpop.f32.mrf.mxu1 }
 0x37b   :  { %2714 = vrot.lane.b32.xlu0 %v1658_v25, %s5740_s23 }
 0x37c   :  { %v2894_v15 = vpop.permute.xlu1 %2893 }
 0x37d   :  { %3002 = vst.msk [vmem:[#allocation2 + $0x9c] sm:$0x3] %vm2962_vm9, %v2894_v15  ;;  %v2305_v8 = vpop.permute.xlu0 %2304 }
 0x37e   :  { %2412 = vst.msk [vmem:[#allocation2 + $0xa0] sm:$0x3] %vm2371_vm6, %v2305_v8  ;;  %2911 = vrot.lane.b32.xlu1 %v7357_v16, %s5741_s5 }
 0x37f   :  { %3108 = vrot.lane.b32.xlu0 %v1710_v38, %s5734_s27 }
 0x380   :  { %v2307_v20 = vpop.permute.xlu1 %2306 }
 0x381   :  { %2413 = vst.msk [vmem:[#allocation2 + $0xa4] sm:$0x3] %vm2371_vm6, %v2307_v20  ;;  %v2309_v39 = vpop.permute.xlu0 %2308 }
 0x382   :  { %2414 = vst.msk [vmem:[#allocation2 + $0xa8] sm:$0x3] %vm2371_vm6, %v2309_v39  ;;  %3665 = vrot.lane.b32.xlu1 %v7769_v45, %s5734_s27 }
 0x383   :  { %4510 = vrot.lane.b32.xlu0 %v51_v52, %s5740_s23 }
 0x384   :  { %v2311_v16 = vpop.permute.xlu1 %2310 }
 0x385   :  { %2415 = vst.msk [vmem:[#allocation2 + $0xac] sm:$0x3] %vm2371_vm6, %v2311_v16  ;;  %v3085_v59 = vpop.permute.xlu0 %3084 }
 0x386   :  { %3196 = vst.msk [vmem:[#allocation2 + $0x90] sm:$0x3] %vm3159_vm10, %v3085_v59  ;;  %4478 = vrot.lane.b32.xlu1 %v5667_v5, %s5740_s23 }
 0x387   :  { %4508 = vrot.lane.b32.xlu0 %v50_v42, %s5740_s23 }
 0x388   :  { %v3087_v51 = vpop.permute.xlu1 %3086 }
 0x389   :  { %3197 = vst.msk [vmem:[#allocation2 + $0x94] sm:$0x3] %vm3159_vm10, %v3087_v51  ;;  %v3089_v36 = vpop.permute.xlu0 %3088 }
 0x38a   :  { %3198 = vst.msk [vmem:[#allocation2 + $0x98] sm:$0x3] %vm3159_vm10, %v3089_v36  ;;  %4476 = vrot.lane.b32.xlu1 %v5668_v0, %s5740_s23 }
 0x38b   :  { %4506 = vrot.lane.b32.xlu0 %v49_v23, %s5740_s23 }
 0x38c   :  { %v3091_v43 = vpop.permute.xlu1 %3090 }
 0x38d   :  { %3199 = vst.msk [vmem:[#allocation2 + $0x9c] sm:$0x3] %vm3159_vm10, %v3091_v43  ;;  %v2502_v12 = vpop.permute.xlu0 %2501 }
 0x38e   :  { %2609 = vst.msk [vmem:[#allocation2 + $0xa0] sm:$0x3] %vm2568_vm7, %v2502_v12  ;;  %4474 = vrot.lane.b32.xlu1 %v5669_v29, %s5740_s23 }
 0x38f   :  { %4504 = vrot.lane.b32.xlu0 %v48_v53, %s5740_s23 }
 0x390   :  { %v2504_v6 = vpop.permute.xlu1 %2503  ;;  %v5704_v28 = vld.sshfl [vmem:[#allocation2 + $0x90] sm:$0xff pattern:$0x76325410] }
 0x391   :  { %2610 = vst.msk [vmem:[#allocation2 + $0xa4] sm:$0x3] %vm2568_vm7, %v2504_v6  ;;  %v2506_v7 = vpop.permute.xlu0 %2505 }
 0x392   :  { %2611 = vst.msk [vmem:[#allocation2 + $0xa8] sm:$0x3] %vm2568_vm7, %v2506_v7  ;;  %4472 = vrot.lane.b32.xlu1 %v5670_v24, %s5740_s23 }
 0x393   :  { %4502 = vrot.lane.b32.xlu0 %v47_v46, %s5740_s23 }
 0x394   :  { %v2508_v26 = vpop.permute.xlu1 %2507  ;;  %v5705_v4 = vld.sshfl [vmem:[#allocation2 + $0x98] sm:$0xff pattern:$0x76325410] }
 0x395   :  { %2612 = vst.msk [vmem:[#allocation2 + $0xac] sm:$0x3] %vm2568_vm7, %v2508_v26  ;;  %v1919_v49 = vpop.permute.xlu0 %1918  ;;  %v3535_v27 = vcombine.high %v5704_v28, %v5705_v4  ;;  %v3534_v14 = vcombine.low %v5704_v28, %v5705_v4 }
 0x396   :  { %2022 = vst.msk [vmem:[#allocation2 + $0xb0] sm:$0x3] %vm1977_vm4, %v1919_v49  ;;  %4470 = vrot.lane.b32.xlu1 %v5671_v63, %s5740_s23 }
 0x397   :  { %4500 = vrot.lane.b32.xlu0 %v46_v13, %s5740_s23  ;;  %5195 = vmatprep.mubr.msk.f32.mxu1 %vm3668_vm11, %v3535_v27 }
 0x398   :  { %v1921_v34 = vpop.permute.xlu1 %1920  ;;  %3805 = vmatmul.mubr.f32.gmra.mxu1 %v3534_v14 }
 0x399   :  { %2023 = vst.msk [vmem:[#allocation2 + $0xb4] sm:$0x3] %vm1977_vm4, %v1921_v34  ;;  %v1923_v47 = vpop.permute.xlu0 %1922 }
 0x39a   :  { %2024 = vst.msk [vmem:[#allocation2 + $0xb8] sm:$0x3] %vm1977_vm4, %v1923_v47  ;;  %4468 = vrot.lane.b32.xlu1 %v5672_v50, %s5740_s23 }
 0x39b   :  { %4498 = vrot.lane.b32.xlu0 %v45_v35, %s5740_s23 }
 0x39c   :  { %v1925_v40 = vpop.permute.xlu1 %1924 }
 0x39d   :  { %2025 = vst.msk [vmem:[#allocation2 + $0xbc] sm:$0x3] %vm1977_vm4, %v1925_v40  ;;  %v2699_v32 = vpop.permute.xlu0 %2698 }
 0x39e   :  { %2806 = vst.msk [vmem:[#allocation2 + $0xa0] sm:$0x3] %vm2765_vm8, %v2699_v32  ;;  %4466 = vrot.lane.b32.xlu1 %v5673_v56, %s5740_s23 }
 0x39f   :  { %4496 = vrot.lane.b32.xlu0 %v44_v30, %s5740_s23 }
 0x3a0   :  { %v2701_v41 = vpop.permute.xlu1 %2700 }
 0x3a1   :  { %2807 = vst.msk [vmem:[#allocation2 + $0xa4] sm:$0x3] %vm2765_vm8, %v2701_v41  ;;  %v2703_v9 = vpop.permute.xlu0 %2702 }
 0x3a2   :  { %2808 = vst.msk [vmem:[#allocation2 + $0xa8] sm:$0x3] %vm2765_vm8, %v2703_v9 }
 0x3a4   :  { %v2705_v19 = vpop.permute.xlu1 %2704 }
 0x3a5   :  { %2809 = vst.msk [vmem:[#allocation2 + $0xac] sm:$0x3] %vm2765_vm8, %v2705_v19  ;;  %v2116_v58 = vpop.permute.xlu0 %2115 }
 0x3a6   :  { %2219 = vst.msk [vmem:[#allocation2 + $0xb0] sm:$0x3] %vm2174_vm5, %v2116_v58 }
 0x3a8   :  { %v2118_v60 = vpop.permute.xlu1 %2117 }
 0x3a9   :  { %2220 = vst.msk [vmem:[#allocation2 + $0xb4] sm:$0x3] %vm2174_vm5, %v2118_v60  ;;  %v2120_v55 = vpop.permute.xlu0 %2119 }
 0x3aa   :  { %2221 = vst.msk [vmem:[#allocation2 + $0xb8] sm:$0x3] %vm2174_vm5, %v2120_v55 }
 0x3ac   :  { %v2122_v62 = vpop.permute.xlu1 %2121 }
 0x3ad   :  { %2222 = vst.msk [vmem:[#allocation2 + $0xbc] sm:$0x3] %vm2174_vm5, %v2122_v62  ;;  %v2896_v22 = vpop.permute.xlu0 %2895 }
 0x3ae   :  { %3003 = vst.msk [vmem:[#allocation2 + $0xa0] sm:$0x3] %vm2962_vm9, %v2896_v22 }
 0x3b0   :  { %v2898_v48 = vpop.permute.xlu1 %2897  ;;  %v7855_v31 = vpop.f32.mrf.mxu1 }
 0x3b1   :  { %3004 = vst.msk [vmem:[#allocation2 + $0xa4] sm:$0x3] %vm2962_vm9, %v2898_v48  ;;  %v2900_v21 = vpop.permute.xlu0 %2899 }
 0x3b2   :  { %3005 = vst.msk [vmem:[#allocation2 + $0xa8] sm:$0x3] %vm2962_vm9, %v2900_v21  ;;  %v3793_v2 = vpop.f32.mrf.mxu1 }
 0x3b4   :  { %v2902_v44 = vpop.permute.xlu1 %2901 }
 0x3b5   :  { %3006 = vst.msk [vmem:[#allocation2 + $0xac] sm:$0x3] %vm2962_vm9, %v2902_v44  ;;  %v2313_v3 = vpop.permute.xlu0 %2312 }
 0x3b6   :  { %2416 = vst.msk [vmem:[#allocation2 + $0xb0] sm:$0x3] %vm2371_vm6, %v2313_v3 }
 0x3b8   :  { %v2315_v25 = vpop.permute.xlu1 %2314 }
 0x3b9   :  { %2417 = vst.msk [vmem:[#allocation2 + $0xb4] sm:$0x3] %vm2371_vm6, %v2315_v25  ;;  %v2317_v11 = vpop.permute.xlu0 %2316 }
 0x3ba   :  { %2418 = vst.msk [vmem:[#allocation2 + $0xb8] sm:$0x3] %vm2371_vm6, %v2317_v11 }
 0x3bc   :  { %v2319_v15 = vpop.permute.xlu1 %2318 }
 0x3bd   :  { %2419 = vst.msk [vmem:[#allocation2 + $0xbc] sm:$0x3] %vm2371_vm6, %v2319_v15  ;;  %v3093_v8 = vpop.permute.xlu0 %3092 }
 0x3be   :  { %3200 = vst.msk [vmem:[#allocation2 + $0xa0] sm:$0x3] %vm3159_vm10, %v3093_v8 }
 0x3c0   :  { %v3095_v61 = vpop.permute.xlu1 %3094 }
 0x3c1   :  { %3201 = vst.msk [vmem:[#allocation2 + $0xa4] sm:$0x3] %vm3159_vm10, %v3095_v61  ;;  %v3097_v38 = vpop.permute.xlu0 %3096 }
 0x3c2   :  { %3202 = vst.msk [vmem:[#allocation2 + $0xa8] sm:$0x3] %vm3159_vm10, %v3097_v38 }
 0x3c4   :  { %v3099_v20 = vpop.permute.xlu1 %3098 }
 0x3c5   :  { %3203 = vst.msk [vmem:[#allocation2 + $0xac] sm:$0x3] %vm3159_vm10, %v3099_v20  ;;  %v2510_v52 = vpop.permute.xlu0 %2509 }
 0x3c6   :  { %2613 = vst.msk [vmem:[#allocation2 + $0xb0] sm:$0x3] %vm2568_vm7, %v2510_v52 }
 0x3c8   :  { %v2512_v39 = vpop.permute.xlu1 %2511  ;;  %v5706_v42 = vld.sshfl [vmem:[#allocation2 + $0xa0] sm:$0xff pattern:$0x76325410] }
 0x3c9   :  { %2614 = vst.msk [vmem:[#allocation2 + $0xb4] sm:$0x3] %vm2568_vm7, %v2512_v39  ;;  %v2514_v16 = vpop.permute.xlu0 %2513 }
 0x3ca   :  { %2615 = vst.msk [vmem:[#allocation2 + $0xb8] sm:$0x3] %vm2568_vm7, %v2514_v16 }
 0x3cc   :  { %v2516_v59 = vpop.permute.xlu1 %2515  ;;  %v5707_v5 = vld.sshfl [vmem:[#allocation2 + $0xa8] sm:$0xff pattern:$0x76325410] }
 0x3cd   :  { %2616 = vst.msk [vmem:[#allocation2 + $0xbc] sm:$0x3] %vm2568_vm7, %v2516_v59  ;;  %v2707_v51 = vpop.permute.xlu0 %2706  ;;  %v3553_v36 = vcombine.high %v5706_v42, %v5707_v5  ;;  %v3552_v0 = vcombine.low %v5706_v42, %v5707_v5 }
 0x3ce   :  { %2810 = vst.msk [vmem:[#allocation2 + $0xb0] sm:$0x3] %vm2765_vm8, %v2707_v51 }
 0x3cf   :  { %5196 = vmatprep.mubr.msk.f32.mxu1 %vm3668_vm11, %v3553_v36 }
 0x3d0   :  { %v2709_v23 = vpop.permute.xlu1 %2708  ;;  %3810 = vmatmul.mubr.f32.gmra.mxu1 %v3552_v0 }
 0x3d1   :  { %2811 = vst.msk [vmem:[#allocation2 + $0xb4] sm:$0x3] %vm2765_vm8, %v2709_v23  ;;  %v2711_v43 = vpop.permute.xlu0 %2710 }
 0x3d2   :  { %2812 = vst.msk [vmem:[#allocation2 + $0xb8] sm:$0x3] %vm2765_vm8, %v2711_v43 }
 0x3d4   :  { %v2713_v53 = vpop.permute.xlu1 %2712 }
 0x3d5   :  { %2813 = vst.msk [vmem:[#allocation2 + $0xbc] sm:$0x3] %vm2765_vm8, %v2713_v53  ;;  %v2904_v12 = vpop.permute.xlu0 %2903 }
 0x3d6   :  { %3007 = vst.msk [vmem:[#allocation2 + $0xb0] sm:$0x3] %vm2962_vm9, %v2904_v12 }
 0x3d8   :  { %v2906_v29 = vpop.permute.xlu1 %2905 }
 0x3d9   :  { %3008 = vst.msk [vmem:[#allocation2 + $0xb4] sm:$0x3] %vm2962_vm9, %v2906_v29  ;;  %v2908_v6 = vpop.permute.xlu0 %2907 }
 0x3da   :  { %3009 = vst.msk [vmem:[#allocation2 + $0xb8] sm:$0x3] %vm2962_vm9, %v2908_v6 }
 0x3dc   :  { %v2910_v46 = vpop.permute.xlu1 %2909 }
 0x3dd   :  { %3010 = vst.msk [vmem:[#allocation2 + $0xbc] sm:$0x3] %vm2962_vm9, %v2910_v46  ;;  %v3101_v7 = vpop.permute.xlu0 %3100 }
 0x3de   :  { %3204 = vst.msk [vmem:[#allocation2 + $0xb0] sm:$0x3] %vm3159_vm10, %v3101_v7 }
 0x3e0   :  { %v3103_v28 = vpop.permute.xlu1 %3102 }
 0x3e1   :  { %3205 = vst.msk [vmem:[#allocation2 + $0xb4] sm:$0x3] %vm3159_vm10, %v3103_v28  ;;  %v3105_v24 = vpop.permute.xlu0 %3104 }
 0x3e2   :  { %3206 = vst.msk [vmem:[#allocation2 + $0xb8] sm:$0x3] %vm3159_vm10, %v3105_v24 }
 0x3e4   :  { %v3107_v26 = vpop.permute.xlu1 %3106 }
 0x3e5   :  { %3207 = vst.msk [vmem:[#allocation2 + $0xbc] sm:$0x3] %vm3159_vm10, %v3107_v26  ;;  %v1927_v4 = vpop.permute.xlu0 %1926 }
 0x3e6   :  { %2026 = vst.msk [vmem:[#allocation2 + $0xc0] sm:$0x3] %vm1977_vm4, %v1927_v4  ;;  %vm5110_vm4 = vcmask 74752  }
 0x3e8   :  { %v2124_v13 = vpop.permute.xlu1 %2123  ;;  %v5708_v63 = vld.sshfl [vmem:[#allocation2 + $0xb0] sm:$0xff pattern:$0x76325410]  ;;  %v3796_v34 = vpop.f32.mrf.mxu1 }
 0x3e9   :  { %2223 = vst.msk [vmem:[#allocation2 + $0xc0] sm:$0x3] %vm2174_vm5, %v2124_v13  ;;  %v2321_v49 = vpop.permute.xlu0 %2320 }
 0x3ea   :  { %2420 = vst.msk [vmem:[#allocation2 + $0xc0] sm:$0x3] %vm2371_vm6, %v2321_v49  ;;  %v3798_v47 = vpop.f32.mrf.mxu1 }
 0x3ec   :  { %v2518_v27 = vpop.permute.xlu1 %2517  ;;  %v5709_v14 = vld.sshfl [vmem:[#allocation2 + $0xb8] sm:$0xff pattern:$0x76325410] }
 0x3ed   :  { %2617 = vst.msk [vmem:[#allocation2 + $0xc0] sm:$0x3] %vm2568_vm7, %v2518_v27  ;;  %v2715_v35 = vpop.permute.xlu0 %2714  ;;  %v3571_v40 = vcombine.high %v5708_v63, %v5709_v14  ;;  %v3570_v30 = vcombine.low %v5708_v63, %v5709_v14 }
 0x3ee   :  { %2814 = vst.msk [vmem:[#allocation2 + $0xc0] sm:$0x3] %vm2765_vm8, %v2715_v35 }
 0x3ef   :  { %5197 = vmatprep.mubr.msk.f32.mxu1 %vm3668_vm11, %v3571_v40 }
 0x3f0   :  { %v2912_v50 = vpop.permute.xlu1 %2911  ;;  %3815 = vmatmul.mubr.f32.gmra.mxu1 %v3570_v30 }
 0x3f1   :  { %3011 = vst.msk [vmem:[#allocation2 + $0xc0] sm:$0x3] %vm2962_vm9, %v2912_v50  ;;  %v3109_v32 = vpop.permute.xlu0 %3108 }
 0x3f2   :  { %3208 = vst.msk [vmem:[#allocation2 + $0xc0] sm:$0x3] %vm3159_vm10, %v3109_v32 }
 0x3f4   :  { %v7891_v56 = vpop.permute.xlu1 %3665 }
 0x3f5   :  { %v3762_v41 = vadd.f32 %v7582_v54, %v7891_v56  ;;  %v3767_v9 = vadd.f32 %v7590_v18, %v7891_v56  ;;  %v3777_v19 = vadd.f32 %v7604_v17, %v7891_v56  ;;  %v3772_v58 = vadd.f32 %v7597_v37, %v7891_v56  ;;  %v4511_v60 = vpop.permute.xlu0 %4510 }
 0x3f6   :  { %v3787_v55 = vadd.f32 %v7752_v33, %v7891_v56  ;;  %v3782_v62 = vadd.f32 %v7667_v57, %v7891_v56  ;;  %v3797_v22 = vadd.f32 %v3796_v34, %v7891_v56  ;;  %5265 = vmatprep.subr.mxu1 %v4511_v60  ;;  %v3792_v37 = vadd.f32 %v7855_v31, %v7891_v56 }
 0x3f7   :  { %v3825_v54 = vmax.f32 %v3762_v41, 0.0  ;;  %v7906_v48 = vmax.f32 %v3767_v9, 0.0  ;;  %v3828_v18 = vmax.f32 %v3777_v19, 0.0  ;;  %v3827_v21 = vmax.f32 %v3772_v58, 0.0  ;;  %v5674_v41 = vld [vmem:[%s8555_s1 + $0x40] sm:$0xff] }
 0x3f8   :  { %v3830_v44 = vmax.f32 %v3787_v55, 0.0  ;;  %v3829_v17 = vmax.f32 %v3782_v62, 0.0  ;;  %v4479_v3 = vpop.permute.xlu1 %4478  ;;  %v3832_v16 = vmax.f32 %v3797_v22, 0.0  ;;  %v3831_v5 = vmax.f32 %v3792_v37, 0.0  ;;  %v43_v62 = vld [vmem:[%s8555_s1 + $0xb8] sm:$0xff] }
 0x3f9   :  { %v5185_v2 = vld.sshfl [vmem:[#allocation2 + $0xc0] sm:$0x33 pattern:$0x76325410]  ;;  %v3858_v33 = vrot.slane %v3825_v54, %v6064_v10  ;;  %v3851_v25 = vcombine.high %v3825_v54, %v3825_v54  ;;  %v7913_v57 = vrot.slane %v7906_v48, %v6064_v10  ;;  %v3902_v11 = vcombine.high %v3828_v18, %v3828_v18  ;;  %v4509_v15 = vpop.permute.xlu0 %4508  ;;  %5266 = vmatpush3.msra.mxu1 %v4479_v3 }
 0x3fa   :  { %v3579_v8 = vcombine.high %v5185_v2, %v5185_v2  ;;  %v3892_v61 = vrot.slane %v3827_v21, %v6064_v10  ;;  %v3885_v38 = vcombine.high %v3827_v21, %v3827_v21  ;;  %v7917_v20 = vrot.slane %v3828_v18, %v6064_v10  ;;  %5267 = vmatprep.subr.mxu1 %v4509_v15 }
 0x3fb   :  { %v3866_v31 = vcombine.high %v3858_v33, %v3858_v33  ;;  %v7920_v52 = vrot.slane %v3851_v25, %v6064_v10  ;;  %v7923_v39 = vrot.slane %v3902_v11, %v6064_v10  ;;  %4086 = vst.msk [vmem:[#allocation3] sm:$0x3] %vm4085_vm12, %v3858_v33  ;;  %4088 = vst.msk [vmem:[#allocation3 + $0xc] sm:$0x3] %vm4085_vm12, %v7913_v57  ;;  %v5675_v11 = vld [vmem:[%s8555_s1 + $0x38] sm:$0xff] }
 0x3fc   :  { %5198 = vmatprep.mubr.msk.f32.mxu1 %vm3668_vm11, %v3579_v8  ;;  %v3899_v42 = vrot.slane %v3885_v38, %v6064_v10  ;;  %v3936_v59 = vcombine.high %v3830_v44, %v3830_v44  ;;  %4206 = vst.msk [vmem:[#allocation3 + $0x2] sm:$0x3] %vm4085_vm12, %v3892_v61  ;;  %4208 = vst.msk [vmem:[#allocation3 + $0xe] sm:$0x3] %vm4085_vm12, %v7917_v20  ;;  %v4477_v51 = vpop.permute.xlu1 %4476  ;;  %v7942_v43 = vrot.slane %v3829_v17, %v6064_v10 }
 0x3fd   :  { %4095 = vrot.lane.b32.xlu1 %v3866_v31, %s5737_s12  ;;  %3820 = vmatmul.mubr.f32.gmra.mxu1 %v5185_v2  ;;  %v3867_v23 = vcombine.high %v7920_v52, %v7920_v52  ;;  %4087 = vst.msk [vmem:[#allocation3 + $0x6] sm:$0x3] %vm4085_vm12, %v7920_v52  ;;  %4089 = vst.msk [vmem:[#allocation3 + $0x12] sm:$0x3] %vm4085_vm12, %v7923_v39  ;;  %v4507_v36 = vpop.permute.xlu0 %4506  ;;  %v3919_v53 = vcombine.high %v3829_v17, %v3829_v17 }
 0x3fe   :  { %v3950_v0 = vrot.slane %v3936_v59, %v6064_v10  ;;  %4207 = vst.msk [vmem:[#allocation3 + $0x8] sm:$0x3] %vm4085_vm12, %v3899_v42  ;;  %5268 = vmatpush3.msra.mxu1 %v4477_v51  ;;  %v3883_v12 = vcombine.high %v7913_v57, %v7913_v57  ;;  %v3970_v29 = vcombine.high %v3832_v16, %v3832_v16  ;;  %4311 = vst.msk [vmem:[#allocation3 + $0x4] sm:$0x3] %vm4085_vm12, %v7942_v43  ;;  %v5676_v51 = vld [vmem:[%s8555_s1 + $0x30] sm:$0xff] }
 0x3ff   :  { %4097 = vrot.lane.b32.xlu0 %v3867_v23, %s5737_s12  ;;  %v7949_v6 = vrot.slane %v3832_v16, %v6064_v10  ;;  %v7952_v46 = vrot.slane %v3830_v44, %v6064_v10  ;;  %4090 = vst.msk [vmem:[#allocation3 + $0x18] sm:$0x3] %vm4085_vm12, %v7942_v43  ;;  %v7960_v7 = vrot.slane %v3919_v53, %v6064_v10 }
 0x400   :  { %4209 = vst.msk [vmem:[#allocation3 + $0x14] sm:$0x3] %vm4085_vm12, %v3950_v0  ;;  %v7963_v28 = vrot.slane %v3831_v5, %v6064_v10  ;;  %v4475_v24 = vpop.permute.xlu1 %4474  ;;  %5269 = vmatprep.subr.mxu1 %v4507_v36  ;;  %v3918_v26 = vcombine.high %v7923_v39, %v7923_v39  ;;  %v7969_v4 = vrot.slane %v3970_v29, %v6064_v10 }
 0x401   :  { %4099 = vrot.lane.b32.xlu1 %v3883_v12, %s5737_s12  ;;  %4092 = vst.msk [vmem:[#allocation3 + $0x24] sm:$0x3] %vm4085_vm12, %v7949_v6  ;;  %4313 = vst.msk [vmem:[#allocation3 + $0x10] sm:$0x3] %vm4085_vm12, %v7952_v46  ;;  %v4505_v13 = vpop.permute.xlu0 %4504  ;;  %v3953_v49 = vcombine.high %v3831_v5, %v3831_v5  ;;  %5270 = vmatpush3.msra.mxu1 %v4475_v24  ;;  %v3900_v63 = vcombine.high %v3892_v61, %v3892_v61 }
 0x402   :  { %4312 = vst.msk [vmem:[#allocation3 + $0xa] sm:$0x3] %vm4085_vm12, %v7960_v7  ;;  %4091 = vst.msk [vmem:[#allocation3 + $0x1e] sm:$0x3] %vm4085_vm12, %v7960_v7  ;;  %5271 = vmatprep.subr.mxu1 %v4505_v13  ;;  %v3901_v14 = vcombine.high %v3899_v42, %v3899_v42  ;;  %v3917_v47 = vcombine.high %v7917_v20, %v7917_v20  ;;  %v7996_v40 = vcombine.high %v3950_v0, %v3950_v0 }
 0x403   :  { %4210 = vst.msk [vmem:[#allocation3 + $0x1a] sm:$0x3] %vm4085_vm12, %v7963_v28  ;;  %4101 = vrot.lane.b32.xlu0 %v3918_v26, %s5737_s12  ;;  %4314 = vst.msk [vmem:[#allocation3 + $0x16] sm:$0x3] %vm4085_vm12, %v7969_v4  ;;  %v7987_v34 = vrot.slane %v3953_v49, %v6064_v10  ;;  %v3868_v9 = vcombine.high %v7906_v48, %v7906_v48  ;;  %v3951_v48 = vcombine.high %v7952_v46, %v7952_v46 }
 0x404   :  { %4093 = vst.msk [vmem:[#allocation3 + $0x2a] sm:$0x3] %vm4085_vm12, %v7969_v4  ;;  %v4473_v27 = vpop.permute.xlu1 %4472  ;;  %v3934_v17 = vcombine.high %v7942_v43, %v7942_v43  ;;  %v3935_v2 = vcombine.high %v7960_v7, %v7960_v7  ;;  %v3985_v25 = vcombine.high %v7949_v6, %v7949_v6  ;;  %v8066_v15 = vcombine.high %v7969_v4, %v7969_v4 }
 0x405   :  { %4215 = vrot.lane.b32.xlu1 %v3900_v63, %s5737_s12  ;;  %v4503_v35 = vpop.permute.xlu0 %4502  ;;  %5272 = vmatpush3.msra.mxu1 %v4473_v27  ;;  %4211 = vst.msk [vmem:[#allocation3 + $0x20] sm:$0x3] %vm4085_vm12, %v7987_v34  ;;  %v3882_v60 = vrot.slane %v3868_v9, %v6064_v10  ;;  %v8072_v8 = vcombine.high %v7963_v28, %v7963_v28 }
 0x406   :  { %5273 = vmatprep.subr.mxu1 %v4503_v35  ;;  %v3969_v61 = vcombine.high %v7987_v34, %v7987_v34 }
 0x407   :  { %4217 = vrot.lane.b32.xlu0 %v3901_v14, %s5737_s12  ;;  %v3884_v22 = vcombine.high %v3882_v60, %v3882_v60 }
 0x408   :  { %v4471_v50 = vpop.permute.xlu1 %4470 }
 0x409   :  { %4219 = vrot.lane.b32.xlu1 %v3917_v47, %s5737_s12  ;;  %v4501_v30 = vpop.permute.xlu0 %4500  ;;  %5274 = vmatpush3.msra.mxu1 %v4471_v50 }
 0x40a   :  { %5275 = vmatprep.subr.mxu1 %v4501_v30 }
 0x40b   :  { %4221 = vrot.lane.b32.xlu0 %v7996_v40, %s5737_s12 }
 0x40c   :  { %v4469_v32 = vpop.permute.xlu1 %4468 }
 0x40d   :  { %4464 = vrot.lane.b32.xlu1 %v5674_v41, %s5740_s23  ;;  %v4499_v19 = vpop.permute.xlu0 %4498  ;;  %5276 = vmatpush3.msra.mxu1 %v4469_v32 }
 0x40e   :  { %5277 = vmatprep.subr.mxu1 %v4499_v19 }
 0x40f   :  { %4132 = vrot.lane.b32.xlu0 %v7920_v52, %s5738_s21 }
 0x410   :  { %v4467_v58 = vpop.permute.xlu1 %4466 }
 0x411   :  { %4134 = vrot.lane.b32.xlu1 %v7913_v57, %s5738_s21  ;;  %v4497_v55 = vpop.permute.xlu0 %4496  ;;  %5278 = vmatpush3.msra.mxu1 %v4467_v58  ;;  %v42_v57 = vld [vmem:[%s8555_s1 + $0xb0] sm:$0xff] }
 0x412   :  { %5279 = vmatprep.subr.mxu1 %v4497_v55 }
 0x413   :  { %4136 = vrot.lane.b32.xlu0 %v3882_v60, %s5738_s21 }
 0x415   :  { %4138 = vrot.lane.b32.xlu1 %v7942_v43, %s5738_s21 }
 0x417   :  { %4140 = vrot.lane.b32.xlu0 %v7960_v7, %s5738_s21 }
 0x419   :  { %4251 = vrot.lane.b32.xlu1 %v7923_v39, %s5738_s21 }
 0x41b   :  { %4253 = vrot.lane.b32.xlu0 %v7949_v6, %s5738_s21 }
 0x41d   :  { %4494 = vrot.lane.b32.xlu1 %v43_v62, %s5740_s23  ;;  %v41_v62 = vld [vmem:[%s8555_s1 + $0xa8] sm:$0xff] }
 0x41f   :  { %4169 = vrot.lane.b32.xlu0 %v3884_v22, %s5741_s5 }
 0x420   :  { %v3801_v54 = vpop.f32.mrf.mxu1 }
 0x421   :  { %4171 = vrot.lane.b32.xlu1 %v3900_v63, %s5741_s5  ;;  %v3802_v18 = vadd.f32 %v3801_v54, %v7891_v56 }
 0x422   :  { %v3803_v21 = vpop.f32.mrf.mxu1 }
 0x423   :  { %4173 = vrot.lane.b32.xlu0 %v3901_v14, %s5741_s5  ;;  %v3833_v44 = vmax.f32 %v3802_v18, 0.0 }
 0x425   :  { %4175 = vrot.lane.b32.xlu1 %v3951_v48, %s5741_s5  ;;  %v3987_v37 = vcombine.high %v3833_v44, %v3833_v44  ;;  %v8035_v3 = vrot.slane %v3833_v44, %v6064_v10 }
 0x427   :  { %4275 = vrot.lane.b32.xlu0 %v3918_v26, %s5741_s5  ;;  %v8041_v33 = vrot.slane %v3987_v37, %v6064_v10  ;;  %4315 = vst.msk [vmem:[#allocation3 + $0x1c] sm:$0x3] %vm4085_vm12, %v8035_v3  ;;  %4094 = vst.msk [vmem:[#allocation3 + $0x30] sm:$0x3] %vm4085_vm12, %v8035_v3 }
 0x429   :  { %4277 = vrot.lane.b32.xlu1 %v3934_v17, %s5741_s5  ;;  %4316 = vst.msk [vmem:[#allocation3 + $0x22] sm:$0x3] %vm4085_vm12, %v8041_v33 }
 0x42b   :  { %4279 = vrot.lane.b32.xlu0 %v3935_v2, %s5741_s5 }
 0x42d   :  { %4281 = vrot.lane.b32.xlu1 %v3985_v25, %s5741_s5 }
 0x42f   :  { %4462 = vrot.lane.b32.xlu0 %v5675_v11, %s5740_s23 }
 0x431   :  { %4492 = vrot.lane.b32.xlu1 %v42_v57, %s5740_s23  ;;  %v4002_v57 = vcombine.high %v8035_v3, %v8035_v3 }
 0x433   :  { %4103 = vrot.lane.b32.xlu0 %v3934_v17, %s5737_s12 }
 0x435   :  { %4105 = vrot.lane.b32.xlu1 %v3935_v2, %s5737_s12 }
 0x437   :  { %4107 = vrot.lane.b32.xlu0 %v3985_v25, %s5737_s12 }
 0x439   :  { %4109 = vrot.lane.b32.xlu1 %v8066_v15, %s5737_s12 }
 0x43b   :  { %4223 = vrot.lane.b32.xlu0 %v8072_v8, %s5737_s12 }
 0x43d   :  { %4225 = vrot.lane.b32.xlu1 %v3969_v61, %s5737_s12 }
 0x458   :  { %v3806_v38 = vpop.f32.mrf.mxu1 }
 0x459   :  { %v3807_v20 = vadd.f32 %v3806_v38, %v7891_v56 }
 0x45a   :  { %v3808_v31 = vpop.f32.mrf.mxu1 }
 0x45b   :  { %v3834_v52 = vmax.f32 %v3807_v20, 0.0 }
 0x45d   :  { %v4004_v39 = vcombine.high %v3834_v52, %v3834_v52  ;;  %v4011_v16 = vrot.slane %v3834_v52, %v6064_v10 }
 0x45f   :  { %v4018_v42 = vrot.slane %v4004_v39, %v6064_v10  ;;  %v8082_v59 = vcombine.high %v4011_v16, %v4011_v16  ;;  %4212 = vst.msk [vmem:[#allocation3 + $0x26] sm:$0x3] %vm4085_vm12, %v4011_v16 }
 0x461   :  { %v8085_v5 = vcombine.high %v4018_v42, %v4018_v42  ;;  %4213 = vst.msk [vmem:[#allocation3 + $0x2c] sm:$0x3] %vm4085_vm12, %v4018_v42  ;;  %4227 = vrot.lane.b32.xlu0 %v8082_v59, %s5737_s12 }
 0x463   :  { %4229 = vrot.lane.b32.xlu1 %v8085_v5, %s5737_s12 }
 0x465   :  { %4460 = vrot.lane.b32.xlu0 %v5676_v51, %s5740_s23 }
 0x467   :  { %4142 = vrot.lane.b32.xlu1 %v7952_v46, %s5738_s21 }
 0x469   :  { %4144 = vrot.lane.b32.xlu0 %v7969_v4, %s5738_s21 }
 0x46b   :  { %4146 = vrot.lane.b32.xlu1 %v8035_v3, %s5738_s21 }
 0x46f   :  { %v4096_v23 = vpop.permute.xlu1 %4095 }
 0x470   :  { %4123 = vst.msk [vmem:[#allocation3] sm:$0x3] %vm4122_vm13, %v4096_v23 }
 0x471   :  { %v4098_v36 = vpop.permute.xlu0 %4097 }
 0x472   :  { %4124 = vst.msk [vmem:[#allocation3 + $0x6] sm:$0x3] %vm4122_vm13, %v4098_v36  ;;  %v40_v36 = vld [vmem:[%s8555_s1 + $0xa0] sm:$0xff] }
 0x473   :  { %v4100_v0 = vpop.permute.xlu1 %4099 }
 0x474   :  { %4125 = vst.msk [vmem:[#allocation3 + $0xc] sm:$0x3] %vm4122_vm13, %v4100_v0 }
 0x475   :  { %v4102_v43 = vpop.permute.xlu0 %4101 }
 0x476   :  { %4126 = vst.msk [vmem:[#allocation3 + $0x12] sm:$0x3] %vm4122_vm13, %v4102_v43 }
 0x477   :  { %v4216_v53 = vpop.permute.xlu1 %4215 }
 0x478   :  { %4242 = vst.msk [vmem:[#allocation3 + $0x2] sm:$0x3] %vm4122_vm13, %v4216_v53 }
 0x479   :  { %v4218_v12 = vpop.permute.xlu0 %4217 }
 0x47a   :  { %4243 = vst.msk [vmem:[#allocation3 + $0x8] sm:$0x3] %vm4122_vm13, %v4218_v12  ;;  %v4003_v12 = vcombine.high %v8041_v33, %v8041_v33 }
 0x47b   :  { %v4220_v29 = vpop.permute.xlu1 %4219 }
 0x47c   :  { %4244 = vst.msk [vmem:[#allocation3 + $0xe] sm:$0x3] %vm4122_vm13, %v4220_v29  ;;  %v39_v29 = vld [vmem:[%s8555_s1 + $0x98] sm:$0xff] }
 0x47d   :  { %v4222_v6 = vpop.permute.xlu0 %4221 }
 0x47e   :  { %4245 = vst.msk [vmem:[#allocation3 + $0x14] sm:$0x3] %vm4122_vm13, %v4222_v6 }
 0x47f   :  { %v4465_v46 = vpop.permute.xlu1 %4464 }
 0x480   :  { %5280 = vmatpush3.msra.mxu1 %v4465_v46  ;;  %v38_v46 = vld [vmem:[%s8555_s1 + $0x90] sm:$0xff] }
 0x481   :  { %v4133_v7 = vpop.permute.xlu0 %4132 }
 0x482   :  { %4160 = vst.msk [vmem:[#allocation3] sm:$0x3] %vm4159_vm14, %v4133_v7  ;;  %v5677_v7 = vld [vmem:[%s8555_s1 + $0x28] sm:$0xff] }
 0x483   :  { %v4135_v28 = vpop.permute.xlu1 %4134 }
 0x484   :  { %4161 = vst.msk [vmem:[#allocation3 + $0x6] sm:$0x3] %vm4159_vm14, %v4135_v28 }
 0x485   :  { %v4137_v24 = vpop.permute.xlu0 %4136 }
 0x486   :  { %4162 = vst.msk [vmem:[#allocation3 + $0xc] sm:$0x3] %vm4159_vm14, %v4137_v24 }
 0x487   :  { %v4139_v26 = vpop.permute.xlu1 %4138 }
 0x488   :  { %4163 = vst.msk [vmem:[#allocation3 + $0x12] sm:$0x3] %vm4159_vm14, %v4139_v26  ;;  %4267 = vst.msk [vmem:[#allocation3 + $0x8] sm:$0x3] %vm4159_vm14, %v4139_v26  ;;  %v5679_v26 = vld [vmem:[%s8555_s1 + $0x88] sm:$0xff] }
 0x489   :  { %v4141_v4 = vpop.permute.xlu0 %4140 }
 0x48a   :  { %4268 = vst.msk [vmem:[#allocation3 + $0xe] sm:$0x3] %vm4159_vm14, %v4141_v4 }
 0x48b   :  { %v4252_v13 = vpop.permute.xlu1 %4251 }
 0x48c   :  { %4266 = vst.msk [vmem:[#allocation3 + $0x2] sm:$0x3] %vm4159_vm14, %v4252_v13 }
 0x48d   :  { %v4254_v49 = vpop.permute.xlu0 %4253 }
 0x48e   :  { %4269 = vst.msk [vmem:[#allocation3 + $0x14] sm:$0x3] %vm4159_vm14, %v4254_v49 }
 0x48f   :  { %v4495_v63 = vpop.permute.xlu1 %4494 }
 0x490   :  { %5281 = vmatprep.subr.mxu1 %v4495_v63  ;;  %v3811_v14 = vpop.f32.mrf.mxu1  ;;  %v5681_v63 = vld [vmem:[%s8555_s1 + $0x80] sm:$0xff] }
 0x491   :  { %v4170_v34 = vpop.permute.xlu0 %4169  ;;  %v3812_v35 = vadd.f32 %v3811_v14, %v7891_v56 }
 0x492   :  { %4197 = vst.msk [vmem:[#allocation3] sm:$0x3] %vm4196_vm15, %v4170_v34  ;;  %v3813_v50 = vpop.f32.mrf.mxu1  ;;  %v55_v34 = vld [vmem:[%s8555_s1 + $0x118] sm:$0xff] }
 0x493   :  { %v4172_v27 = vpop.permute.xlu1 %4171  ;;  %v3835_v30 = vmax.f32 %v3812_v35, 0.0  ;;  %v53_v35 = vld [vmem:[%s8555_s1 + $0x108] sm:$0xff] }
 0x494   :  { %4198 = vst.msk [vmem:[#allocation3 + $0x6] sm:$0x3] %vm4196_vm15, %v4172_v27  ;;  %v5683_v50 = vld [vmem:[%s8555_s1 + $0x8] sm:$0xff] }
 0x495   :  { %v4174_v47 = vpop.permute.xlu0 %4173  ;;  %v4021_v41 = vcombine.high %v3835_v30, %v3835_v30  ;;  %v8123_v9 = vrot.slane %v3835_v30, %v6064_v10  ;;  %v54_v30 = vld [vmem:[%s8555_s1 + $0x110] sm:$0xff] }
 0x496   :  { %4199 = vst.msk [vmem:[#allocation3 + $0xc] sm:$0x3] %vm4196_vm15, %v4174_v47  ;;  %v5682_v47 = vld [vmem:[%s8555_s1 + $0x10] sm:$0xff] }
 0x497   :  { %v4176_v32 = vpop.permute.xlu1 %4175  ;;  %v8127_v58 = vrot.slane %v4021_v41, %v6064_v10  ;;  %4214 = vst.msk [vmem:[#allocation3 + $0x32] sm:$0x3] %vm4085_vm12, %v8123_v9 }
 0x498   :  { %4200 = vst.msk [vmem:[#allocation3 + $0x12] sm:$0x3] %vm4196_vm15, %v4176_v32 }
 0x499   :  { %v4276_v19 = vpop.permute.xlu0 %4275  ;;  %4255 = vrot.lane.b32.xlu0 %v8127_v58, %s5738_s21 }
 0x49a   :  { %4302 = vst.msk [vmem:[#allocation3 + $0x2] sm:$0x3] %vm4196_vm15, %v4276_v19 }
 0x49b   :  { %v4278_v60 = vpop.permute.xlu1 %4277 }
 0x49c   :  { %4303 = vst.msk [vmem:[#allocation3 + $0x8] sm:$0x3] %vm4196_vm15, %v4278_v60 }
 0x49d   :  { %v4280_v55 = vpop.permute.xlu0 %4279  ;;  %4490 = vrot.lane.b32.xlu0 %v41_v62, %s5740_s23 }
 0x49e   :  { %4304 = vst.msk [vmem:[#allocation3 + $0xe] sm:$0x3] %vm4196_vm15, %v4280_v55 }
 0x49f   :  { %v4282_v22 = vpop.permute.xlu1 %4281 }
 0x4a0   :  { %4305 = vst.msk [vmem:[#allocation3 + $0x14] sm:$0x3] %vm4196_vm15, %v4282_v22 }
 0x4a1   :  { %v4463_v54 = vpop.permute.xlu0 %4462  ;;  %4179 = vrot.lane.b32.xlu0 %v8072_v8, %s5741_s5 }
 0x4a2   :  { %5282 = vmatpush3.msra.mxu1 %v4463_v54 }
 0x4a3   :  { %v4493_v48 = vpop.permute.xlu1 %4492  ;;  %v5650_v21 = vld [vmem:[#allocation3] ss:$6 sps:$4 sm:$0xff]  }
 0x4a4   :  { %5283 = vmatprep.subr.mxu1 %v4493_v48  ;;  %v8149_v2 = vrot.slane %v5650_v21, %v6064_v10 }
 0x4a5   :  { %v4104_v18 = vpop.permute.xlu0 %4103  ;;  %4183 = vrot.lane.b32.xlu0 %v8082_v59, %s5741_s5 }
 0x4a6   :  { %4127 = vst.msk [vmem:[#allocation3 + $0x18] sm:$0x3] %vm4122_vm13, %v4104_v18 }
 0x4a7   :  { %4164 = vst.msk [vmem:[#allocation3 + $0x18] sm:$0x3] %vm4159_vm14, %v4141_v4  ;;  %v4106_v44 = vpop.permute.xlu1 %4105  ;;  %v5653_v17 = vld [vmem:[#allocation3 + $0xc] ss:$6 sps:$4 sm:$0xff]  }
 0x4a8   :  { %4128 = vst.msk [vmem:[#allocation3 + $0x1e] sm:$0x3] %vm4122_vm13, %v4106_v44  ;;  %v8152_v25 = vrot.slane %v5653_v17, %v6064_v10  ;;  %v5680_v4 = vld [vmem:[%s8555_s1 + $0x18] sm:$0xff] }
 0x4a9   :  { %v4108_v37 = vpop.permute.xlu0 %4107  ;;  %4285 = vrot.lane.b32.xlu0 %v4002_v57, %s5741_s5 }
 0x4aa   :  { %4129 = vst.msk [vmem:[#allocation3 + $0x24] sm:$0x3] %vm4122_vm13, %v4108_v37  ;;  %v4370_v8 = vcombine.low %v8149_v2, %v8152_v25  ;;  %v4371_v61 = vcombine.high %v8149_v2, %v8152_v25 }
 0x4ab   :  { %v4110_v11 = vpop.permute.xlu1 %4109 }
 0x4ac   :  { %4130 = vst.msk [vmem:[#allocation3 + $0x2a] sm:$0x3] %vm4122_vm13, %v4110_v11  ;;  %4630 = vmatprep.mubr.f32.mxu1 %v4371_v61 }
 0x4ad   :  { %v4224_v38 = vpop.permute.xlu0 %4223 }
 0x4ae   :  { %4246 = vst.msk [vmem:[#allocation3 + $0x1a] sm:$0x3] %vm4122_vm13, %v4224_v38 }
 0x4af   :  { %v4226_v20 = vpop.permute.xlu1 %4225 }
 0x4b0   :  { %4247 = vst.msk [vmem:[#allocation3 + $0x20] sm:$0x3] %vm4122_vm13, %v4226_v20  ;;  %v3816_v31 = vpop.f32.mrf.mxu1 }
 0x4b1   :  { %v3817_v3 = vadd.f32 %v3816_v31, %v7891_v56 }
 0x4b2   :  { %v3818_v52 = vpop.f32.mrf.mxu1 }
 0x4b3   :  { %v3836_v39 = vmax.f32 %v3817_v3, 0.0 }
 0x4b5   :  { %v4038_v16 = vcombine.high %v3836_v39, %v3836_v39  ;;  %v4045_v42 = vrot.slane %v3836_v39, %v6064_v10 }
 0x4b7   :  { %v4052_v59 = vrot.slane %v4038_v16, %v6064_v10  ;;  %4317 = vst.msk [vmem:[#allocation3 + $0x28] sm:$0x3] %vm4085_vm12, %v4045_v42  ;;  %4257 = vrot.lane.b32.xlu1 %v4045_v42, %s5738_s21  ;;  %v4053_v51 = vcombine.high %v4045_v42, %v4045_v42 }
 0x4b9   :  { %4318 = vst.msk [vmem:[#allocation3 + $0x2e] sm:$0x3] %vm4085_vm12, %v4052_v59  ;;  %4289 = vrot.lane.b32.xlu0 %v4053_v51, %s5741_s5  ;;  %v4054_v28 = vcombine.high %v4052_v59, %v4052_v59 }
 0x4bb   :  { %4177 = vrot.lane.b32.xlu1 %v7996_v40, %s5741_s5  ;;  %v4037_v40 = vcombine.high %v8127_v58, %v8127_v58 }
 0x4bd   :  { %v3821_v23 = vpop.f32.mrf.mxu1  ;;  %4488 = vrot.lane.b32.xlu0 %v40_v36, %s5740_s23 }
 0x4be   :  { %v3822_v0 = vadd.f32 %v3821_v23, %v7891_v56  ;;  %v4036_v56 = vcombine.high %v8123_v9, %v8123_v9 }
 0x4bf   :  { %v3823_v43 = vpop.f32.mrf.mxu1  ;;  %4181 = vrot.lane.b32.xlu1 %v4003_v12, %s5741_s5 }
 0x4c0   :  { %v3837_v53 = vmax.f32 %v3822_v0, 0.0  ;;  %v5661_v25 = vld [vmem:[#allocation3 + $0x28] ss:$6 sps:$4 sm:$0x33]  }
 0x4c1   :  { %4486 = vrot.lane.b32.xlu0 %v39_v29, %s5740_s23 }
 0x4c2   :  { %v4061_v6 = vrot.slane %v3837_v53, %v6064_v10 }
 0x4c3   :  { %4283 = vrot.lane.b32.xlu1 %v8066_v15, %s5741_s5  ;;  %v5678_v15 = vld [vmem:[%s8555_s1 + $0x20] sm:$0xff] }
 0x4c4   :  { %4319 = vst.msk [vmem:[#allocation3 + $0x34] sm:$0x3] %vm4085_vm12, %v4061_v6  ;;  %v5655_v6 = vld [vmem:[#allocation3 + $0x10] ss:$6 sps:$4 sm:$0x33]  }
 0x4c5   :  { %4231 = vrot.lane.b32.xlu0 %v4036_v56, %s5737_s12  ;;  %v4369_v2 = vrot.slane %v5655_v6, %v6064_v10  ;;  %v4795_v6 = vld [vmem:[%s8556_s2 + $0x18] sm:$0xff] }
 0x4c7   :  { %4287 = vrot.lane.b32.xlu1 %v4037_v40, %s5741_s5 }
 0x4c9   :  { %4148 = vrot.lane.b32.xlu0 %v8041_v33, %s5738_s21 }
 0x4cb   :  { %4458 = vrot.lane.b32.xlu1 %v5677_v7, %s5740_s23 }
 0x4cd   :  { %4484 = vrot.lane.b32.xlu0 %v38_v46, %s5740_s23 }
 0x4cf   :  { %4456 = vrot.lane.b32.xlu1 %v5678_v15, %s5740_s23  ;;  %v5652_v15 = vld [vmem:[#allocation3 + $0x4] ss:$6 sps:$4 sm:$0x33]  }
 0x4d1   :  { %4291 = vrot.lane.b32.xlu0 %v4054_v28, %s5741_s5  ;;  %v4355_v28 = vrot.slane %v5652_v15, %v6064_v10 }
 0x4d3   :  { %4111 = vrot.lane.b32.xlu1 %v4002_v57, %s5737_s12  ;;  %v4228_v33 = vpop.permute.xlu0 %4227 }
 0x4d4   :  { %4248 = vst.msk [vmem:[#allocation3 + $0x26] sm:$0x3] %vm4122_vm13, %v4228_v33  ;;  %v5658_v33 = vld [vmem:[#allocation3 + $0x1c] ss:$6 sps:$4 sm:$0x33]  }
 0x4d5   :  { %v4230_v24 = vpop.permute.xlu1 %4229  ;;  %4482 = vrot.lane.b32.xlu0 %v5679_v26, %s5740_s23  ;;  %v4404_v26 = vrot.slane %v5661_v25, %v6064_v10 }
 0x4d6   :  { %4249 = vst.msk [vmem:[#allocation3 + $0x2c] sm:$0x3] %vm4122_vm13, %v4230_v24  ;;  %v4372_v24 = vcombine.low %v4355_v28, %v4369_v2  ;;  %v4810_v2 = vld [vmem:[%s8556_s2 + $0x90] sm:$0xff] }
 0x4d7   :  { %4454 = vrot.lane.b32.xlu1 %v5680_v4, %s5740_s23  ;;  %v4461_v13 = vpop.permute.xlu0 %4460  ;;  %v4390_v4 = vrot.slane %v5658_v33, %v6064_v10 }
 0x4d8   :  { %5284 = vmatpush3.msra.mxu1 %v4461_v13 }
 0x4d9   :  { %v4143_v49 = vpop.permute.xlu1 %4142  ;;  %4480 = vrot.lane.b32.xlu0 %v5681_v63, %s5740_s23 }
 0x4da   :  { %4165 = vst.msk [vmem:[#allocation3 + $0x1e] sm:$0x3] %vm4159_vm14, %v4143_v49  ;;  %v4407_v49 = vcombine.low %v4390_v4, %v4404_v26  ;;  %v4809_v4 = vld [vmem:[%s8556_s2 + $0x88] sm:$0xff] }
 0x4db   :  { %4259 = vrot.lane.b32.xlu1 %v4052_v59, %s5738_s21  ;;  %v4145_v27 = vpop.permute.xlu0 %4144 }
 0x4dc   :  { %4166 = vst.msk [vmem:[#allocation3 + $0x24] sm:$0x3] %vm4159_vm14, %v4145_v27  ;;  %4270 = vst.msk [vmem:[#allocation3 + $0x1a] sm:$0x3] %vm4159_vm14, %v4145_v27  ;;  %v4807_v27 = vld [vmem:[%s8556_s2 + $0x78] sm:$0xff] }
 0x4dd   :  { %v4147_v14 = vpop.permute.xlu1 %4146  ;;  %4518 = vrot.lane.b32.xlu0 %v55_v34, %s5740_s23  ;;  %v4823_v34 = vld [vmem:[%s8556_s2 + $0xf8] sm:$0xff] }
 0x4de   :  { %4167 = vst.msk [vmem:[#allocation3 + $0x2a] sm:$0x3] %vm4159_vm14, %v4147_v14  ;;  %4271 = vst.msk [vmem:[#allocation3 + $0x20] sm:$0x3] %vm4159_vm14, %v4147_v14  ;;  %v4822_v14 = vld [vmem:[%s8556_s2 + $0xf0] sm:$0xff] }
 0x4df   :  { %4185 = vrot.lane.b32.xlu1 %v8085_v5, %s5741_s5  ;;  %v5684_v5 = vld [vmem:[%s8555_s1] sm:$0xff] }
 0x4e1   :  { %4514 = vrot.lane.b32.xlu0 %v53_v35, %s5740_s23  ;;  %v4806_v35 = vld [vmem:[%s8556_s2 + $0x70] sm:$0xff] }
 0x4e3   :  { %4452 = vrot.lane.b32.xlu1 %v5682_v47, %s5740_s23  ;;  %v4821_v47 = vld [vmem:[%s8556_s2 + $0xe8] sm:$0xff] }
 0x4e5   :  { %4556 = vrot.lane.b32.xlu0 %v7769_v45, %s5740_s23  ;;  %v52_v45 = vld [vmem:[%s8555_s1 + $0x100] sm:$0xff] }
 0x4e7   :  { %4450 = vrot.lane.b32.xlu1 %v5683_v50, %s5740_s23  ;;  %v4805_v50 = vld [vmem:[%s8556_s2 + $0x68] sm:$0xff] }
 0x4eb   :  { %4448 = vrot.lane.b32.xlu1 %v5684_v5, %s5740_s23  ;;  %v4820_v5 = vld [vmem:[%s8556_s2 + $0xe0] sm:$0xff] }
 0x4ef   :  { %4516 = vrot.lane.b32.xlu1 %v54_v30, %s5740_s23  ;;  %v4804_v30 = vld [vmem:[%s8556_s2 + $0x60] sm:$0xff] }
 0x4f3   :  { %4512 = vrot.lane.b32.xlu1 %v52_v45, %s5740_s23  ;;  %v4819_v45 = vld [vmem:[%s8556_s2 + $0xd8] sm:$0xff] }
 0x50b   :  { %v4256_v32 = vpop.permute.xlu0 %4255 }
 0x50c   :  { %4272 = vst.msk [vmem:[#allocation3 + $0x26] sm:$0x3] %vm4159_vm14, %v4256_v32  ;;  %v4803_v32 = vld [vmem:[%s8556_s2 + $0x58] sm:$0xff] }
 0x50f   :  { %v4491_v41 = vpop.permute.xlu0 %4490 }
 0x510   :  { %5285 = vmatprep.subr.mxu1 %v4491_v41  ;;  %v4818_v41 = vld [vmem:[%s8556_s2 + $0xd0] sm:$0xff] }
 0x513   :  { %v4180_v9 = vpop.permute.xlu0 %4179 }
 0x514   :  { %4202 = vst.msk [vmem:[#allocation3 + $0x1e] sm:$0x3] %vm4196_vm15, %v4180_v9  ;;  %v4802_v9 = vld [vmem:[%s8556_s2 + $0x50] sm:$0xff] }
 0x517   :  { %v4184_v19 = vpop.permute.xlu0 %4183 }
 0x518   :  { %4204 = vst.msk [vmem:[#allocation3 + $0x2a] sm:$0x3] %vm4196_vm15, %v4184_v19  ;;  %v4817_v19 = vld [vmem:[%s8556_s2 + $0xc8] sm:$0xff] }
 0x51b   :  { %v4286_v58 = vpop.permute.xlu0 %4285 }
 0x51c   :  { %4307 = vst.msk [vmem:[#allocation3 + $0x20] sm:$0x3] %vm4196_vm15, %v4286_v58  ;;  %v4801_v58 = vld [vmem:[%s8556_s2 + $0x48] sm:$0xff] }
 0x529   :  { %v4258_v60 = vpop.permute.xlu1 %4257 }
 0x52a   :  { %4273 = vst.msk [vmem:[#allocation3 + $0x2c] sm:$0x3] %vm4159_vm14, %v4258_v60 }
 0x52b   :  { %v4290_v55 = vpop.permute.xlu0 %4289 }
 0x52c   :  { %4309 = vst.msk [vmem:[#allocation3 + $0x2c] sm:$0x3] %vm4196_vm15, %v4290_v55 }
 0x52d   :  { %v4178_v62 = vpop.permute.xlu1 %4177 }
 0x52e   :  { %4201 = vst.msk [vmem:[#allocation3 + $0x18] sm:$0x3] %vm4196_vm15, %v4178_v62 }
 0x52f   :  { %v4489_v22 = vpop.permute.xlu0 %4488 }
 0x531   :  { %v4182_v54 = vpop.permute.xlu1 %4181 }
 0x532   :  { %4203 = vst.msk [vmem:[#allocation3 + $0x24] sm:$0x3] %vm4196_vm15, %v4182_v54 }
 0x533   :  { %v4487_v48 = vpop.permute.xlu0 %4486 }
 0x535   :  { %v4284_v18 = vpop.permute.xlu1 %4283 }
 0x536   :  { %4306 = vst.msk [vmem:[#allocation3 + $0x1a] sm:$0x3] %vm4196_vm15, %v4284_v18 }
 0x537   :  { %v4232_v21 = vpop.permute.xlu0 %4231 }
 0x538   :  { %4250 = vst.msk [vmem:[#allocation3 + $0x32] sm:$0x3] %vm4122_vm13, %v4232_v21  ;;  %v4816_v21 = vld [vmem:[%s8556_s2 + $0xc0] sm:$0xff] }
 0x539   :  { %v4288_v44 = vpop.permute.xlu1 %4287 }
 0x53a   :  { %4308 = vst.msk [vmem:[#allocation3 + $0x26] sm:$0x3] %vm4196_vm15, %v4288_v44  ;;  %v4800_v44 = vld [vmem:[%s8556_s2 + $0x40] sm:$0xff] }
 0x53b   :  { %v4149_v37 = vpop.permute.xlu0 %4148 }
 0x53d   :  { %v4459_v17 = vpop.permute.xlu1 %4458  ;;  %v5656_v59 = vld [vmem:[#allocation3 + $0x18] ss:$6 sps:$4 sm:$0xff]  }
 0x53e   :  { %5286 = vmatpush3.msra.mxu1 %v4459_v17  ;;  %v4383_v43 = vrot.slane %v5656_v59, %v6064_v10 }
 0x53f   :  { %5287 = vmatprep.subr.mxu1 %v4489_v22  ;;  %v4485_v61 = vpop.permute.xlu0 %4484 }
 0x541   :  { %v4457_v57 = vpop.permute.xlu1 %4456  ;;  %v5659_v16 = vld [vmem:[#allocation3 + $0x24] ss:$6 sps:$4 sm:$0xff]  }
 0x542   :  { %5288 = vmatpush3.msra.mxu1 %v4457_v57  ;;  %v4397_v23 = vrot.slane %v5659_v16, %v6064_v10  ;;  %v4799_v57 = vld [vmem:[%s8556_s2 + $0x38] sm:$0xff]  ;;  %v4797_v16 = vld [vmem:[%s8556_s2 + $0x28] sm:$0xff] }
 0x543   :  { %5289 = vmatprep.subr.mxu1 %v4487_v48  ;;  %v4292_v20 = vpop.permute.xlu0 %4291 }
 0x544   :  { %v4406_v12 = vcombine.high %v4383_v43, %v4397_v23  ;;  %v4405_v40 = vcombine.low %v4383_v43, %v4397_v23  ;;  %v4811_v43 = vld [vmem:[%s8556_s2 + $0x98] sm:$0xff] }
 0x545   :  { %v4112_v11 = vpop.permute.xlu1 %4111 }
 0x546   :  { %4131 = vst.msk [vmem:[#allocation3 + $0x30] sm:$0x3] %vm4122_vm13, %v4112_v11 }
 0x547   :  { %4168 = vst.msk [vmem:[#allocation3 + $0x30] sm:$0x3] %vm4159_vm14, %v4149_v37  ;;  %v4483_v52 = vpop.permute.xlu0 %4482  ;;  %v4815_v37 = vld [vmem:[%s8556_s2 + $0xb8] sm:$0xff] }
 0x549   :  { %v4455_v38 = vpop.permute.xlu1 %4454 }
 0x54a   :  { %5290 = vmatpush3.msra.mxu1 %v4455_v38 }
 0x54b   :  { %5291 = vmatprep.subr.mxu1 %v4485_v61  ;;  %v4481_v42 = vpop.permute.xlu0 %4480 }
 0x54d   :  { %v4260_v31 = vpop.permute.xlu1 %4259 }
 0x54e   :  { %4274 = vst.msk [vmem:[#allocation3 + $0x32] sm:$0x3] %vm4159_vm14, %v4260_v31  ;;  %v4798_v31 = vld [vmem:[%s8556_s2 + $0x30] sm:$0xff] }
 0x54f   :  { %4310 = vst.msk [vmem:[#allocation3 + $0x32] sm:$0x3] %vm4196_vm15, %v4292_v20  ;;  %v4519_v36 = vpop.permute.xlu0 %4518  ;;  %v4814_v20 = vld [vmem:[%s8556_s2 + $0xb0] sm:$0xff] }
 0x551   :  { %v4186_v3 = vpop.permute.xlu1 %4185 }
 0x552   :  { %4205 = vst.msk [vmem:[#allocation3 + $0x30] sm:$0x3] %vm4196_vm15, %v4186_v3 }
 0x553   :  { %v4515_v46 = vpop.permute.xlu0 %4514 }
 0x555   :  { %v4453_v39 = vpop.permute.xlu1 %4452 }
 0x556   :  { %5292 = vmatpush3.msra.mxu1 %v4453_v39  ;;  %v4813_v39 = vld [vmem:[%s8556_s2 + $0xa8] sm:$0xff] }
 0x557   :  { %5293 = vmatprep.subr.mxu1 %v4483_v52  ;;  %v4557_v48 = vpop.permute.xlu0 %4556 }
 0x559   :  { %v4451_v51 = vpop.permute.xlu1 %4450  ;;  %v4328_v0 = vld [vmem:[#allocation3 + $0x30] sm:$0x3f] }
 0x55a   :  { %5294 = vmatpush3.msra.mxu1 %v4451_v51  ;;  %v4415_v29 = vrot.slane %v4328_v0, %v6064_v10  ;;  %v4408_v13 = vcombine.high %v4328_v0, %v4328_v0 }
 0x55b   :  { %5295 = vmatprep.subr.mxu1 %v4481_v42  ;;  %v4812_v42 = vld [vmem:[%s8556_s2 + $0xa0] sm:$0xff] }
 0x55c   :  { %v4423_v7 = vcombine.high %v4415_v29, %v4415_v29  ;;  %v4422_v63 = vrot.slane %v4408_v13, %v6064_v10 }
 0x55d   :  { %v4449_v53 = vpop.permute.xlu1 %4448 }
 0x55e   :  { %5296 = vmatpush3.msra.mxu1 %v4449_v53 }
 0x55f   :  { %4631 = vmatmul.mubr.f32.vlgmr.msra.gmra.mxu1 %v4370_v8  ;;  %5571 = vmatprep.subr.mxu1 %v5732_v1 }
 0x560   :  { %4635 = vmatprep.mubr.f32.mxu1 %v4406_v12  ;;  %5572 = vmatpush3.msra.mxu1 %v4519_v36  ;;  %v4796_v36 = vld [vmem:[%s8556_s2 + $0x20] sm:$0xff] }
 0x561   :  { %v4517_v56 = vpop.permute.xlu1 %4516  ;;  %5573 = vmatprep.subr.mxu1 %v5732_v1 }
 0x562   :  { %5574 = vmatpush3.msra.mxu1 %v4517_v56 }
 0x563   :  { %4636 = vmatmul.mubr.f32.gmra.mxu1 %v4405_v40  ;;  %5575 = vmatprep.subr.mxu1 %v5732_v1 }
 0x564   :  { %4640 = vmatprep.mubr.f32.mxu1 %v4423_v7  ;;  %5576 = vmatpush3.msra.mxu1 %v4515_v46 }
 0x565   :  { %v4513_v8 = vpop.permute.xlu1 %4512  ;;  %5577 = vmatprep.subr.mxu1 %v5732_v1 }
 0x566   :  { %5578 = vmatpush3.msra.mxu1 %v4513_v8  ;;  %v4794_v8 = vld [vmem:[%s8556_s2 + $0x10] sm:$0xff] }
 0x567   :  { %4641 = vmatmul.mubr.f32.gmra.mxu1 %v4415_v29  ;;  %5313 = vmatprep.subr.mxu1 %v4823_v34 }
 0x568   :  { %5579 = vmatprep.mubr.msk.f32.mxu1 %vm5733_vm1, %v5732_v1 }
 0x56b   :  { %5580 = vmatmul.mubr.msk.f32.vlgmr.msra.gmra.mxu1 %vm4559_vm0, %v4372_v24 }
 0x56c   :  { %5582 = vmatprep.mubr.msk.f32.mxu1 %vm5733_vm1, %v5732_v1  ;;  %5314 = vmatpush3.msra.mxu1 %v4807_v27 }
 0x56d   :  { %5315 = vmatprep.subr.mxu1 %v4822_v14  ;;  %v4808_v14 = vld [vmem:[%s8556_s2 + $0x80] sm:$0xff] }
 0x56e   :  { %5316 = vmatpush3.msra.mxu1 %v4806_v35  ;;  %v4792_v35 = vld [vmem:[%s8556_s2] sm:$0xff] }
 0x56f   :  { %5583 = vmatmul.mubr.msk.f32.gmra.mxu1 %vm4559_vm0, %v4407_v49  ;;  %5317 = vmatprep.subr.mxu1 %v4821_v47  ;;  %v4793_v49 = vld [vmem:[%s8556_s2 + $0x8] sm:$0xff] }
 0x570   :  { %5585 = vmatprep.mubr.msk.f32.mxu1 %vm5733_vm1, %v5732_v1  ;;  %5318 = vmatpush3.msra.mxu1 %v4805_v50  ;;  %v4855_v50 = vld [vmem:[%s8556_s2 + $0x1f8] sm:$0xff] }
 0x571   :  { %5319 = vmatprep.subr.mxu1 %v4820_v5  ;;  %v5685_v5 = vld [vmem:[%s8557_s3] ss:$0 sm:$0xff] }
 0x572   :  { %5320 = vmatpush3.msra.mxu1 %v4804_v30 }
 0x573   :  { %5586 = vmatmul.mubr.msk.f32.gmra.mxu1 %vm4559_vm0, %v4422_v63  ;;  %5321 = vmatprep.subr.mxu1 %v4819_v45 }
 0x574   :  { %5322 = vmatpush3.msra.mxu1 %v4803_v32 }
 0x575   :  { %5323 = vmatprep.subr.mxu1 %v4818_v41 }
 0x576   :  { %5324 = vmatpush3.msra.mxu1 %v4802_v9 }
 0x577   :  { %5325 = vmatprep.subr.mxu1 %v4817_v19 }
 0x578   :  { %5326 = vmatpush3.msra.mxu1 %v4801_v58 }
 0x579   :  { %5327 = vmatprep.subr.mxu1 %v4816_v21  ;;  %v4852_v21 = vld [vmem:[%s8556_s2 + $0x1e0] sm:$0xff] }
 0x57a   :  { %5328 = vmatpush3.msra.mxu1 %v4800_v44  ;;  %v4836_v44 = vld [vmem:[%s8556_s2 + $0x160] sm:$0xff] }
 0x57b   :  { %5329 = vmatprep.subr.mxu1 %v4815_v37  ;;  %v4835_v37 = vld [vmem:[%s8556_s2 + $0x158] sm:$0xff] }
 0x57c   :  { %5330 = vmatpush3.msra.mxu1 %v4799_v57  ;;  %v4850_v57 = vld [vmem:[%s8556_s2 + $0x1d0] sm:$0xff] }
 0x57d   :  { %5331 = vmatprep.subr.mxu1 %v4814_v20  ;;  %v4848_v20 = vld [vmem:[%s8556_s2 + $0x1c0] sm:$0xff] }
 0x57e   :  { %5332 = vmatpush3.msra.mxu1 %v4798_v31  ;;  %v4832_v31 = vld [vmem:[%s8556_s2 + $0x140] sm:$0xff] }
 0x57f   :  { %5333 = vmatprep.subr.mxu1 %v4813_v39  ;;  %v4846_v39 = vld [vmem:[%s8556_s2 + $0x1b0] sm:$0xff] }
 0x580   :  { %5334 = vmatpush3.msra.mxu1 %v4797_v16  ;;  %v4830_v16 = vld [vmem:[%s8556_s2 + $0x130] sm:$0xff] }
 0x581   :  { %5335 = vmatprep.subr.mxu1 %v4812_v42  ;;  %v4845_v42 = vld [vmem:[%s8556_s2 + $0x1a8] sm:$0xff] }
 0x582   :  { %5336 = vmatpush3.msra.mxu1 %v4796_v36  ;;  %v4843_v36 = vld [vmem:[%s8556_s2 + $0x198] sm:$0xff] }
 0x583   :  { %5337 = vmatprep.subr.mxu1 %v4811_v43  ;;  %v4842_v43 = vld [vmem:[%s8556_s2 + $0x190] sm:$0xff] }
 0x584   :  { %5338 = vmatpush3.msra.mxu1 %v4795_v6  ;;  %v4840_v6 = vld [vmem:[%s8556_s2 + $0x180] sm:$0xff] }
 0x585   :  { %5339 = vmatprep.subr.mxu1 %v4810_v2  ;;  %v4859_v2 = vld [vmem:[%s8556_s2 + $0x218] sm:$0xff] }
 0x586   :  { %5340 = vmatpush3.msra.mxu1 %v4794_v8  ;;  %v4857_v8 = vld [vmem:[%s8556_s2 + $0x208] sm:$0xff] }
 0x587   :  { %5341 = vmatprep.subr.mxu1 %v4809_v4 }
 0x588   :  { %5342 = vmatpush3.msra.mxu1 %v4793_v49 }
 0x589   :  { %5343 = vmatprep.subr.mxu1 %v4808_v14 }
 0x58a   :  { %5344 = vmatpush3.msra.mxu1 %v4792_v35 }
 0x58b   :  { %5348 = vmatprep.subr.mxu1 %v4855_v50 }
 0x61f   :  { %v5297_v60 = vpop.f32.mrf.mxu1 }
 0x621   :  { %v5298_v55 = vpop.f32.mrf.mxu1 }
 0x622   :  { %v5299_v54 = vadd.f32 %v5298_v55, %v5297_v60 }
 0x623   :  { %v5300_v62 = vpop.f32.mrf.mxu1 }
 0x624   :  { %v4633_v61 = vadd.f32 %v5299_v54, %v4557_v48 }
 0x625   :  { %v5301_v22 = vpop.f32.mrf.mxu1 }
 0x626   :  { %v5302_v11 = vadd.f32 %v5301_v22, %v5300_v62  ;;  %v4839_v62 = vld [vmem:[%s8556_s2 + $0x178] sm:$0xff]  ;;  %v4854_v22 = vld [vmem:[%s8556_s2 + $0x1f0] sm:$0xff] }
 0x627   :  { %v5303_v18 = vpop.f32.mrf.mxu1 }
 0x628   :  { %v4638_v23 = vadd.f32 %v5302_v11, %v4557_v48  ;;  %v4834_v11 = vld [vmem:[%s8556_s2 + $0x150] sm:$0xff] }
 0x629   :  { %v5304_v17 = vpop.f32.mrf.mxu1 }
 0x62a   :  { %v5305_v59 = vadd.f32 %v5304_v17, %v5303_v18  ;;  %v4837_v18 = vld [vmem:[%s8556_s2 + $0x168] sm:$0xff]  ;;  %v4851_v17 = vld [vmem:[%s8556_s2 + $0x1d8] sm:$0xff] }
 0x62b   :  { %v4712_v38 = vpop.f32.mrf.mxu1 }
 0x62c   :  { %v4713_v3 = vadd.f32 %v4712_v38, %v4633_v61  ;;  %v4643_v15 = vadd.f32 %v5305_v59, %v4557_v48  ;;  %v4838_v48 = vld [vmem:[%s8556_s2 + $0x170] sm:$0xff]  ;;  %v4849_v61 = vld [vmem:[%s8556_s2 + $0x1c8] sm:$0xff] }
 0x62d   :  { %v5581_v52 = vpop.f32.mrf.mxu1  ;;  %v4833_v38 = vld [vmem:[%s8556_s2 + $0x148] sm:$0xff] }
 0x62e   :  { %v4726_v51 = vmax.f32 %v4713_v3, 0.0  ;;  %v4847_v3 = vld [vmem:[%s8556_s2 + $0x1b8] sm:$0xff]  ;;  %v4829_v59 = vld [vmem:[%s8556_s2 + $0x128] sm:$0xff] }
 0x62f   :  { %v4717_v0 = vpop.f32.mrf.mxu1  ;;  %v4831_v52 = vld [vmem:[%s8556_s2 + $0x138] sm:$0xff] }
 0x630   :  { %v4738_v53 = vrot.slane %v4726_v51, %v6064_v10  ;;  %v4745_v12 = vcombine.high %v4726_v51, %v4726_v51  ;;  %v4718_v29 = vadd.f32 %v4717_v0, %v4638_v23  ;;  %4730 = vst.msk [vmem:[#allocation4] sm:$0x3] %vm4729_vm2, %v4726_v51  ;;  %v4844_v51 = vld [vmem:[%s8556_s2 + $0x1a0] sm:$0xff]  ;;  %v4827_v0 = vld [vmem:[%s8556_s2 + $0x118] sm:$0xff] }
 0x631   :  { %v5584_v56 = vpop.f32.mrf.mxu1  ;;  %v4828_v23 = vld [vmem:[%s8556_s2 + $0x120] sm:$0xff] }
 0x632   :  { %v4739_v40 = vcombine.high %v4738_v53, %v4738_v53  ;;  %v4752_v46 = vrot.slane %v4745_v12, %v6064_v10  ;;  %v4727_v7 = vmax.f32 %v4718_v29, 0.0  ;;  %v4826_v53 = vld [vmem:[%s8556_s2 + $0x110] sm:$0xff]  ;;  %v4841_v12 = vld [vmem:[%s8556_s2 + $0x188] sm:$0xff]  ;;  %v4824_v56 = vld [vmem:[%s8556_s2 + $0x100] sm:$0xff] }
 0x633   :  { %v4722_v25 = vpop.f32.mrf.mxu1  ;;  %v4825_v29 = vld [vmem:[%s8556_s2 + $0x108] sm:$0xff] }
 0x634   :  { %v4768_v28 = vrot.slane %v4727_v7, %v6064_v10  ;;  %v4774_v33 = vcombine.high %v4727_v7, %v4727_v7  ;;  %v4723_v24 = vadd.f32 %v4722_v25, %v4643_v15  ;;  %4754 = vst.msk [vmem:[#allocation4 + $0x2] sm:$0x3] %vm4729_vm2, %v4752_v46  ;;  %4760 = vst.msk [vmem:[#allocation4 + $0x4] sm:$0x3] %vm4729_vm2, %v4727_v7  ;;  %4740 = vrot.lane.b32.xlu1 %v4739_v40, %s5738_s21  ;;  %v4863_v40 = vld [vmem:[%s8556_s2 + $0x238] sm:$0xff]  ;;  %v4861_v7 = vld [vmem:[%s8556_s2 + $0x228] sm:$0xff] }
 0x635   :  { %v4755_v26 = vcombine.high %v4752_v46, %v4752_v46  ;;  %v5587_v13 = vpop.f32.mrf.mxu1  ;;  %v4862_v46 = vld [vmem:[%s8556_s2 + $0x230] sm:$0xff]  ;;  %v4860_v15 = vld [vmem:[%s8556_s2 + $0x220] sm:$0xff] }
 0x636   :  { %v4769_v63 = vcombine.high %v4768_v28, %v4768_v28  ;;  %v4781_v34 = vrot.slane %v4774_v33, %v6064_v10  ;;  %v4728_v27 = vmax.f32 %v4723_v24, 0.0  ;;  %v4858_v25 = vld [vmem:[%s8556_s2 + $0x210] sm:$0xff]  ;;  %v4856_v28 = vld [vmem:[%s8556_s2 + $0x200] sm:$0xff] }
 0x637   :  { %4756 = vrot.lane.b32.xlu0 %v4755_v26, %s5738_s21 }
 0x638   :  { %4789 = vst.msk [vmem:[#allocation4 + $0x8] sm:$0x3] %vm4729_vm2, %v4728_v27  ;;  %4783 = vst.msk [vmem:[#allocation4 + $0x6] sm:$0x3] %vm4729_vm2, %v4781_v34  ;;  %4770 = vrot.lane.b32.xlu1 %v4769_v63, %s5738_s21  ;;  %v4784_v47 = vcombine.high %v4781_v34, %v4781_v34 }
 0x63b   :  { %4785 = vrot.lane.b32.xlu0 %v4784_v47, %s5738_s21 }
 0x63c   :  { %4894 = vrot.lane.b32.xlu1 %v5685_v5, %s5736_s11 }
 0x63f   :  { %v5202_v33 = vld.sshfl [vmem:[#allocation4 + $0x8] sm:$0x3 pattern:$0x76325410] }
 0x6a6   :  { %v4741_v30 = vpop.permute.xlu1 %4740 }
 0x6a7   :  { %4744 = vst.msk [vmem:[#allocation4] sm:$0x3] %vm4743_vm3, %v4741_v30 }
 0x6a9   :  { %v4757_v45 = vpop.permute.xlu0 %4756 }
 0x6aa   :  { %4759 = vst.msk [vmem:[#allocation4 + $0x2] sm:$0x3] %vm4743_vm3, %v4757_v45  ;;  %v4771_v32 = vpop.permute.xlu1 %4770 }
 0x6ab   :  { %4773 = vst.msk [vmem:[#allocation4 + $0x4] sm:$0x3] %vm4743_vm3, %v4771_v32 }
 0x6ad   :  { %v4786_v41 = vpop.permute.xlu0 %4785 }
 0x6ae   :  { %4788 = vst.msk [vmem:[#allocation4 + $0x6] sm:$0x3] %vm4743_vm3, %v4786_v41  ;;  %v4895_v63 = vpop.permute.xlu1 %4894 }
 0x6b5   :  { %v4790_v9 = vld [vmem:[#allocation4] sm:$0xff] }
 0x6b6   :  { %v4873_v19 = vrot.slane %v4790_v9, %v6064_v10  ;;  %v4866_v58 = vcombine.high %v4790_v9, %v4790_v9 }
 0x6b8   :  { %v4881_v60 = vcombine.high %v4873_v19, %v4873_v19  ;;  %v8419_v55 = vrot.slane %v4866_v58, %v6064_v10  ;;  %v4853_v10 = vld [vmem:[%s8556_s2 + $0x1e8] sm:$0xff]  ;;  %s5710_s2 = scalar_lea.vmem %s5119_s6, 32 }
 0x6b9   :  { %p5711_p0 = scmp.ne.s32.totalorder %s5119_s6, %s5710_s2  ;;  %p5716_p2 = scmp.lt.s32.totalorder %s5710_s2, %s5710_s2 }
 0x6ba   :  { %4964 = vmatprep.mubr.f32.mxu1 %v4881_v60  ;;  %v4882_v54 = vcombine.high %v8419_v55, %v8419_v55 }
 0x6bb   :  { %4965 = vmatmul.mubr.f32.vlgmr.msra.gmra.mxu1 %v4873_v19  ;;  %p5717_p3 = por %p5716_p2, %p5715_p1 }
 0x6bc   :  { %5349 = vmatpush3.msra.mxu1 %v4839_v62  ;;  %5034 = vmatprep.mubr.f32.mxu1 %v4882_v54 }
 0x6bd   :  { %5350 = vmatprep.subr.mxu1 %v4854_v22  ;;  %p5718_p4 = pnand %p5717_p3, %p5711_p0 }
 0x6be   :  { %5351 = vmatpush3.msra.mxu1 %v4838_v48 }
 0x6bf   :  { %5352 = vmatprep.subr.mxu1 %v4853_v10 }
 0x6c0   :  { %5353 = vmatpush3.msra.mxu1 %v4837_v18 }
 0x6c1   :  { %5354 = vmatprep.subr.mxu1 %v4852_v21 }
 0x6c2   :  { %5355 = vmatpush3.msra.mxu1 %v4836_v44 }
 0x6c3   :  { %5356 = vmatprep.subr.mxu1 %v4851_v17 }
 0x6c4   :  { %5357 = vmatpush3.msra.mxu1 %v4835_v37 }
 0x6c5   :  { %5358 = vmatprep.subr.mxu1 %v4850_v57 }
 0x6c6   :  { %5359 = vmatpush3.msra.mxu1 %v4834_v11 }
 0x6c7   :  { %5360 = vmatprep.subr.mxu1 %v4849_v61 }
 0x6c8   :  { %5361 = vmatpush3.msra.mxu1 %v4833_v38 }
 0x6c9   :  { %5362 = vmatprep.subr.mxu1 %v4848_v20 }
 0x6ca   :  { %5363 = vmatpush3.msra.mxu1 %v4832_v31 }
 0x6cb   :  { %5364 = vmatprep.subr.mxu1 %v4847_v3 }
 0x6cc   :  { %5365 = vmatpush3.msra.mxu1 %v4831_v52 }
 0x6cd   :  { %5366 = vmatprep.subr.mxu1 %v4846_v39 }
 0x6ce   :  { %5367 = vmatpush3.msra.mxu1 %v4830_v16 }
 0x6cf   :  { %5368 = vmatprep.subr.mxu1 %v4845_v42 }
 0x6d0   :  { %5369 = vmatpush3.msra.mxu1 %v4829_v59 }
 0x6d1   :  { %5370 = vmatprep.subr.mxu1 %v4844_v51 }
 0x6d2   :  { %5371 = vmatpush3.msra.mxu1 %v4828_v23 }
 0x6d3   :  { %5372 = vmatprep.subr.mxu1 %v4843_v36 }
 0x6d4   :  { %5373 = vmatpush3.msra.mxu1 %v4827_v0 }
 0x6d5   :  { %5374 = vmatprep.subr.mxu1 %v4842_v43 }
 0x6d6   :  { %5375 = vmatpush3.msra.mxu1 %v4826_v53 }
 0x6d7   :  { %5376 = vmatprep.subr.mxu1 %v4841_v12 }
 0x6d8   :  { %5377 = vmatpush3.msra.mxu1 %v4825_v29 }
 0x6d9   :  { %5378 = vmatprep.subr.mxu1 %v4840_v6 }
 0x6da   :  { %5379 = vmatpush3.msra.mxu1 %v4824_v56 }
 0x6db   :  { %5035 = vmatmul.mubr.f32.vlgmr.msra.gmra.mxu1 %v8419_v55  ;;  %5588 = vmatprep.subr.mxu1 %v5732_v1 }
 0x6dc   :  { %5589 = vmatpush3.msra.mxu1 %v4863_v40  ;;  %5604 = vmatprep.mubr.msk.f32.mxu1 %vm5733_vm1, %v5732_v1  ;;  %vm4897_vm1 = vcmask 523264  }
 0x6dd   :  { %5590 = vmatprep.subr.mxu1 %v5732_v1 }
 0x6de   :  { %5591 = vmatpush3.msra.mxu1 %v4862_v46 }
 0x6df   :  { %5592 = vmatprep.subr.mxu1 %v5732_v1 }
 0x6e0   :  { %5593 = vmatpush3.msra.mxu1 %v4861_v7 }
 0x6e1   :  { %5594 = vmatprep.subr.mxu1 %v5732_v1 }
 0x6e2   :  { %5595 = vmatpush3.msra.mxu1 %v4860_v15 }
 0x6e3   :  { %5596 = vmatprep.subr.mxu1 %v5732_v1 }
 0x6e4   :  { %5597 = vmatpush3.msra.mxu1 %v4859_v2 }
 0x6e5   :  { %5598 = vmatprep.subr.mxu1 %v5732_v1 }
 0x6e6   :  { %5599 = vmatpush3.msra.mxu1 %v4858_v25 }
 0x6e7   :  { %5600 = vmatprep.subr.mxu1 %v5732_v1 }
 0x6e8   :  { %5601 = vmatpush3.msra.mxu1 %v4857_v8 }
 0x6e9   :  { %5602 = vmatprep.subr.mxu1 %v5732_v1 }
 0x6ea   :  { %5603 = vmatpush3.msra.mxu1 %v4856_v28 }
 0x6eb   :  { %5605 = vmatmul.mubr.msk.f32.vlgmr.msra.gmra.mxu1 %vm4897_vm1, %v5202_v33 }
 0x77b   :  { %v5345_v24 = vpop.f32.mrf.mxu1 }
 0x77d   :  { %v5346_v26 = vpop.f32.mrf.mxu1 }
 0x77e   :  { %v5347_v49 = vadd.f32 %v5346_v26, %v5345_v24 }
 0x780   :  { %v4967_v27 = vadd.f32 %v5347_v49, %v4895_v63 }
 0x79b   :  { %v5380_v4 = vpop.f32.mrf.mxu1 }
 0x79d   :  { %v5381_v13 = vpop.f32.mrf.mxu1 }
 0x79e   :  { %v5382_v34 = vadd.f32 %v5381_v13, %v5380_v4 }
 0x7a0   :  { %v5037_v14 = vadd.f32 %v5382_v34, %v4967_v27 }
 0x7ab   :  { %v5106_v35 = vpop.f32.mrf.mxu1 }
 0x7ac   :  { %v5107_v47 = vadd.f32 %v5106_v35, %v5037_v14 }
 0x7ad   :  { %v5606_v50 = vpop.f32.mrf.mxu1 }
 0x7ae   :  { %5111 = vst.msk [vmem:[#allocation5] sm:$0x3] %vm5110_vm4, %v5107_v47 }
 0x7af   :  { %5721 = shalt.err (!%p5718_p4)
}
 0x7b0   :  { %5121 = dma.vmem_to_hbm [thread:$0]  %s5119_s6, 32, %s8558_s4, [#allocation6]  }
 0x7b1   :  { %5730 = dma.done.wait [#allocation6], 32  }
 0x7b2   :  { %5731 = vsyncadd [#allocation6], 4294967264 }
 0x7b3   :  { %5125 = vsyncpa [#allocation6], 1 }

</bundles_post_ra>
